<compile_context>
chip_gen: v6e
topology: v6e:2x2x1
jax: 0.10.0
libtpu: 0.0.40
codegen_flags: <defaults>
</compile_context>

<pallas_src>
import jax
import jax.numpy as jnp
from jax.experimental import pallas as pl
from jax.experimental.pallas import tpu as pltpu

LANE = 128  # TPU lane width


def _leaky_relu(x, negative_slope=0.01):
    # matches torch.nn.LeakyReLU default (negative_slope=0.01)
    return jnp.where(x > 0, x, negative_slope * x)


def _round_up(n, m):
    return ((n + m - 1) // m) * m


# --------------------------------------------------------------------------- #
# Kernel
# --------------------------------------------------------------------------- #
def mlp_kernel(x_ref, w1_ref, w2_ref, aux_ref, o_ref):
    # aux rows: 0 = b1 (f32, lane-padded), 1 = b2, 2 = w3 row, 3 = [b3, 0, ...]
    # TODO(synk): nn.Dropout(0.05) is identity at inference; training-mode
    # parity would need a pltpu.prng_* mask.
    hid_p = w1_ref.shape[1]
    hid2_p = w2_ref.shape[1]

    x = x_ref[...]                                                   # bf16 (bt, in_sz)

    # layer 1: bf16 MXU matmul, f32 accumulation; bias add + LeakyReLU in f32.
    h1 = jnp.dot(x, w1_ref[...], preferred_element_type=jnp.float32)
    h1 = _leaky_relu(h1 + aux_ref[0:1, :hid_p])

    # layer 2: round activations to bf16 for the MXU, accumulate in f32.
    h2 = jnp.dot(h1.astype(jnp.bfloat16), w2_ref[...],
                 preferred_element_type=jnp.float32)
    h2 = _leaky_relu(h2 + aux_ref[1:2, :hid2_p])

    # layer 3 (out_features == 1): VPU multiply + XLU lane reduce instead of a
    # 1-column MXU pass. Result is stored directly as a (bt, 1) column block —
    # no lane broadcast, no wrapper slice.
    w3 = aux_ref[2:3, :hid2_p]                                       # (1, hid2_p) f32
    out_col = jnp.sum(h2 * w3, axis=-1, keepdims=True) + aux_ref[3:4, 0:1]
    o_ref[...] = out_col.astype(o_ref.dtype)


# --------------------------------------------------------------------------- #
# Generation-aware sizing helpers
# --------------------------------------------------------------------------- #
def _tpu_info():
    """Best-effort (physical VMEM bytes, #TensorCores per chip)."""
    physical_vmem = 128 * 1024 * 1024          # v5e / v6e default
    try:
        physical_vmem = int(pltpu.get_tpu_info().vmem_capacity_bytes)
    except Exception:
        pass
    kind = ""
    try:
        kind = jax.devices()[0].device_kind.lower()
    except Exception:
        pass
    # v7x: 2 TensorCores per chip, 64 MiB VMEM per core.
    num_cores = 2 if ("v7" in kind or "7x" in kind
                      or physical_vmem <= 64 * 1024 * 1024) else 1
    return physical_vmem, num_cores


def _choose_batch_tile(B, num_cores, max_tile):
    """Largest multiple-of-8 divisor of B (<= max_tile) that still leaves the
    'parallel' grid with >= 2 steps per TensorCore on multi-core chips."""
    if B <= 8:
        return B
    min_steps = 4 if num_cores >= 2 else 1      # v7x: >= 2 steps per core
    best = None
    hi = min(B, max(8, max_tile))
    for t in range(8, hi + 1, 8):
        if B % t == 0 and B // t >= min_steps:
            best = t
    if best is None:
        divs = [t for t in range(8, hi + 1, 8) if B % t == 0]
        best = max(divs) if divs else B         # odd batch: single full-batch step
    return best


def _vmem_limit_bytes(batch_tile, in_sz, hid_p, hid2_p, physical_vmem):
    bf16, f32 = 2, 4
    maxw = max(hid_p, hid2_p)
    est = (
        2 * batch_tile * _round_up(in_sz, LANE) * bf16   # double-buffered x tiles
        + 2 * batch_tile * LANE * f32                    # double-buffered (bt,1) out tiles (lane-padded)
        + in_sz * hid_p * bf16                           # W1 (single-buffered)
        + hid_p * hid2_p * bf16                          # W2 (single-buffered)
        + 8 * maxw * f32                                 # packed bias/w3 slab (sublane-padded)
        + 3 * batch_tile * max(hid_p, hid2_p) * f32      # live f32 activations / temps
    )
    need = max(2 * est, 32 * 1024 * 1024)                # 2x headroom for compiler temporaries
    cap = (physical_vmem * 3) // 4                       # ~96 MiB on v5e/v6e, ~48 MiB on v7x
    if need > cap:                                       # never clamp below the real estimate
        cap = min(need, physical_vmem - (4 << 20))
    return int(min(need, cap))


# --------------------------------------------------------------------------- #
# Parameter prep + wrapper
# --------------------------------------------------------------------------- #
def prepare_params(w1, b1, w2, b2, w3, b3):
    """One-time prep: zero-pad hidden dims to multiples of 128 (exact since
    LeakyReLU(0)=0 and pad biases are 0), cast MXU weights to bf16, and pack
    b1 / b2 / w3-row / b3 into a single (4, maxw) f32 slab."""
    in_sz, hid = w1.shape
    hid2 = w2.shape[1]
    hid_p = _round_up(hid, LANE)
    hid2_p = _round_up(hid2, LANE)
    maxw = max(hid_p, hid2_p)

    w1p = jnp.zeros((in_sz, hid_p), jnp.bfloat16).at[:, :hid].set(w1.astype(jnp.bfloat16))
    w2p = jnp.zeros((hid_p, hid2_p), jnp.bfloat16).at[:hid, :hid2].set(w2.astype(jnp.bfloat16))

    aux = jnp.zeros((4, maxw), jnp.float32)
    aux = aux.at[0, :hid].set(b1.astype(jnp.float32).reshape(hid))
    aux = aux.at[1, :hid2].set(b2.astype(jnp.float32).reshape(hid2))
    aux = aux.at[2, :hid2].set(w3.astype(jnp.float32).reshape(hid2))
    aux = aux.at[3, 0].set(b3.astype(jnp.float32).reshape(()))
    return w1p, w2p, aux


def two_layer_model_forward(x, w1p, w2p, aux, *, batch_tile=None):
    """Fused forward. Params must come from `prepare_params`."""
    B, in_sz = x.shape
    assert w1p.shape[0] == in_sz
    hid_p, hid2_p = w1p.shape[1], w2p.shape[1]
    maxw = aux.shape[1]

    physical_vmem, num_cores = _tpu_info()
    if batch_tile is None:
        # Cap the tile so activations stay within ~1/4 of physical VMEM.
        per_row = _round_up(in_sz, LANE) * 2 + LANE * 4 + 3 * (hid_p + hid2_p) * 4
        max_tile = max(8, min(2048, ((physical_vmem // 4) // per_row) // 8 * 8))
        batch_tile = _choose_batch_tile(B, num_cores, max_tile)
    assert B % batch_tile == 0, (B, batch_tile)

    xb = x if x.dtype == jnp.bfloat16 else x.astype(jnp.bfloat16)
    grid = (B // batch_tile,)
    vmem_limit = _vmem_limit_bytes(batch_tile, in_sz, hid_p, hid2_p, physical_vmem)

    # NOTE: W1 / W2 are kept fully resident in VMEM; fine for the hidden sizes
    # this model targets on every generation.
    # TODO(synk): for very large hidden sizes (weight blocks approaching ~half
    # of VMEM, esp. v7x's 64 MiB), add a K-reduction grid axis (last,
    # "arbitrary") with a pl.when-initialized f32 accumulator scratch and tile
    # hid2_p instead of keeping the weights fully resident.
    def call(weight_mode):
        wkw = {} if weight_mode is None else {"pipeline_mode": weight_mode}
        return pl.pallas_call(
            mlp_kernel,
            out_shape=jax.ShapeDtypeStruct((B, 1), jnp.float32),
            grid_spec=pltpu.PrefetchScalarGridSpec(
                num_scalar_prefetch=0,
                grid=grid,
                in_specs=[
                    pl.BlockSpec((batch_tile, in_sz), lambda i: (i, 0)),        # x tile (bf16)
                    pl.BlockSpec((in_sz, hid_p), lambda i: (0, 0), **wkw),      # W1 (bf16)
                    pl.BlockSpec((hid_p, hid2_p), lambda i: (0, 0), **wkw),     # W2 (bf16)
                    pl.BlockSpec((4, maxw), lambda i: (0, 0), **wkw),           # b1/b2/w3/b3 slab (f32)
                ],
                out_specs=pl.BlockSpec((batch_tile, 1), lambda i: (i, 0)),      # true (B,1) column
            ),
            compiler_params=pltpu.CompilerParams(
                dimension_semantics=("parallel",),
                vmem_limit_bytes=vmem_limit,
            ),
        )(xb, w1p, w2p, aux)

    # Grid-invariant weight blocks only need a single VMEM buffer; fall back to
    # default double-buffering if this build rejects pipeline_mode on the main
    # pallas_call pipeline (perf-only difference, never a correctness one).
    try:
        return call(pl.Buffered(1))
    except Exception:
        return call(None)


# --------------------------------------------------------------------------- #
# Deterministic init + pure-JAX reference
# --------------------------------------------------------------------------- #
def init_params(key, input_size, hidden_size, dtype=jnp.float32):
    """Deterministic init mimicking nn.Linear's uniform(-1/sqrt(fan_in), +)."""
    hidden2 = hidden_size // 2
    ks = jax.random.split(key, 6)

    def lin(kw, kb, fan_in, fan_out):
        bound = 1.0 / jnp.sqrt(jnp.asarray(fan_in, dtype))
        w = jax.random.uniform(kw, (fan_in, fan_out), dtype, -bound, bound)
        b = jax.random.uniform(kb, (1, fan_out), dtype, -bound, bound)
        return w, b

    w1, b1 = lin(ks[0], ks[1], input_size, hidden_size)
    w2, b2 = lin(ks[2], ks[3], hidden_size, hidden2)
    w3, b3 = lin(ks[4], ks[5], hidden2, 1)
    return w1, b1, w2, b2, w3, b3


def ref_forward(x, params):
    """Pure-JAX reference mirroring the kernel's numerics: bf16-rounded matmul
    operands with f32 accumulation (precision=HIGHEST keeps the f32 math exact)."""
    w1, b1, w2, b2, w3, b3 = params
    hp = jax.lax.Precision.HIGHEST
    r = lambda a: a.astype(jnp.bfloat16).astype(jnp.float32)
    h1 = _leaky_relu(jnp.dot(r(x), r(w1), precision=hp) + b1)
    h2 = _leaky_relu(jnp.dot(r(h1), r(w2), precision=hp) + b2)
    return jnp.dot(h2, w3, precision=hp) + b3.reshape(1, 1)


if __name__ == "__main__":
    key = jax.random.PRNGKey(0)
    batch = 512        # 1 full-batch step on v5e/v6e; 4 x 128-row steps on v7x
    input_size = 32
    hidden_size = 32   # hidden2 = 16; both zero-padded to 128 inside prepare_params

    k_x, k_p = jax.random.split(key)
    x = jax.random.normal(k_x, (batch, input_size), jnp.float32)
    raw_params = init_params(k_p, input_size, hidden_size)
    params = prepare_params(*raw_params)

    out = two_layer_model_forward(x, *params)
    out = jax.block_until_ready(out)
    assert out.shape == (batch, 1), out.shape

    ref = ref_forward(x, raw_params)
    max_err = float(jnp.max(jnp.abs(out - ref)))
    assert jnp.allclose(out, ref, atol=2e-4, rtol=2e-4), f"max abs err {max_err}"

    print("KERNEL_OK")
</pallas_src>

<mosaic_0001>
module attributes {stable_mosaic.version = 11 : i64} {
  func.func @mlp_kernel(%arg0: i32, %arg1: memref<512x32xbf16, #tpu.memory_space<vmem>>, %arg2: memref<32x128xbf16, #tpu.memory_space<vmem>>, %arg3: memref<128x128xbf16, #tpu.memory_space<vmem>>, %arg4: memref<4x128xf32, #tpu.memory_space<vmem>>, %arg5: memref<512x1xf32, #tpu.memory_space<vmem>>) attributes {dimension_semantics = [#tpu.dimension_semantics<parallel>], iteration_bounds = array<i64: 1>, scalar_prefetch = 0 : i64, scratch_operands = 0 : i64, tpu.core_type = #tpu.core_type<tc>, window_params = [{transform_indices = @transform_0, window_bounds = array<i64: 512, 32>}, {pipeline_mode = #tpu.pipeline_mode<synchronous>, transform_indices = @transform_1, window_bounds = array<i64: 32, 128>}, {pipeline_mode = #tpu.pipeline_mode<synchronous>, transform_indices = @transform_2, window_bounds = array<i64: 128, 128>}, {pipeline_mode = #tpu.pipeline_mode<synchronous>, transform_indices = @transform_3, window_bounds = array<i64: 4, 128>}, {transform_indices = @transform_4, window_bounds = array<i64: 512, 1>}]} {
    %c0 = arith.constant 0 : index
    %c0_0 = arith.constant 0 : index
    %0 = vector.load %arg1[%c0, %c0_0] : memref<512x32xbf16, #tpu.memory_space<vmem>>, vector<512x32xbf16>
    %c0_1 = arith.constant 0 : index
    %c0_2 = arith.constant 0 : index
    %1 = vector.load %arg2[%c0_1, %c0_2] : memref<32x128xbf16, #tpu.memory_space<vmem>>, vector<32x128xbf16>
    %cst = arith.constant dense<0.000000e+00> : vector<512x128xf32>
    %2 = tpu.matmul %0, %1, %cst {dimension_numbers = #tpu.dot_dimension_numbers<[1], [0], [0], [1], [0, 0, 1, 1], [], []>} : vector<512x32xbf16>, vector<32x128xbf16>, vector<512x128xf32> -> vector<512x128xf32>
    %c0_3 = arith.constant 0 : index
    %c0_4 = arith.constant 0 : index
    %3 = vector.load %arg4[%c0_3, %c0_4] : memref<4x128xf32, #tpu.memory_space<vmem>>, vector<1x128xf32>
    %4 = vector.broadcast %3 : vector<1x128xf32> to vector<512x128xf32>
    %5 = arith.addf %2, %4 : vector<512x128xf32>
    %cst_5 = arith.constant 0.000000e+00 : f32
    %6 = vector.broadcast %cst_5 : f32 to vector<512x128xf32>
    %7 = arith.cmpf ogt, %5, %6 : vector<512x128xf32>
    %cst_6 = arith.constant 0.00999999977 : f32
    %8 = vector.broadcast %cst_6 : f32 to vector<512x128xf32>
    %9 = arith.mulf %8, %5 : vector<512x128xf32>
    %10 = arith.select %7, %5, %9 : vector<512x128xi1>, vector<512x128xf32>
    %11 = arith.truncf %10 : vector<512x128xf32> to vector<512x128xbf16>
    %c0_7 = arith.constant 0 : index
    %c0_8 = arith.constant 0 : index
    %12 = vector.load %arg3[%c0_7, %c0_8] : memref<128x128xbf16, #tpu.memory_space<vmem>>, vector<128x128xbf16>
    %cst_9 = arith.constant dense<0.000000e+00> : vector<512x128xf32>
    %13 = tpu.matmul %11, %12, %cst_9 {dimension_numbers = #tpu.dot_dimension_numbers<[1], [0], [0], [1], [0, 0, 1, 1], [], []>} : vector<512x128xbf16>, vector<128x128xbf16>, vector<512x128xf32> -> vector<512x128xf32>
    %c1 = arith.constant 1 : index
    %c0_10 = arith.constant 0 : index
    %14 = vector.load %arg4[%c1, %c0_10] : memref<4x128xf32, #tpu.memory_space<vmem>>, vector<1x128xf32>
    %15 = vector.broadcast %14 : vector<1x128xf32> to vector<512x128xf32>
    %16 = arith.addf %13, %15 : vector<512x128xf32>
    %cst_11 = arith.constant 0.000000e+00 : f32
    %17 = vector.broadcast %cst_11 : f32 to vector<512x128xf32>
    %18 = arith.cmpf ogt, %16, %17 : vector<512x128xf32>
    %cst_12 = arith.constant 0.00999999977 : f32
    %19 = vector.broadcast %cst_12 : f32 to vector<512x128xf32>
    %20 = arith.mulf %19, %16 : vector<512x128xf32>
    %21 = arith.select %18, %16, %20 : vector<512x128xi1>, vector<512x128xf32>
    %c2 = arith.constant 2 : index
    %c0_13 = arith.constant 0 : index
    %22 = vector.load %arg4[%c2, %c0_13] : memref<4x128xf32, #tpu.memory_space<vmem>>, vector<1x128xf32>
    %23 = vector.broadcast %22 : vector<1x128xf32> to vector<512x128xf32>
    %24 = arith.mulf %21, %23 : vector<512x128xf32>
    %cst_14 = arith.constant dense<0.000000e+00> : vector<512xf32>
    %25 = vector.multi_reduction <add>, %24, %cst_14 [1] : vector<512x128xf32> to vector<512xf32>
    %26 = vector.shape_cast %25 : vector<512xf32> to vector<512x1xf32>
    %c3 = arith.constant 3 : index
    %c0_15 = arith.constant 0 : index
    %27 = vector.load %arg4[%c3, %c0_15] : memref<4x128xf32, #tpu.memory_space<vmem>>, vector<1x1xf32>
    %28 = vector.broadcast %27 : vector<1x1xf32> to vector<512x1xf32>
    %29 = arith.addf %26, %28 : vector<512x1xf32>
    %c0_16 = arith.constant 0 : index
    %c0_17 = arith.constant 0 : index
    %30 = vector.load %arg5[%c0_16, %c0_17] : memref<512x1xf32, #tpu.memory_space<vmem>>, vector<512x1xf32>
    tpu.vector_store %arg5[%c0_16, %c0_17], %29 {strides = array<i32>} : memref<512x1xf32, #tpu.memory_space<vmem>>, vector<512x1xf32>,
    return
  }
  func.func @transform_0(%arg0: i32) -> (i32, i32) {
    %c0_i32 = arith.constant 0 : i32
    %c0_i32_0 = arith.constant 0 : i32
    return %arg0, %c0_i32 : i32, i32
  }
  func.func @transform_1(%arg0: i32) -> (i32, i32) {
    %c0_i32 = arith.constant 0 : i32
    %c0_i32_0 = arith.constant 0 : i32
    %c0_i32_1 = arith.constant 0 : i32
    return %c0_i32, %c0_i32_0 : i32, i32
  }
  func.func @transform_2(%arg0: i32) -> (i32, i32) {
    %c0_i32 = arith.constant 0 : i32
    %c0_i32_0 = arith.constant 0 : i32
    %c0_i32_1 = arith.constant 0 : i32
    return %c0_i32, %c0_i32_0 : i32, i32
  }
  func.func @transform_3(%arg0: i32) -> (i32, i32) {
    %c0_i32 = arith.constant 0 : i32
    %c0_i32_0 = arith.constant 0 : i32
    %c0_i32_1 = arith.constant 0 : i32
    return %c0_i32, %c0_i32_0 : i32, i32
  }
  func.func @transform_4(%arg0: i32) -> (i32, i32) {
    %c0_i32 = arith.constant 0 : i32
    %c0_i32_0 = arith.constant 0 : i32
    return %arg0, %c0_i32 : i32, i32
  }
}

module attributes {stable_mosaic.version = 11 : i64} {
  func.func @mlp_kernel(%arg0: i32, %arg1: memref<512x32xbf16, #tpu.memory_space<vmem>>, %arg2: memref<32x128xbf16, #tpu.memory_space<vmem>>, %arg3: memref<128x128xbf16, #tpu.memory_space<vmem>>, %arg4: memref<4x128xf32, #tpu.memory_space<vmem>>, %arg5: memref<512x1xf32, #tpu.memory_space<vmem>>) attributes {dimension_semantics = [#tpu.dimension_semantics<parallel>], iteration_bounds = array<i64: 1>, scalar_prefetch = 0 : i64, scratch_operands = 0 : i64, tpu.core_type = #tpu.core_type<tc>, window_params = [{transform_indices = @transform_0, window_bounds = array<i64: 512, 32>}, {pipeline_mode = #tpu.pipeline_mode<synchronous>, transform_indices = @transform_1, window_bounds = array<i64: 32, 128>}, {pipeline_mode = #tpu.pipeline_mode<synchronous>, transform_indices = @transform_2, window_bounds = array<i64: 128, 128>}, {pipeline_mode = #tpu.pipeline_mode<synchronous>, transform_indices = @transform_3, window_bounds = array<i64: 4, 128>}, {transform_indices = @transform_4, window_bounds = array<i64: 512, 1>}]} {
    %c0 = arith.constant 0 : index
    %c0_0 = arith.constant 0 : index
    %0 = vector.load %arg1[%c0, %c0_0] : memref<512x32xbf16, #tpu.memory_space<vmem>>, vector<512x32xbf16>
    %c0_1 = arith.constant 0 : index
    %c0_2 = arith.constant 0 : index
    %1 = vector.load %arg2[%c0_1, %c0_2] : memref<32x128xbf16, #tpu.memory_space<vmem>>, vector<32x128xbf16>
    %cst = arith.constant dense<0.000000e+00> : vector<512x128xf32>
    %2 = tpu.matmul %0, %1, %cst {dimension_numbers = #tpu.dot_dimension_numbers<[1], [0], [0], [1], [0, 0, 1, 1], [], []>} : vector<512x32xbf16>, vector<32x128xbf16>, vector<512x128xf32> -> vector<512x128xf32>
    %c0_3 = arith.constant 0 : index
    %c0_4 = arith.constant 0 : index
    %3 = vector.load %arg4[%c0_3, %c0_4] : memref<4x128xf32, #tpu.memory_space<vmem>>, vector<1x128xf32>
    %4 = vector.broadcast %3 : vector<1x128xf32> to vector<512x128xf32>
    %5 = arith.addf %2, %4 : vector<512x128xf32>
    %cst_5 = arith.constant 0.000000e+00 : f32
    %6 = vector.broadcast %cst_5 : f32 to vector<512x128xf32>
    %7 = arith.cmpf ogt, %5, %6 : vector<512x128xf32>
    %cst_6 = arith.constant 0.00999999977 : f32
    %8 = vector.broadcast %cst_6 : f32 to vector<512x128xf32>
    %9 = arith.mulf %8, %5 : vector<512x128xf32>
    %10 = arith.select %7, %5, %9 : vector<512x128xi1>, vector<512x128xf32>
    %11 = arith.truncf %10 : vector<512x128xf32> to vector<512x128xbf16>
    %c0_7 = arith.constant 0 : index
    %c0_8 = arith.constant 0 : index
    %12 = vector.load %arg3[%c0_7, %c0_8] : memref<128x128xbf16, #tpu.memory_space<vmem>>, vector<128x128xbf16>
    %cst_9 = arith.constant dense<0.000000e+00> : vector<512x128xf32>
    %13 = tpu.matmul %11, %12, %cst_9 {dimension_numbers = #tpu.dot_dimension_numbers<[1], [0], [0], [1], [0, 0, 1, 1], [], []>} : vector<512x128xbf16>, vector<128x128xbf16>, vector<512x128xf32> -> vector<512x128xf32>
    %c1 = arith.constant 1 : index
    %c0_10 = arith.constant 0 : index
    %14 = vector.load %arg4[%c1, %c0_10] : memref<4x128xf32, #tpu.memory_space<vmem>>, vector<1x128xf32>
    %15 = vector.broadcast %14 : vector<1x128xf32> to vector<512x128xf32>
    %16 = arith.addf %13, %15 : vector<512x128xf32>
    %cst_11 = arith.constant 0.000000e+00 : f32
    %17 = vector.broadcast %cst_11 : f32 to vector<512x128xf32>
    %18 = arith.cmpf ogt, %16, %17 : vector<512x128xf32>
    %cst_12 = arith.constant 0.00999999977 : f32
    %19 = vector.broadcast %cst_12 : f32 to vector<512x128xf32>
    %20 = arith.mulf %19, %16 : vector<512x128xf32>
    %21 = arith.select %18, %16, %20 : vector<512x128xi1>, vector<512x128xf32>
    %c2 = arith.constant 2 : index
    %c0_13 = arith.constant 0 : index
    %22 = vector.load %arg4[%c2, %c0_13] : memref<4x128xf32, #tpu.memory_space<vmem>>, vector<1x128xf32>
    %23 = vector.broadcast %22 : vector<1x128xf32> to vector<512x128xf32>
    %24 = arith.mulf %21, %23 : vector<512x128xf32>
    %cst_14 = arith.constant dense<0.000000e+00> : vector<512xf32>
    %25 = vector.multi_reduction <add>, %24, %cst_14 [1] : vector<512x128xf32> to vector<512xf32>
    %26 = vector.shape_cast %25 : vector<512xf32> to vector<512x1xf32>
    %c3 = arith.constant 3 : index
    %c0_15 = arith.constant 0 : index
    %27 = vector.load %arg4[%c3, %c0_15] : memref<4x128xf32, #tpu.memory_space<vmem>>, vector<1x1xf32>
    %28 = vector.broadcast %27 : vector<1x1xf32> to vector<512x1xf32>
    %29 = arith.addf %26, %28 : vector<512x1xf32>
    %c0_16 = arith.constant 0 : index
    %c0_17 = arith.constant 0 : index
    %30 = vector.load %arg5[%c0_16, %c0_17] : memref<512x1xf32, #tpu.memory_space<vmem>>, vector<512x1xf32>
    tpu.vector_store %arg5[%c0_16, %c0_17], %29 {strides = array<i32>} : memref<512x1xf32, #tpu.memory_space<vmem>>, vector<512x1xf32>,
    return
  }
  func.func @transform_0(%arg0: i32) -> (i32, i32) {
    %c0_i32 = arith.constant 0 : i32
    %c0_i32_0 = arith.constant 0 : i32
    return %arg0, %c0_i32 : i32, i32
  }
  func.func @transform_1(%arg0: i32) -> (i32, i32) {
    %c0_i32 = arith.constant 0 : i32
    %c0_i32_0 = arith.constant 0 : i32
    %c0_i32_1 = arith.constant 0 : i32
    return %c0_i32, %c0_i32_0 : i32, i32
  }
  func.func @transform_2(%arg0: i32) -> (i32, i32) {
    %c0_i32 = arith.constant 0 : i32
    %c0_i32_0 = arith.constant 0 : i32
    %c0_i32_1 = arith.constant 0 : i32
    return %c0_i32, %c0_i32_0 : i32, i32
  }
  func.func @transform_3(%arg0: i32) -> (i32, i32) {
    %c0_i32 = arith.constant 0 : i32
    %c0_i32_0 = arith.constant 0 : i32
    %c0_i32_1 = arith.constant 0 : i32
    return %c0_i32, %c0_i32_0 : i32, i32
  }
  func.func @transform_4(%arg0: i32) -> (i32, i32) {
    %c0_i32 = arith.constant 0 : i32
    %c0_i32_0 = arith.constant 0 : i32
    return %arg0, %c0_i32 : i32, i32
  }
}

</mosaic_0001>

<bundles_post_ra>
// kernel: tpu_custom_call.1
= control target key start
LH: loop header
LB: loop body
LE: loop exit
PB: predicated region body
PF: predicated region fallthrough
CT: control target
= control target key end

     0   :  { %vm263_vm0 = vcmask 261120   ;;  %s2831_s1 = inlined_call_operand.vmem [shape: bf16[32,128], index: 1, kind: input, shape index: {}]   ;;  %s2832_s0 = inlined_call_operand.vmem [shape: bf16[512,32], index: 0, kind: input, shape index: {}]   ;;  %s2833_s2 = inlined_call_operand.vmem [shape: bf16[128,128], index: 2, kind: input, shape index: {}]   ;;  %s2834_s3 = inlined_call_operand.vmem [shape: f32[4,128], index: 3, kind: input, shape index: {}]   ;;  %s2835_s4 = inlined_call_operand.vmem [shape: f32[512,1], index: 4, kind: output, shape index: {}]  }
   0x1   :  { %v2074_v0 = vld [vmem:[%s2831_s1 + $0x8] sm:$0xff]   ;;  %v2075_v1 = vld [vmem:[%s2831_s1] sm:$0xff]   ;;  %v2078_v4 = vld [vmem:[%s2832_s0 + $0x10] sm:$0xff]  }
   0x2   :  { %1910 = vmatprep.subr.bf16.mxu0 %v2074_v0  ;;  %v2076_v2 = vld [vmem:[%s2832_s0] sm:$0xff]   ;;  %v2077_v3 = vld [vmem:[%s2832_s0 + $0x8] sm:$0xff]   ;;  %v2079_v5 = vld [vmem:[%s2832_s0 + $0x18] sm:$0xff]  }
   0x3   :  { %1911 = vmatpush3.bf16.msra.mxu0 %v2074_v0  ;;  %1914 = vmatprep.mubr.msk.bf16.mxu0 %vm263_vm0, %v2076_v2  ;;  %v2080_v6 = vld [vmem:[%s2832_s0 + $0x20] sm:$0xff]   ;;  %v2081_v7 = vld [vmem:[%s2832_s0 + $0x28] sm:$0xff]   ;;  %v2082_v8 = vld [vmem:[%s2832_s0 + $0x30] sm:$0xff]  }
   0x4   :  { %1912 = vmatprep.subr.bf16.mxu0 %v2075_v1  ;;  %v2098_v9 = vld [vmem:[%s2833_s2 + $0x38] sm:$0xff]   ;;  %v2103_v10 = vld [vmem:[%s2833_s2 + $0x30] sm:$0xff]   ;;  %v2084_v12 = vld [vmem:[%s2832_s0 + $0x40] sm:$0xff]  }
   0x5   :  { %2058 = vmatprep.subr.bf16.mxu1 %v2098_v9  ;;  %v2083_v11 = vld [vmem:[%s2832_s0 + $0x38] sm:$0xff]   ;;  %v2108_v13 = vld [vmem:[%s2833_s2 + $0x28] sm:$0xff]   ;;  %v2111_v15 = vld [vmem:[%s2833_s2 + $0x20] sm:$0xff]  }
   0x6   :  { %2066 = vmatpush3.bf16.msra.mxu1 %v2098_v9  ;;  %v2085_v14 = vld [vmem:[%s2832_s0 + $0x48] sm:$0xff]   ;;  %v2112_v16 = vld [vmem:[%s2833_s2 + $0x18] sm:$0xff]   ;;  %v2086_v17 = vld [vmem:[%s2832_s0 + $0x50] sm:$0xff]  }
   0x7   :  { %1913 = vmatpush3.bf16.msra.mxu0 %v2075_v1  ;;  %2059 = vmatprep.subr.bf16.mxu1 %v2103_v10  ;;  %v2113_v18 = vld [vmem:[%s2833_s2 + $0x10] sm:$0xff]   ;;  %v2087_v19 = vld [vmem:[%s2832_s0 + $0x58] sm:$0xff]   ;;  %v2114_v20 = vld [vmem:[%s2833_s2 + $0x8] sm:$0xff]  }
   0x8   :  { %1978 = vmatprep.subr.bf16.mxu0 %v2098_v9  ;;  %v2088_v21 = vld [vmem:[%s2832_s0 + $0x60] sm:$0xff]   ;;  %v2089_v22 = vld [vmem:[%s2832_s0 + $0x68] sm:$0xff]   ;;  %v2090_v23 = vld [vmem:[%s2832_s0 + $0x70] sm:$0xff]  }
   0x9   :  { %v2091_v24 = vld [vmem:[%s2832_s0 + $0x78] sm:$0xff]   ;;  %v2092_v25 = vld [vmem:[%s2832_s0 + $0x80] sm:$0xff]   ;;  %v2093_v26 = vld [vmem:[%s2832_s0 + $0x88] sm:$0xff]  }
   0xa   :  { %1915 = vmatmul.mubr.msk.bf16.vlgmr.msra.gmra.mxu0 %vm263_vm0, %v2077_v3  ;;  %2067 = vmatpush3.bf16.msra.mxu1 %v2103_v10  ;;  %v2094_v27 = vld [vmem:[%s2832_s0 + $0x90] sm:$0xff]   ;;  %v2095_v28 = vld [vmem:[%s2832_s0 + $0x98] sm:$0xff]   ;;  %v2096_v29 = vld [vmem:[%s2832_s0 + $0xa0] sm:$0xff]  }
   0xb   :  { %1918 = vmatprep.mubr.msk.bf16.mxu0 %vm263_vm0, %v2078_v4  ;;  %1979 = vmatpush3.bf16.msra.mxu0 %v2098_v9  ;;  %v2115_v30 = vld [vmem:[%s2833_s2] sm:$0xff]   ;;  %v2097_v31 = vld [vmem:[%s2832_s0 + $0xa8] sm:$0xff]   ;;  %v2099_v32 = vld [vmem:[%s2832_s0 + $0xb0] sm:$0xff]  }
   0xc   :  { %1980 = vmatprep.subr.bf16.mxu0 %v2103_v10  ;;  %2060 = vmatprep.subr.bf16.mxu1 %v2108_v13  ;;  %v2100_v33 = vld [vmem:[%s2832_s0 + $0xb8] sm:$0xff]   ;;  %v2101_v34 = vld [vmem:[%s2832_s0 + $0xc0] sm:$0xff]   ;;  %v2102_v35 = vld [vmem:[%s2832_s0 + $0xc8] sm:$0xff]  }
   0xd   :  { %v2104_v36 = vld [vmem:[%s2832_s0 + $0xd0] sm:$0xff]   ;;  %v2105_v37 = vld [vmem:[%s2832_s0 + $0xd8] sm:$0xff]   ;;  %v2106_v38 = vld [vmem:[%s2832_s0 + $0xe0] sm:$0xff]  }
   0xe   :  { %2068 = vmatpush3.bf16.msra.mxu1 %v2108_v13  ;;  %v2107_v39 = vld [vmem:[%s2832_s0 + $0xe8] sm:$0xff]   ;;  %v2109_v40 = vld [vmem:[%s2832_s0 + $0xf0] sm:$0xff]   ;;  %v2110_v41 = vld [vmem:[%s2832_s0 + $0xf8] sm:$0xff]  }
   0xf   :  { %1981 = vmatpush3.bf16.msra.mxu0 %v2103_v10  ;;  %2061 = vmatprep.subr.bf16.mxu1 %v2111_v15  ;;  %v2302_v43 = vld [vmem:[%s2834_s3] ss:$0 sm:$0xff] }
  0x10   :  { %1982 = vmatprep.subr.bf16.mxu0 %v2108_v13 }
  0x12   :  { %1919 = vmatmul.mubr.msk.bf16.gmra.mxu0 %vm263_vm0, %v2079_v5  ;;  %2069 = vmatpush3.bf16.msra.mxu1 %v2111_v15 }
  0x13   :  { %1922 = vmatprep.mubr.msk.bf16.mxu0 %vm263_vm0, %v2080_v6  ;;  %1983 = vmatpush3.bf16.msra.mxu0 %v2108_v13 }
  0x14   :  { %1984 = vmatprep.subr.bf16.mxu0 %v2111_v15  ;;  %2062 = vmatprep.subr.bf16.mxu1 %v2112_v16 }
  0x16   :  { %2070 = vmatpush3.bf16.msra.mxu1 %v2112_v16 }
  0x17   :  { %1985 = vmatpush3.bf16.msra.mxu0 %v2111_v15  ;;  %2063 = vmatprep.subr.bf16.mxu1 %v2113_v18 }
  0x18   :  { %1986 = vmatprep.subr.bf16.mxu0 %v2112_v16 }
  0x1a   :  { %1923 = vmatmul.mubr.msk.bf16.gmra.mxu0 %vm263_vm0, %v2081_v7  ;;  %2071 = vmatpush3.bf16.msra.mxu1 %v2113_v18 }
  0x1b   :  { %1926 = vmatprep.mubr.msk.bf16.mxu0 %vm263_vm0, %v2082_v8  ;;  %1987 = vmatpush3.bf16.msra.mxu0 %v2112_v16 }
  0x1c   :  { %1988 = vmatprep.subr.bf16.mxu0 %v2113_v18  ;;  %2064 = vmatprep.subr.bf16.mxu1 %v2114_v20 }
  0x1e   :  { %2072 = vmatpush3.bf16.msra.mxu1 %v2114_v20 }
  0x1f   :  { %1989 = vmatpush3.bf16.msra.mxu0 %v2113_v18  ;;  %2065 = vmatprep.subr.bf16.mxu1 %v2115_v30 }
  0x20   :  { %1990 = vmatprep.subr.bf16.mxu0 %v2114_v20 }
  0x22   :  { %1927 = vmatmul.mubr.msk.bf16.gmra.mxu0 %vm263_vm0, %v2083_v11  ;;  %2073 = vmatpush3.bf16.msra.mxu1 %v2115_v30 }
  0x23   :  { %1930 = vmatprep.mubr.msk.bf16.mxu0 %vm263_vm0, %v2084_v12  ;;  %1991 = vmatpush3.bf16.msra.mxu0 %v2114_v20 }
  0x24   :  { %1992 = vmatprep.subr.bf16.mxu0 %v2115_v30 }
  0x27   :  { %1993 = vmatpush3.bf16.msra.mxu0 %v2115_v30 }
  0x2a   :  { %1931 = vmatmul.mubr.msk.bf16.gmra.mxu0 %vm263_vm0, %v2085_v14 }
  0x2b   :  { %1934 = vmatprep.mubr.msk.bf16.mxu0 %vm263_vm0, %v2086_v17 }
  0x32   :  { %1935 = vmatmul.mubr.msk.bf16.gmra.mxu0 %vm263_vm0, %v2087_v19 }
  0x33   :  { %1938 = vmatprep.mubr.msk.bf16.mxu0 %vm263_vm0, %v2088_v21 }
  0x3a   :  { %1939 = vmatmul.mubr.msk.bf16.gmra.mxu0 %vm263_vm0, %v2089_v22 }
  0x3b   :  { %1942 = vmatprep.mubr.msk.bf16.mxu0 %vm263_vm0, %v2090_v23 }
  0x42   :  { %1943 = vmatmul.mubr.msk.bf16.gmra.mxu0 %vm263_vm0, %v2091_v24 }
  0x43   :  { %1946 = vmatprep.mubr.msk.bf16.mxu0 %vm263_vm0, %v2092_v25 }
  0x4a   :  { %1947 = vmatmul.mubr.msk.bf16.gmra.mxu0 %vm263_vm0, %v2093_v26 }
  0x4b   :  { %1950 = vmatprep.mubr.msk.bf16.mxu0 %vm263_vm0, %v2094_v27 }
  0x52   :  { %1951 = vmatmul.mubr.msk.bf16.gmra.mxu0 %vm263_vm0, %v2095_v28 }
  0x53   :  { %1954 = vmatprep.mubr.msk.bf16.mxu0 %vm263_vm0, %v2096_v29 }
  0x5a   :  { %1955 = vmatmul.mubr.msk.bf16.gmra.mxu0 %vm263_vm0, %v2097_v31 }
  0x5b   :  { %1958 = vmatprep.mubr.msk.bf16.mxu0 %vm263_vm0, %v2099_v32 }
  0x62   :  { %1959 = vmatmul.mubr.msk.bf16.gmra.mxu0 %vm263_vm0, %v2100_v33 }
  0x63   :  { %1962 = vmatprep.mubr.msk.bf16.mxu0 %vm263_vm0, %v2101_v34 }
  0x6a   :  { %1963 = vmatmul.mubr.msk.bf16.gmra.mxu0 %vm263_vm0, %v2102_v35 }
  0x6b   :  { %1966 = vmatprep.mubr.msk.bf16.mxu0 %vm263_vm0, %v2104_v36 }
  0x72   :  { %1967 = vmatmul.mubr.msk.bf16.gmra.mxu0 %vm263_vm0, %v2105_v37 }
  0x73   :  { %1970 = vmatprep.mubr.msk.bf16.mxu0 %vm263_vm0, %v2106_v38 }
  0x7a   :  { %1971 = vmatmul.mubr.msk.bf16.gmra.mxu0 %vm263_vm0, %v2107_v39 }
  0x7b   :  { %1974 = vmatprep.mubr.msk.bf16.mxu0 %vm263_vm0, %v2109_v40 }
  0x82   :  { %1975 = vmatmul.mubr.msk.bf16.gmra.mxu0 %vm263_vm0, %v2110_v41 }
  0xca   :  { %v1916_v42 = vpop.f32.mrf.mxu0 }
  0xcb   :  { %v403_v46 = vadd.f32 %v1916_v42, %v2302_v43 }
  0xcc   :  { %v394_v44 = vpop.f32.mrf.mxu0 }
  0xcd   :  { %v395_v45 = vadd.f32 %v2302_v43, %v394_v44  ;;  %v715_v53 = vmul.f32 0.01, %v403_v46  ;;  %vm651_vm3 = vcmp.gt.f32.partialorder %v403_v46, 0.0 }
  0xce   :  { %v1917_v47 = vpop.f32.mrf.mxu0 }
  0xcf   :  { %v406_v48 = vadd.f32 %v1917_v47, %v2302_v43  ;;  %v713_v50 = vmul.f32 0.01, %v395_v45  ;;  %vm649_vm2 = vcmp.gt.f32.partialorder %v395_v45, 0.0  ;;  %v779_v61 = vsel %vm651_vm3, %v403_v46, %v715_v53 }
  0xd0   :  { %v397_v49 = vpop.f32.mrf.mxu0 }
  0xd1   :  { %vm652_vm1 = vcmp.gt.f32.partialorder %v406_v48, 0.0  ;;  %v716_v51 = vmul.f32 0.01, %v406_v48  ;;  %v398_v52 = vadd.f32 %v2302_v43, %v397_v49  ;;  %v777_v59 = vsel %vm649_vm2, %v395_v45, %v713_v50 }
  0xd2   :  { %v1920_v54 = vpop.f32.mrf.mxu0 }
  0xd3   :  { %vm650_vm4 = vcmp.gt.f32.partialorder %v398_v52, 0.0  ;;  %v714_v55 = vmul.f32 0.01, %v398_v52  ;;  %v780_v56 = vsel %vm652_vm1, %v406_v48, %v716_v51  ;;  %v419_v62 = vadd.f32 %v1920_v54, %v2302_v43 }
  0xd4   :  { %v410_v57 = vpop.f32.mrf.mxu0  ;;  %v842_v1 = vpack.c.bf16 %v780_v56, %v779_v61 }
  0xd5   :  { %v411_v58 = vadd.f32 %v2302_v43, %v410_v57  ;;  %v778_v60 = vsel %vm650_vm4, %v398_v52, %v714_v55  ;;  %v719_v7 = vmul.f32 0.01, %v419_v62  ;;  %vm655_vm7 = vcmp.gt.f32.partialorder %v419_v62, 0.0 }
  0xd6   :  { %v1921_v63 = vpop.f32.mrf.mxu0  ;;  %v841_v0 = vpack.c.bf16 %v778_v60, %v777_v59 }
  0xd7   :  { %v422_v2 = vadd.f32 %v1921_v63, %v2302_v43  ;;  %v717_v4 = vmul.f32 0.01, %v411_v58  ;;  %vm653_vm6 = vcmp.gt.f32.partialorder %v411_v58, 0.0  ;;  %v783_v18 = vsel %vm655_vm7, %v419_v62, %v719_v7 }
  0xd8   :  { %v413_v3 = vpop.f32.mrf.mxu0  ;;  %1994 = vmatprep.mubr.bf16.mxu0 %v841_v0 }
  0xd9   :  { %vm656_vm5 = vcmp.gt.f32.partialorder %v422_v2, 0.0  ;;  %v720_v5 = vmul.f32 0.01, %v422_v2  ;;  %v414_v6 = vadd.f32 %v2302_v43, %v413_v3  ;;  %1995 = vmatmul.mubr.bf16.vlgmr.msra.gmra.mxu0 %v842_v1  ;;  %v781_v13 = vsel %vm653_vm6, %v411_v58, %v717_v4 }
  0xda   :  { %v1924_v8 = vpop.f32.mrf.mxu0 }
  0xdb   :  { %v718_v9 = vmul.f32 0.01, %v414_v6  ;;  %vm654_vm8 = vcmp.gt.f32.partialorder %v414_v6, 0.0  ;;  %v784_v11 = vsel %vm656_vm5, %v422_v2, %v720_v5  ;;  %v435_v15 = vadd.f32 %v1924_v8, %v2302_v43 }
  0xdc   :  { %v426_v10 = vpop.f32.mrf.mxu0  ;;  %v844_v20 = vpack.c.bf16 %v784_v11, %v783_v18 }
  0xdd   :  { %v427_v12 = vadd.f32 %v2302_v43, %v426_v10  ;;  %v782_v14 = vsel %vm654_vm8, %v414_v6, %v718_v9  ;;  %v723_v25 = vmul.f32 0.01, %v435_v15  ;;  %vm659_vm11 = vcmp.gt.f32.partialorder %v435_v15, 0.0 }
  0xde   :  { %v1925_v16 = vpop.f32.mrf.mxu0  ;;  %v843_v17 = vpack.c.bf16 %v782_v14, %v781_v13 }
  0xdf   :  { %v438_v19 = vadd.f32 %v1925_v16, %v2302_v43  ;;  %v721_v22 = vmul.f32 0.01, %v427_v12  ;;  %vm657_vm10 = vcmp.gt.f32.partialorder %v427_v12, 0.0  ;;  %v787_v36 = vsel %vm659_vm11, %v435_v15, %v723_v25 }
  0xe0   :  { %v429_v21 = vpop.f32.mrf.mxu0  ;;  %1998 = vmatprep.mubr.bf16.mxu1 %v843_v17 }
  0xe1   :  { %vm660_vm9 = vcmp.gt.f32.partialorder %v438_v19, 0.0  ;;  %v724_v23 = vmul.f32 0.01, %v438_v19  ;;  %v430_v24 = vadd.f32 %v2302_v43, %v429_v21  ;;  %1999 = vmatmul.mubr.bf16.vlgmr.msra.gmra.mxu1 %v844_v20  ;;  %v785_v31 = vsel %vm657_vm10, %v427_v12, %v721_v22 }
  0xe2   :  { %v1928_v26 = vpop.f32.mrf.mxu0 }
  0xe3   :  { %vm658_vm12 = vcmp.gt.f32.partialorder %v430_v24, 0.0  ;;  %v722_v27 = vmul.f32 0.01, %v430_v24  ;;  %v788_v29 = vsel %vm660_vm9, %v438_v19, %v724_v23  ;;  %v451_v33 = vadd.f32 %v1928_v26, %v2302_v43 }
  0xe4   :  { %v442_v28 = vpop.f32.mrf.mxu0  ;;  %v846_v38 = vpack.c.bf16 %v788_v29, %v787_v36 }
  0xe5   :  { %v443_v30 = vadd.f32 %v2302_v43, %v442_v28  ;;  %v786_v32 = vsel %vm658_vm12, %v430_v24, %v722_v27  ;;  %v727_v44 = vmul.f32 0.01, %v451_v33  ;;  %vm663_vm15 = vcmp.gt.f32.partialorder %v451_v33, 0.0 }
  0xe6   :  { %v1929_v34 = vpop.f32.mrf.mxu0  ;;  %v845_v35 = vpack.c.bf16 %v786_v32, %v785_v31 }
  0xe7   :  { %v454_v37 = vadd.f32 %v1929_v34, %v2302_v43  ;;  %v725_v40 = vmul.f32 0.01, %v443_v30  ;;  %vm661_vm14 = vcmp.gt.f32.partialorder %v443_v30, 0.0  ;;  %v791_v55 = vsel %vm663_vm15, %v451_v33, %v727_v44 }
  0xe8   :  { %v445_v39 = vpop.f32.mrf.mxu0  ;;  %2002 = vmatprep.mubr.bf16.mxu1 %v845_v35 }
  0xe9   :  { %vm664_vm13 = vcmp.gt.f32.partialorder %v454_v37, 0.0  ;;  %v728_v41 = vmul.f32 0.01, %v454_v37  ;;  %v446_v42 = vadd.f32 %v2302_v43, %v445_v39  ;;  %2003 = vmatmul.mubr.bf16.gmra.mxu1 %v846_v38  ;;  %v789_v50 = vsel %vm661_vm14, %v443_v30, %v725_v40 }
  0xea   :  { %v1932_v45 = vpop.f32.mrf.mxu0 }
  0xeb   :  { %vm662_vm0 = vcmp.gt.f32.partialorder %v446_v42, 0.0  ;;  %v726_v46 = vmul.f32 0.01, %v446_v42  ;;  %v792_v48 = vsel %vm664_vm13, %v454_v37, %v728_v41  ;;  %v467_v52 = vadd.f32 %v1932_v45, %v2302_v43 }
  0xec   :  { %v458_v47 = vpop.f32.mrf.mxu0  ;;  %v848_v57 = vpack.c.bf16 %v792_v48, %v791_v55 }
  0xed   :  { %v459_v49 = vadd.f32 %v2302_v43, %v458_v47  ;;  %v790_v51 = vsel %vm662_vm0, %v446_v42, %v726_v46  ;;  %v731_v62 = vmul.f32 0.01, %v467_v52  ;;  %vm667_vm3 = vcmp.gt.f32.partialorder %v467_v52, 0.0 }
  0xee   :  { %v1933_v53 = vpop.f32.mrf.mxu0  ;;  %v847_v54 = vpack.c.bf16 %v790_v51, %v789_v50 }
  0xef   :  { %v470_v56 = vadd.f32 %v1933_v53, %v2302_v43  ;;  %v729_v59 = vmul.f32 0.01, %v459_v49  ;;  %vm665_vm2 = vcmp.gt.f32.partialorder %v459_v49, 0.0  ;;  %v795_v9 = vsel %vm667_vm3, %v467_v52, %v731_v62 }
  0xf0   :  { %v461_v58 = vpop.f32.mrf.mxu0  ;;  %2006 = vmatprep.mubr.bf16.mxu1 %v847_v54 }
  0xf1   :  { %vm668_vm1 = vcmp.gt.f32.partialorder %v470_v56, 0.0  ;;  %v732_v60 = vmul.f32 0.01, %v470_v56  ;;  %v462_v61 = vadd.f32 %v2302_v43, %v461_v58  ;;  %2007 = vmatmul.mubr.bf16.gmra.mxu1 %v848_v57  ;;  %v793_v4 = vsel %vm665_vm2, %v459_v49, %v729_v59 }
  0xf2   :  { %v1936_v63 = vpop.f32.mrf.mxu0 }
  0xf3   :  { %vm666_vm4 = vcmp.gt.f32.partialorder %v462_v61, 0.0  ;;  %v730_v0 = vmul.f32 0.01, %v462_v61  ;;  %v796_v2 = vsel %vm668_vm1, %v470_v56, %v732_v60  ;;  %v483_v6 = vadd.f32 %v1936_v63, %v2302_v43 }
  0xf4   :  { %v474_v1 = vpop.f32.mrf.mxu0  ;;  %v850_v11 = vpack.c.bf16 %v796_v2, %v795_v9 }
  0xf5   :  { %v475_v3 = vadd.f32 %v2302_v43, %v474_v1  ;;  %v794_v5 = vsel %vm666_vm4, %v462_v61, %v730_v0  ;;  %v735_v16 = vmul.f32 0.01, %v483_v6  ;;  %vm671_vm7 = vcmp.gt.f32.partialorder %v483_v6, 0.0 }
  0xf6   :  { %v1937_v7 = vpop.f32.mrf.mxu0  ;;  %v849_v8 = vpack.c.bf16 %v794_v5, %v793_v4 }
  0xf7   :  { %v486_v10 = vadd.f32 %v1937_v7, %v2302_v43  ;;  %v733_v13 = vmul.f32 0.01, %v475_v3  ;;  %vm669_vm6 = vcmp.gt.f32.partialorder %v475_v3, 0.0  ;;  %v799_v27 = vsel %vm671_vm7, %v483_v6, %v735_v16 }
  0xf8   :  { %v477_v12 = vpop.f32.mrf.mxu0  ;;  %2010 = vmatprep.mubr.bf16.mxu1 %v849_v8 }
  0xf9   :  { %vm672_vm5 = vcmp.gt.f32.partialorder %v486_v10, 0.0  ;;  %v736_v14 = vmul.f32 0.01, %v486_v10  ;;  %v478_v15 = vadd.f32 %v2302_v43, %v477_v12  ;;  %2011 = vmatmul.mubr.bf16.gmra.mxu1 %v850_v11  ;;  %v797_v22 = vsel %vm669_vm6, %v475_v3, %v733_v13 }
  0xfa   :  { %v1940_v17 = vpop.f32.mrf.mxu0 }
  0xfb   :  { %vm670_vm8 = vcmp.gt.f32.partialorder %v478_v15, 0.0  ;;  %v734_v18 = vmul.f32 0.01, %v478_v15  ;;  %v800_v20 = vsel %vm672_vm5, %v486_v10, %v736_v14  ;;  %v499_v24 = vadd.f32 %v1940_v17, %v2302_v43 }
  0xfc   :  { %v490_v19 = vpop.f32.mrf.mxu0  ;;  %v852_v29 = vpack.c.bf16 %v800_v20, %v799_v27 }
  0xfd   :  { %v491_v21 = vadd.f32 %v2302_v43, %v490_v19  ;;  %v798_v23 = vsel %vm670_vm8, %v478_v15, %v734_v18  ;;  %v739_v34 = vmul.f32 0.01, %v499_v24  ;;  %vm675_vm11 = vcmp.gt.f32.partialorder %v499_v24, 0.0 }
  0xfe   :  { %v1941_v25 = vpop.f32.mrf.mxu0  ;;  %v851_v26 = vpack.c.bf16 %v798_v23, %v797_v22 }
  0xff   :  { %v502_v28 = vadd.f32 %v1941_v25, %v2302_v43  ;;  %v737_v31 = vmul.f32 0.01, %v491_v21  ;;  %vm673_vm10 = vcmp.gt.f32.partialorder %v491_v21, 0.0  ;;  %v803_v46 = vsel %vm675_vm11, %v499_v24, %v739_v34 }
 0x100   :  { %v493_v30 = vpop.f32.mrf.mxu0  ;;  %2014 = vmatprep.mubr.bf16.mxu1 %v851_v26 }
 0x101   :  { %vm676_vm9 = vcmp.gt.f32.partialorder %v502_v28, 0.0  ;;  %v740_v32 = vmul.f32 0.01, %v502_v28  ;;  %v494_v33 = vadd.f32 %v2302_v43, %v493_v30  ;;  %2015 = vmatmul.mubr.bf16.gmra.mxu1 %v852_v29  ;;  %v801_v40 = vsel %vm673_vm10, %v491_v21, %v737_v31 }
 0x102   :  { %v1944_v35 = vpop.f32.mrf.mxu0 }
 0x103   :  { %vm674_vm12 = vcmp.gt.f32.partialorder %v494_v33, 0.0  ;;  %v738_v36 = vmul.f32 0.01, %v494_v33  ;;  %v804_v38 = vsel %vm676_vm9, %v502_v28, %v740_v32  ;;  %v515_v42 = vadd.f32 %v1944_v35, %v2302_v43 }
 0x104   :  { %v506_v37 = vpop.f32.mrf.mxu0  ;;  %v854_v48 = vpack.c.bf16 %v804_v38, %v803_v46 }
 0x105   :  { %v507_v39 = vadd.f32 %v2302_v43, %v506_v37  ;;  %v802_v41 = vsel %vm674_vm12, %v494_v33, %v738_v36  ;;  %v743_v53 = vmul.f32 0.01, %v515_v42  ;;  %vm679_vm15 = vcmp.gt.f32.partialorder %v515_v42, 0.0 }
 0x106   :  { %v1945_v44 = vpop.f32.mrf.mxu0  ;;  %v853_v45 = vpack.c.bf16 %v802_v41, %v801_v40 }
 0x107   :  { %v518_v47 = vadd.f32 %v1945_v44, %v2302_v43  ;;  %v741_v50 = vmul.f32 0.01, %v507_v39  ;;  %vm677_vm14 = vcmp.gt.f32.partialorder %v507_v39, 0.0  ;;  %v807_v0 = vsel %vm679_vm15, %v515_v42, %v743_v53 }
 0x108   :  { %v509_v49 = vpop.f32.mrf.mxu0  ;;  %2018 = vmatprep.mubr.bf16.mxu1 %v853_v45 }
 0x109   :  { %vm680_vm13 = vcmp.gt.f32.partialorder %v518_v47, 0.0  ;;  %v744_v51 = vmul.f32 0.01, %v518_v47  ;;  %v510_v52 = vadd.f32 %v2302_v43, %v509_v49  ;;  %2019 = vmatmul.mubr.bf16.gmra.mxu1 %v854_v48  ;;  %v805_v59 = vsel %vm677_vm14, %v507_v39, %v741_v50 }
 0x10a   :  { %v1948_v54 = vpop.f32.mrf.mxu0 }
 0x10b   :  { %vm678_vm0 = vcmp.gt.f32.partialorder %v510_v52, 0.0  ;;  %v742_v55 = vmul.f32 0.01, %v510_v52  ;;  %v808_v57 = vsel %vm680_vm13, %v518_v47, %v744_v51  ;;  %v531_v61 = vadd.f32 %v1948_v54, %v2302_v43 }
 0x10c   :  { %v522_v56 = vpop.f32.mrf.mxu0  ;;  %v856_v2 = vpack.c.bf16 %v808_v57, %v807_v0 }
 0x10d   :  { %v523_v58 = vadd.f32 %v2302_v43, %v522_v56  ;;  %v806_v60 = vsel %vm678_vm0, %v510_v52, %v742_v55  ;;  %v747_v7 = vmul.f32 0.01, %v531_v61  ;;  %vm683_vm3 = vcmp.gt.f32.partialorder %v531_v61, 0.0 }
 0x10e   :  { %v1949_v62 = vpop.f32.mrf.mxu0  ;;  %v855_v63 = vpack.c.bf16 %v806_v60, %v805_v59 }
 0x10f   :  { %v534_v1 = vadd.f32 %v1949_v62, %v2302_v43  ;;  %v745_v4 = vmul.f32 0.01, %v523_v58  ;;  %vm681_vm2 = vcmp.gt.f32.partialorder %v523_v58, 0.0  ;;  %v811_v18 = vsel %vm683_vm3, %v531_v61, %v747_v7 }
 0x110   :  { %v525_v3 = vpop.f32.mrf.mxu0  ;;  %2022 = vmatprep.mubr.bf16.mxu1 %v855_v63 }
 0x111   :  { %vm684_vm1 = vcmp.gt.f32.partialorder %v534_v1, 0.0  ;;  %v748_v5 = vmul.f32 0.01, %v534_v1  ;;  %v526_v6 = vadd.f32 %v2302_v43, %v525_v3  ;;  %2023 = vmatmul.mubr.bf16.gmra.mxu1 %v856_v2  ;;  %v809_v13 = vsel %vm681_vm2, %v523_v58, %v745_v4 }
 0x112   :  { %v1952_v8 = vpop.f32.mrf.mxu0 }
 0x113   :  { %vm682_vm4 = vcmp.gt.f32.partialorder %v526_v6, 0.0  ;;  %v746_v9 = vmul.f32 0.01, %v526_v6  ;;  %v812_v11 = vsel %vm684_vm1, %v534_v1, %v748_v5  ;;  %v547_v15 = vadd.f32 %v1952_v8, %v2302_v43 }
 0x114   :  { %v538_v10 = vpop.f32.mrf.mxu0  ;;  %v858_v20 = vpack.c.bf16 %v812_v11, %v811_v18 }
 0x115   :  { %v539_v12 = vadd.f32 %v2302_v43, %v538_v10  ;;  %v810_v14 = vsel %vm682_vm4, %v526_v6, %v746_v9  ;;  %v751_v25 = vmul.f32 0.01, %v547_v15  ;;  %vm687_vm7 = vcmp.gt.f32.partialorder %v547_v15, 0.0 }
 0x116   :  { %v1953_v16 = vpop.f32.mrf.mxu0  ;;  %v857_v17 = vpack.c.bf16 %v810_v14, %v809_v13 }
 0x117   :  { %v550_v19 = vadd.f32 %v1953_v16, %v2302_v43  ;;  %v749_v22 = vmul.f32 0.01, %v539_v12  ;;  %vm685_vm6 = vcmp.gt.f32.partialorder %v539_v12, 0.0  ;;  %v815_v36 = vsel %vm687_vm7, %v547_v15, %v751_v25 }
 0x118   :  { %v541_v21 = vpop.f32.mrf.mxu0  ;;  %2026 = vmatprep.mubr.bf16.mxu1 %v857_v17 }
 0x119   :  { %vm688_vm5 = vcmp.gt.f32.partialorder %v550_v19, 0.0  ;;  %v752_v23 = vmul.f32 0.01, %v550_v19  ;;  %v542_v24 = vadd.f32 %v2302_v43, %v541_v21  ;;  %2027 = vmatmul.mubr.bf16.gmra.mxu1 %v858_v20  ;;  %v813_v31 = vsel %vm685_vm6, %v539_v12, %v749_v22 }
 0x11a   :  { %v1956_v26 = vpop.f32.mrf.mxu0 }
 0x11b   :  { %vm686_vm8 = vcmp.gt.f32.partialorder %v542_v24, 0.0  ;;  %v750_v27 = vmul.f32 0.01, %v542_v24  ;;  %v816_v29 = vsel %vm688_vm5, %v550_v19, %v752_v23  ;;  %v563_v33 = vadd.f32 %v1956_v26, %v2302_v43 }
 0x11c   :  { %v554_v28 = vpop.f32.mrf.mxu0  ;;  %v860_v38 = vpack.c.bf16 %v816_v29, %v815_v36 }
 0x11d   :  { %v555_v30 = vadd.f32 %v2302_v43, %v554_v28  ;;  %v814_v32 = vsel %vm686_vm8, %v542_v24, %v750_v27  ;;  %v755_v44 = vmul.f32 0.01, %v563_v33  ;;  %vm691_vm11 = vcmp.gt.f32.partialorder %v563_v33, 0.0 }
 0x11e   :  { %v1957_v34 = vpop.f32.mrf.mxu0  ;;  %v859_v35 = vpack.c.bf16 %v814_v32, %v813_v31 }
 0x11f   :  { %v566_v37 = vadd.f32 %v1957_v34, %v2302_v43  ;;  %v753_v40 = vmul.f32 0.01, %v555_v30  ;;  %vm689_vm10 = vcmp.gt.f32.partialorder %v555_v30, 0.0  ;;  %v819_v55 = vsel %vm691_vm11, %v563_v33, %v755_v44 }
 0x120   :  { %v557_v39 = vpop.f32.mrf.mxu0  ;;  %2030 = vmatprep.mubr.bf16.mxu1 %v859_v35 }
 0x121   :  { %vm692_vm9 = vcmp.gt.f32.partialorder %v566_v37, 0.0  ;;  %v756_v41 = vmul.f32 0.01, %v566_v37  ;;  %v558_v42 = vadd.f32 %v2302_v43, %v557_v39  ;;  %2031 = vmatmul.mubr.bf16.gmra.mxu1 %v860_v38  ;;  %v817_v50 = vsel %vm689_vm10, %v555_v30, %v753_v40 }
 0x122   :  { %v1960_v45 = vpop.f32.mrf.mxu0 }
 0x123   :  { %vm690_vm12 = vcmp.gt.f32.partialorder %v558_v42, 0.0  ;;  %v754_v46 = vmul.f32 0.01, %v558_v42  ;;  %v820_v48 = vsel %vm692_vm9, %v566_v37, %v756_v41  ;;  %v579_v52 = vadd.f32 %v1960_v45, %v2302_v43 }
 0x124   :  { %v570_v47 = vpop.f32.mrf.mxu0  ;;  %v862_v57 = vpack.c.bf16 %v820_v48, %v819_v55 }
 0x125   :  { %v571_v49 = vadd.f32 %v2302_v43, %v570_v47  ;;  %v818_v51 = vsel %vm690_vm12, %v558_v42, %v754_v46  ;;  %v759_v62 = vmul.f32 0.01, %v579_v52  ;;  %vm695_vm15 = vcmp.gt.f32.partialorder %v579_v52, 0.0 }
 0x126   :  { %v1961_v53 = vpop.f32.mrf.mxu0  ;;  %v861_v54 = vpack.c.bf16 %v818_v51, %v817_v50 }
 0x127   :  { %v582_v56 = vadd.f32 %v1961_v53, %v2302_v43  ;;  %v757_v59 = vmul.f32 0.01, %v571_v49  ;;  %vm693_vm14 = vcmp.gt.f32.partialorder %v571_v49, 0.0  ;;  %v823_v9 = vsel %vm695_vm15, %v579_v52, %v759_v62 }
 0x128   :  { %v573_v58 = vpop.f32.mrf.mxu0  ;;  %2034 = vmatprep.mubr.bf16.mxu1 %v861_v54 }
 0x129   :  { %vm696_vm13 = vcmp.gt.f32.partialorder %v582_v56, 0.0  ;;  %v760_v60 = vmul.f32 0.01, %v582_v56  ;;  %v574_v61 = vadd.f32 %v2302_v43, %v573_v58  ;;  %2035 = vmatmul.mubr.bf16.gmra.mxu1 %v862_v57  ;;  %v821_v4 = vsel %vm693_vm14, %v571_v49, %v757_v59 }
 0x12a   :  { %v1964_v63 = vpop.f32.mrf.mxu0 }
 0x12b   :  { %vm694_vm0 = vcmp.gt.f32.partialorder %v574_v61, 0.0  ;;  %v758_v0 = vmul.f32 0.01, %v574_v61  ;;  %v824_v2 = vsel %vm696_vm13, %v582_v56, %v760_v60  ;;  %v595_v6 = vadd.f32 %v1964_v63, %v2302_v43 }
 0x12c   :  { %v586_v1 = vpop.f32.mrf.mxu0  ;;  %v864_v11 = vpack.c.bf16 %v824_v2, %v823_v9 }
 0x12d   :  { %v587_v3 = vadd.f32 %v2302_v43, %v586_v1  ;;  %v822_v5 = vsel %vm694_vm0, %v574_v61, %v758_v0  ;;  %v763_v16 = vmul.f32 0.01, %v595_v6  ;;  %vm699_vm3 = vcmp.gt.f32.partialorder %v595_v6, 0.0 }
 0x12e   :  { %v1965_v7 = vpop.f32.mrf.mxu0  ;;  %v863_v8 = vpack.c.bf16 %v822_v5, %v821_v4 }
 0x12f   :  { %v598_v10 = vadd.f32 %v1965_v7, %v2302_v43  ;;  %v761_v13 = vmul.f32 0.01, %v587_v3  ;;  %vm697_vm2 = vcmp.gt.f32.partialorder %v587_v3, 0.0  ;;  %v827_v27 = vsel %vm699_vm3, %v595_v6, %v763_v16 }
 0x130   :  { %v589_v12 = vpop.f32.mrf.mxu0  ;;  %2038 = vmatprep.mubr.bf16.mxu1 %v863_v8 }
 0x131   :  { %vm700_vm1 = vcmp.gt.f32.partialorder %v598_v10, 0.0  ;;  %v764_v14 = vmul.f32 0.01, %v598_v10  ;;  %v590_v15 = vadd.f32 %v2302_v43, %v589_v12  ;;  %2039 = vmatmul.mubr.bf16.gmra.mxu1 %v864_v11  ;;  %v825_v22 = vsel %vm697_vm2, %v587_v3, %v761_v13 }
 0x132   :  { %v1968_v17 = vpop.f32.mrf.mxu0 }
 0x133   :  { %vm698_vm4 = vcmp.gt.f32.partialorder %v590_v15, 0.0  ;;  %v762_v18 = vmul.f32 0.01, %v590_v15  ;;  %v828_v20 = vsel %vm700_vm1, %v598_v10, %v764_v14  ;;  %v611_v24 = vadd.f32 %v1968_v17, %v2302_v43 }
 0x134   :  { %v602_v19 = vpop.f32.mrf.mxu0  ;;  %v866_v29 = vpack.c.bf16 %v828_v20, %v827_v27  ;;  %v2378_v20 = vld [vmem:[%s2834_s3 + $0x2] ss:$0 sm:$0xff] }
 0x135   :  { %v603_v21 = vadd.f32 %v2302_v43, %v602_v19  ;;  %v826_v23 = vsel %vm698_vm4, %v590_v15, %v762_v18  ;;  %v767_v34 = vmul.f32 0.01, %v611_v24  ;;  %vm703_vm7 = vcmp.gt.f32.partialorder %v611_v24, 0.0  ;;  %v2371_v15 = vld [vmem:[%s2834_s3 + $0x1] ss:$0 sm:$0xff] }
 0x136   :  { %v1969_v25 = vpop.f32.mrf.mxu0  ;;  %v865_v26 = vpack.c.bf16 %v826_v23, %v825_v22 }
 0x137   :  { %v614_v28 = vadd.f32 %v1969_v25, %v2302_v43  ;;  %v765_v31 = vmul.f32 0.01, %v603_v21  ;;  %vm701_vm6 = vcmp.gt.f32.partialorder %v603_v21, 0.0  ;;  %v831_v46 = vsel %vm703_vm7, %v611_v24, %v767_v34 }
 0x138   :  { %v605_v30 = vpop.f32.mrf.mxu0  ;;  %2042 = vmatprep.mubr.bf16.mxu1 %v865_v26 }
 0x139   :  { %vm704_vm5 = vcmp.gt.f32.partialorder %v614_v28, 0.0  ;;  %v768_v32 = vmul.f32 0.01, %v614_v28  ;;  %v606_v33 = vadd.f32 %v2302_v43, %v605_v30  ;;  %2043 = vmatmul.mubr.bf16.gmra.mxu1 %v866_v29  ;;  %v829_v40 = vsel %vm701_vm6, %v603_v21, %v765_v31 }
 0x13a   :  { %v1972_v35 = vpop.f32.mrf.mxu0 }
 0x13b   :  { %vm702_vm8 = vcmp.gt.f32.partialorder %v606_v33, 0.0  ;;  %v766_v36 = vmul.f32 0.01, %v606_v33  ;;  %v832_v38 = vsel %vm704_vm5, %v614_v28, %v768_v32  ;;  %v627_v42 = vadd.f32 %v1972_v35, %v2302_v43 }
 0x13c   :  { %v618_v37 = vpop.f32.mrf.mxu0  ;;  %v868_v48 = vpack.c.bf16 %v832_v38, %v831_v46 }
 0x13d   :  { %v619_v39 = vadd.f32 %v2302_v43, %v618_v37  ;;  %v830_v41 = vsel %vm702_vm8, %v606_v33, %v766_v36  ;;  %v771_v53 = vmul.f32 0.01, %v627_v42  ;;  %vm707_vm11 = vcmp.gt.f32.partialorder %v627_v42, 0.0 }
 0x13e   :  { %v1973_v44 = vpop.f32.mrf.mxu0  ;;  %v867_v45 = vpack.c.bf16 %v830_v41, %v829_v40 }
 0x13f   :  { %v630_v47 = vadd.f32 %v1973_v44, %v2302_v43  ;;  %v769_v50 = vmul.f32 0.01, %v619_v39  ;;  %vm705_vm10 = vcmp.gt.f32.partialorder %v619_v39, 0.0  ;;  %v835_v0 = vsel %vm707_vm11, %v627_v42, %v771_v53 }
 0x140   :  { %v621_v49 = vpop.f32.mrf.mxu0  ;;  %2046 = vmatprep.mubr.bf16.mxu1 %v867_v45 }
 0x141   :  { %vm708_vm9 = vcmp.gt.f32.partialorder %v630_v47, 0.0  ;;  %v772_v51 = vmul.f32 0.01, %v630_v47  ;;  %v622_v52 = vadd.f32 %v2302_v43, %v621_v49  ;;  %2047 = vmatmul.mubr.bf16.gmra.mxu1 %v868_v48  ;;  %v833_v59 = vsel %vm705_vm10, %v619_v39, %v769_v50 }
 0x142   :  { %v1976_v54 = vpop.f32.mrf.mxu0 }
 0x143   :  { %vm706_vm12 = vcmp.gt.f32.partialorder %v622_v52, 0.0  ;;  %v770_v55 = vmul.f32 0.01, %v622_v52  ;;  %v836_v57 = vsel %vm708_vm9, %v630_v47, %v772_v51  ;;  %v643_v61 = vadd.f32 %v1976_v54, %v2302_v43 }
 0x144   :  { %v634_v56 = vpop.f32.mrf.mxu0  ;;  %v870_v2 = vpack.c.bf16 %v836_v57, %v835_v0 }
 0x145   :  { %v635_v58 = vadd.f32 %v2302_v43, %v634_v56  ;;  %v834_v60 = vsel %vm706_vm12, %v622_v52, %v770_v55  ;;  %v775_v7 = vmul.f32 0.01, %v643_v61  ;;  %vm711_vm15 = vcmp.gt.f32.partialorder %v643_v61, 0.0 }
 0x146   :  { %v1977_v62 = vpop.f32.mrf.mxu0  ;;  %v869_v63 = vpack.c.bf16 %v834_v60, %v833_v59 }
 0x147   :  { %v646_v1 = vadd.f32 %v1977_v62, %v2302_v43  ;;  %v773_v4 = vmul.f32 0.01, %v635_v58  ;;  %vm709_vm14 = vcmp.gt.f32.partialorder %v635_v58, 0.0  ;;  %v839_v13 = vsel %vm711_vm15, %v643_v61, %v775_v7 }
 0x148   :  { %v637_v3 = vpop.f32.mrf.mxu0  ;;  %2050 = vmatprep.mubr.bf16.mxu1 %v869_v63 }
 0x149   :  { %vm712_vm13 = vcmp.gt.f32.partialorder %v646_v1, 0.0  ;;  %v776_v5 = vmul.f32 0.01, %v646_v1  ;;  %v638_v6 = vadd.f32 %v2302_v43, %v637_v3  ;;  %2051 = vmatmul.mubr.bf16.gmra.mxu1 %v870_v2  ;;  %v837_v10 = vsel %vm709_vm14, %v635_v58, %v773_v4 }
 0x14b   :  { %vm710_vm0 = vcmp.gt.f32.partialorder %v638_v6, 0.0  ;;  %v774_v8 = vmul.f32 0.01, %v638_v6  ;;  %v840_v9 = vsel %vm712_vm13, %v646_v1, %v776_v5 }
 0x14c   :  { %v872_v14 = vpack.c.bf16 %v840_v9, %v839_v13 }
 0x14d   :  { %v838_v11 = vsel %vm710_vm0, %v638_v6, %v774_v8 }
 0x14e   :  { %v871_v12 = vpack.c.bf16 %v838_v11, %v837_v10 }
 0x150   :  { %2054 = vmatprep.mubr.bf16.mxu1 %v871_v12 }
 0x151   :  { %2055 = vmatmul.mubr.bf16.gmra.mxu1 %v872_v14 }
 0x199   :  { %v1996_v43 = vpop.f32.mrf.mxu0 }
 0x19a   :  { %v985_v16 = vadd.f32 %v1996_v43, %v2371_v15 }
 0x19b   :  { %v976_v17 = vpop.f32.mrf.mxu0 }
 0x19c   :  { %v1297_v18 = vmul.f32 0.01, %v985_v16  ;;  %v977_v19 = vadd.f32 %v2371_v15, %v976_v17  ;;  %vm1233_vm1 = vcmp.gt.f32.partialorder %v985_v16, 0.0 }
 0x19d   :  { %v1997_v21 = vpop.f32.mrf.mxu0 }
 0x19e   :  { %v1295_v22 = vmul.f32 0.01, %v977_v19  ;;  %v988_v23 = vadd.f32 %v1997_v21, %v2371_v15  ;;  %v1361_v24 = vsel %vm1233_vm1, %v985_v16, %v1297_v18  ;;  %vm1231_vm2 = vcmp.gt.f32.partialorder %v977_v19, 0.0 }
 0x19f   :  { %v979_v25 = vpop.f32.mrf.mxu0  ;;  %v1430_v26 = vmul.f32 %v2378_v20, %v1361_v24 }
 0x1a0   :  { %v1298_v27 = vmul.f32 0.01, %v988_v23  ;;  %v980_v28 = vadd.f32 %v2371_v15, %v979_v25  ;;  %v1359_v29 = vsel %vm1231_vm2, %v977_v19, %v1295_v22  ;;  %vm1234_vm3 = vcmp.gt.f32.partialorder %v988_v23, 0.0 }
 0x1a1   :  { %v2000_v30 = vpop.f32.mrf.mxu1  ;;  %1496 = vadd.xlane.f32.xlu1 %v1430_v26  ;;  %v1428_v31 = vmul.f32 %v2378_v20, %v1359_v29 }
 0x1a2   :  { %v1296_v32 = vmul.f32 0.01, %v980_v28  ;;  %v1001_v33 = vadd.f32 %v2000_v30, %v2371_v15  ;;  %v1362_v34 = vsel %vm1234_vm3, %v988_v23, %v1298_v27  ;;  %vm1232_vm4 = vcmp.gt.f32.partialorder %v980_v28, 0.0 }
 0x1a3   :  { %v992_v35 = vpop.f32.mrf.mxu1  ;;  %1492 = vadd.xlane.f32.xlu0 %v1428_v31  ;;  %v1431_v36 = vmul.f32 %v2378_v20, %v1362_v34 }
 0x1a4   :  { %v1301_v37 = vmul.f32 0.01, %v1001_v33  ;;  %v993_v38 = vadd.f32 %v2371_v15, %v992_v35  ;;  %v1360_v39 = vsel %vm1232_vm4, %v980_v28, %v1296_v32  ;;  %vm1237_vm5 = vcmp.gt.f32.partialorder %v1001_v33, 0.0 }
 0x1a5   :  { %v2001_v40 = vpop.f32.mrf.mxu1  ;;  %1498 = vadd.xlane.f32.xlu1 %v1431_v36  ;;  %v1429_v41 = vmul.f32 %v2378_v20, %v1360_v39 }
 0x1a6   :  { %v1299_v42 = vmul.f32 0.01, %v993_v38  ;;  %v1004_v44 = vadd.f32 %v2001_v40, %v2371_v15  ;;  %v1365_v45 = vsel %vm1237_vm5, %v1001_v33, %v1301_v37  ;;  %vm1235_vm6 = vcmp.gt.f32.partialorder %v993_v38, 0.0 }
 0x1a7   :  { %v995_v46 = vpop.f32.mrf.mxu1  ;;  %1494 = vadd.xlane.f32.xlu0 %v1429_v41  ;;  %v1434_v50 = vmul.f32 %v2378_v20, %v1365_v45 }
 0x1a8   :  { %v1302_v47 = vmul.f32 0.01, %v1004_v44  ;;  %v996_v48 = vadd.f32 %v2371_v15, %v995_v46  ;;  %vm1238_vm7 = vcmp.gt.f32.partialorder %v1004_v44, 0.0  ;;  %v1363_v51 = vsel %vm1235_vm6, %v993_v38, %v1299_v42 }
 0x1a9   :  { %v2004_v49 = vpop.f32.mrf.mxu1  ;;  %v1432_v61 = vmul.f32 %v2378_v20, %v1363_v51 }
 0x1aa   :  { %v1300_v52 = vmul.f32 0.01, %v996_v48  ;;  %v1017_v53 = vadd.f32 %v2004_v49, %v2371_v15  ;;  %v1366_v54 = vsel %vm1238_vm7, %v1004_v44, %v1302_v47  ;;  %vm1236_vm8 = vcmp.gt.f32.partialorder %v996_v48, 0.0 }
 0x1ab   :  { %v1008_v55 = vpop.f32.mrf.mxu1  ;;  %1504 = vadd.xlane.f32.xlu0 %v1434_v50  ;;  %v1435_v56 = vmul.f32 %v2378_v20, %v1366_v54 }
 0x1ac   :  { %v1305_v57 = vmul.f32 0.01, %v1017_v53  ;;  %v1009_v58 = vadd.f32 %v2371_v15, %v1008_v55  ;;  %v1364_v59 = vsel %vm1236_vm8, %v996_v48, %v1300_v52  ;;  %vm1241_vm9 = vcmp.gt.f32.partialorder %v1017_v53, 0.0 }
 0x1ad   :  { %v2005_v60 = vpop.f32.mrf.mxu1  ;;  %1506 = vadd.xlane.f32.xlu1 %v1435_v56  ;;  %v1433_v2 = vmul.f32 %v2378_v20, %v1364_v59 }
 0x1ae   :  { %v1303_v62 = vmul.f32 0.01, %v1009_v58  ;;  %v1020_v63 = vadd.f32 %v2005_v60, %v2371_v15  ;;  %v1369_v0 = vsel %vm1241_vm9, %v1017_v53, %v1305_v57  ;;  %vm1239_vm10 = vcmp.gt.f32.partialorder %v1009_v58, 0.0 }
 0x1af   :  { %v1011_v1 = vpop.f32.mrf.mxu1  ;;  %1500 = vadd.xlane.f32.xlu0 %v1432_v61  ;;  %v1438_v6 = vmul.f32 %v2378_v20, %v1369_v0 }
 0x1b0   :  { %v1306_v3 = vmul.f32 0.01, %v1020_v63  ;;  %v1012_v4 = vadd.f32 %v2371_v15, %v1011_v1  ;;  %vm1242_vm11 = vcmp.gt.f32.partialorder %v1020_v63, 0.0  ;;  %v1367_v7 = vsel %vm1239_vm10, %v1009_v58, %v1303_v62 }
 0x1b1   :  { %v2008_v5 = vpop.f32.mrf.mxu1  ;;  %1502 = vadd.xlane.f32.xlu1 %v1433_v2  ;;  %v1436_v17 = vmul.f32 %v2378_v20, %v1367_v7 }
 0x1b2   :  { %v1304_v8 = vmul.f32 0.01, %v1012_v4  ;;  %v1033_v9 = vadd.f32 %v2008_v5, %v2371_v15  ;;  %v1370_v10 = vsel %vm1242_vm11, %v1020_v63, %v1306_v3  ;;  %vm1240_vm12 = vcmp.gt.f32.partialorder %v1012_v4, 0.0 }
 0x1b3   :  { %v1024_v11 = vpop.f32.mrf.mxu1  ;;  %1512 = vadd.xlane.f32.xlu0 %v1438_v6  ;;  %v1439_v12 = vmul.f32 %v2378_v20, %v1370_v10 }
 0x1b4   :  { %v1309_v13 = vmul.f32 0.01, %v1033_v9  ;;  %v1025_v14 = vadd.f32 %v2371_v15, %v1024_v11  ;;  %v1368_v43 = vsel %vm1240_vm12, %v1012_v4, %v1304_v8  ;;  %vm1245_vm13 = vcmp.gt.f32.partialorder %v1033_v9, 0.0 }
 0x1b5   :  { %v2009_v16 = vpop.f32.mrf.mxu1  ;;  %1514 = vadd.xlane.f32.xlu1 %v1439_v12  ;;  %v1437_v23 = vmul.f32 %v2378_v20, %v1368_v43 }
 0x1b6   :  { %v1307_v18 = vmul.f32 0.01, %v1025_v14  ;;  %v1036_v19 = vadd.f32 %v2009_v16, %v2371_v15  ;;  %v1373_v21 = vsel %vm1245_vm13, %v1033_v9, %v1309_v13  ;;  %vm1243_vm14 = vcmp.gt.f32.partialorder %v1025_v14, 0.0 }
 0x1b7   :  { %v1027_v22 = vpop.f32.mrf.mxu1  ;;  %1508 = vadd.xlane.f32.xlu0 %v1436_v17  ;;  %v1442_v27 = vmul.f32 %v2378_v20, %v1373_v21 }
 0x1b8   :  { %v1310_v24 = vmul.f32 0.01, %v1036_v19  ;;  %v1028_v25 = vadd.f32 %v2371_v15, %v1027_v22  ;;  %vm1246_vm15 = vcmp.gt.f32.partialorder %v1036_v19, 0.0  ;;  %v1371_v28 = vsel %vm1243_vm14, %v1025_v14, %v1307_v18 }
 0x1b9   :  { %v2012_v26 = vpop.f32.mrf.mxu1  ;;  %1510 = vadd.xlane.f32.xlu1 %v1437_v23  ;;  %v1440_v38 = vmul.f32 %v2378_v20, %v1371_v28 }
 0x1ba   :  { %v1308_v29 = vmul.f32 0.01, %v1028_v25  ;;  %v1049_v30 = vadd.f32 %v2012_v26, %v2371_v15  ;;  %v1374_v31 = vsel %vm1246_vm15, %v1036_v19, %v1310_v24  ;;  %vm1244_vm0 = vcmp.gt.f32.partialorder %v1028_v25, 0.0 }
 0x1bb   :  { %v1040_v32 = vpop.f32.mrf.mxu1  ;;  %1520 = vadd.xlane.f32.xlu0 %v1442_v27  ;;  %v1443_v33 = vmul.f32 %v2378_v20, %v1374_v31 }
 0x1bc   :  { %v1313_v34 = vmul.f32 0.01, %v1049_v30  ;;  %v1041_v35 = vadd.f32 %v2371_v15, %v1040_v32  ;;  %v1372_v36 = vsel %vm1244_vm0, %v1028_v25, %v1308_v29  ;;  %vm1249_vm1 = vcmp.gt.f32.partialorder %v1049_v30, 0.0 }
 0x1bd   :  { %v2013_v37 = vpop.f32.mrf.mxu1  ;;  %1522 = vadd.xlane.f32.xlu1 %v1443_v33  ;;  %v1441_v44 = vmul.f32 %v2378_v20, %v1372_v36 }
 0x1be   :  { %v1311_v39 = vmul.f32 0.01, %v1041_v35  ;;  %v1052_v40 = vadd.f32 %v2013_v37, %v2371_v15  ;;  %v1377_v41 = vsel %vm1249_vm1, %v1049_v30, %v1313_v34  ;;  %vm1247_vm2 = vcmp.gt.f32.partialorder %v1041_v35, 0.0 }
 0x1bf   :  { %v1043_v42 = vpop.f32.mrf.mxu1  ;;  %1516 = vadd.xlane.f32.xlu0 %v1440_v38  ;;  %v1446_v48 = vmul.f32 %v2378_v20, %v1377_v41 }
 0x1c0   :  { %v1314_v45 = vmul.f32 0.01, %v1052_v40  ;;  %v1044_v46 = vadd.f32 %v2371_v15, %v1043_v42  ;;  %vm1250_vm3 = vcmp.gt.f32.partialorder %v1052_v40, 0.0  ;;  %v1375_v49 = vsel %vm1247_vm2, %v1041_v35, %v1311_v39 }
 0x1c1   :  { %v2016_v47 = vpop.f32.mrf.mxu1  ;;  %1518 = vadd.xlane.f32.xlu1 %v1441_v44  ;;  %v1444_v59 = vmul.f32 %v2378_v20, %v1375_v49 }
 0x1c2   :  { %v1312_v50 = vmul.f32 0.01, %v1044_v46  ;;  %v1065_v51 = vadd.f32 %v2016_v47, %v2371_v15  ;;  %v1378_v52 = vsel %vm1250_vm3, %v1052_v40, %v1314_v45  ;;  %vm1248_vm4 = vcmp.gt.f32.partialorder %v1044_v46, 0.0 }
 0x1c3   :  { %v1056_v53 = vpop.f32.mrf.mxu1  ;;  %1528 = vadd.xlane.f32.xlu0 %v1446_v48  ;;  %v1447_v54 = vmul.f32 %v2378_v20, %v1378_v52 }
 0x1c4   :  { %v1317_v55 = vmul.f32 0.01, %v1065_v51  ;;  %v1057_v56 = vadd.f32 %v2371_v15, %v1056_v53  ;;  %v1376_v57 = vsel %vm1248_vm4, %v1044_v46, %v1312_v50  ;;  %vm1253_vm5 = vcmp.gt.f32.partialorder %v1065_v51, 0.0 }
 0x1c5   :  { %v2017_v58 = vpop.f32.mrf.mxu1  ;;  %1530 = vadd.xlane.f32.xlu1 %v1447_v54  ;;  %v1445_v0 = vmul.f32 %v2378_v20, %v1376_v57 }
 0x1c6   :  { %v1315_v60 = vmul.f32 0.01, %v1057_v56  ;;  %v1068_v61 = vadd.f32 %v2017_v58, %v2371_v15  ;;  %v1381_v62 = vsel %vm1253_vm5, %v1065_v51, %v1317_v55  ;;  %vm1251_vm6 = vcmp.gt.f32.partialorder %v1057_v56, 0.0 }
 0x1c7   :  { %v1059_v63 = vpop.f32.mrf.mxu1  ;;  %1524 = vadd.xlane.f32.xlu0 %v1444_v59  ;;  %v1450_v4 = vmul.f32 %v2378_v20, %v1381_v62 }
 0x1c8   :  { %v1318_v1 = vmul.f32 0.01, %v1068_v61  ;;  %v1060_v2 = vadd.f32 %v2371_v15, %v1059_v63  ;;  %vm1254_vm7 = vcmp.gt.f32.partialorder %v1068_v61, 0.0  ;;  %v1379_v5 = vsel %vm1251_vm6, %v1057_v56, %v1315_v60 }
 0x1c9   :  { %v2020_v3 = vpop.f32.mrf.mxu1  ;;  %1526 = vadd.xlane.f32.xlu1 %v1445_v0  ;;  %v1448_v43 = vmul.f32 %v2378_v20, %v1379_v5 }
 0x1ca   :  { %v1316_v6 = vmul.f32 0.01, %v1060_v2  ;;  %v1081_v7 = vadd.f32 %v2020_v3, %v2371_v15  ;;  %v1382_v8 = vsel %vm1254_vm7, %v1068_v61, %v1318_v1  ;;  %vm1252_vm8 = vcmp.gt.f32.partialorder %v1060_v2, 0.0 }
 0x1cb   :  { %v1072_v9 = vpop.f32.mrf.mxu1  ;;  %1536 = vadd.xlane.f32.xlu0 %v1450_v4  ;;  %v1451_v10 = vmul.f32 %v2378_v20, %v1382_v8 }
 0x1cc   :  { %v1321_v11 = vmul.f32 0.01, %v1081_v7  ;;  %v1073_v12 = vadd.f32 %v2371_v15, %v1072_v9  ;;  %v1380_v13 = vsel %vm1252_vm8, %v1060_v2, %v1316_v6  ;;  %vm1257_vm9 = vcmp.gt.f32.partialorder %v1081_v7, 0.0 }
 0x1cd   :  { %v2021_v14 = vpop.f32.mrf.mxu1  ;;  %1538 = vadd.xlane.f32.xlu1 %v1451_v10  ;;  %v1449_v21 = vmul.f32 %v2378_v20, %v1380_v13 }
 0x1ce   :  { %v1319_v16 = vmul.f32 0.01, %v1073_v12  ;;  %v1084_v17 = vadd.f32 %v2021_v14, %v2371_v15  ;;  %v1385_v18 = vsel %vm1257_vm9, %v1081_v7, %v1321_v11  ;;  %vm1255_vm10 = vcmp.gt.f32.partialorder %v1073_v12, 0.0 }
 0x1cf   :  { %v1075_v19 = vpop.f32.mrf.mxu1  ;;  %1532 = vadd.xlane.f32.xlu0 %v1448_v43  ;;  %v1454_v25 = vmul.f32 %v2378_v20, %v1385_v18 }
 0x1d0   :  { %v1322_v22 = vmul.f32 0.01, %v1084_v17  ;;  %v1076_v23 = vadd.f32 %v2371_v15, %v1075_v19  ;;  %vm1258_vm11 = vcmp.gt.f32.partialorder %v1084_v17, 0.0  ;;  %v1383_v26 = vsel %vm1255_vm10, %v1073_v12, %v1319_v16 }
 0x1d1   :  { %v2024_v24 = vpop.f32.mrf.mxu1  ;;  %1534 = vadd.xlane.f32.xlu1 %v1449_v21  ;;  %v1452_v36 = vmul.f32 %v2378_v20, %v1383_v26 }
 0x1d2   :  { %v1320_v27 = vmul.f32 0.01, %v1076_v23  ;;  %v1097_v28 = vadd.f32 %v2024_v24, %v2371_v15  ;;  %v1386_v29 = vsel %vm1258_vm11, %v1084_v17, %v1322_v22  ;;  %vm1256_vm12 = vcmp.gt.f32.partialorder %v1076_v23, 0.0 }
 0x1d3   :  { %v1088_v30 = vpop.f32.mrf.mxu1  ;;  %1544 = vadd.xlane.f32.xlu0 %v1454_v25  ;;  %v1455_v31 = vmul.f32 %v2378_v20, %v1386_v29 }
 0x1d4   :  { %v1325_v32 = vmul.f32 0.01, %v1097_v28  ;;  %v1089_v33 = vadd.f32 %v2371_v15, %v1088_v30  ;;  %v1384_v34 = vsel %vm1256_vm12, %v1076_v23, %v1320_v27  ;;  %vm1261_vm13 = vcmp.gt.f32.partialorder %v1097_v28, 0.0 }
 0x1d5   :  { %v2025_v35 = vpop.f32.mrf.mxu1  ;;  %1546 = vadd.xlane.f32.xlu1 %v1455_v31  ;;  %v1453_v41 = vmul.f32 %v2378_v20, %v1384_v34 }
 0x1d6   :  { %v1323_v37 = vmul.f32 0.01, %v1089_v33  ;;  %v1100_v38 = vadd.f32 %v2025_v35, %v2371_v15  ;;  %v1389_v39 = vsel %vm1261_vm13, %v1097_v28, %v1325_v32  ;;  %vm1259_vm14 = vcmp.gt.f32.partialorder %v1089_v33, 0.0 }
 0x1d7   :  { %v1091_v40 = vpop.f32.mrf.mxu1  ;;  %1540 = vadd.xlane.f32.xlu0 %v1452_v36  ;;  %v1458_v46 = vmul.f32 %v2378_v20, %v1389_v39 }
 0x1d8   :  { %v1326_v42 = vmul.f32 0.01, %v1100_v38  ;;  %v1092_v44 = vadd.f32 %v2371_v15, %v1091_v40  ;;  %vm1262_vm15 = vcmp.gt.f32.partialorder %v1100_v38, 0.0  ;;  %v1387_v47 = vsel %vm1259_vm14, %v1089_v33, %v1323_v37 }
 0x1d9   :  { %v2028_v45 = vpop.f32.mrf.mxu1  ;;  %1542 = vadd.xlane.f32.xlu1 %v1453_v41  ;;  %v1456_v57 = vmul.f32 %v2378_v20, %v1387_v47 }
 0x1da   :  { %v1324_v48 = vmul.f32 0.01, %v1092_v44  ;;  %v1113_v49 = vadd.f32 %v2028_v45, %v2371_v15  ;;  %v1390_v50 = vsel %vm1262_vm15, %v1100_v38, %v1326_v42  ;;  %vm1260_vm0 = vcmp.gt.f32.partialorder %v1092_v44, 0.0 }
 0x1db   :  { %v1104_v51 = vpop.f32.mrf.mxu1  ;;  %1552 = vadd.xlane.f32.xlu0 %v1458_v46  ;;  %v1459_v52 = vmul.f32 %v2378_v20, %v1390_v50 }
 0x1dc   :  { %v1329_v53 = vmul.f32 0.01, %v1113_v49  ;;  %v1105_v54 = vadd.f32 %v2371_v15, %v1104_v51  ;;  %v1388_v55 = vsel %vm1260_vm0, %v1092_v44, %v1324_v48  ;;  %vm1265_vm1 = vcmp.gt.f32.partialorder %v1113_v49, 0.0 }
 0x1dd   :  { %v2029_v56 = vpop.f32.mrf.mxu1  ;;  %1554 = vadd.xlane.f32.xlu1 %v1459_v52  ;;  %v1457_v62 = vmul.f32 %v2378_v20, %v1388_v55 }
 0x1de   :  { %v1327_v58 = vmul.f32 0.01, %v1105_v54  ;;  %v1116_v59 = vadd.f32 %v2029_v56, %v2371_v15  ;;  %v1393_v60 = vsel %vm1265_vm1, %v1113_v49, %v1329_v53  ;;  %vm1263_vm2 = vcmp.gt.f32.partialorder %v1105_v54, 0.0 }
 0x1df   :  { %v1107_v61 = vpop.f32.mrf.mxu1  ;;  %1548 = vadd.xlane.f32.xlu0 %v1456_v57  ;;  %v1462_v2 = vmul.f32 %v2378_v20, %v1393_v60 }
 0x1e0   :  { %v1330_v63 = vmul.f32 0.01, %v1116_v59  ;;  %v1108_v0 = vadd.f32 %v2371_v15, %v1107_v61  ;;  %vm1266_vm3 = vcmp.gt.f32.partialorder %v1116_v59, 0.0  ;;  %v1391_v3 = vsel %vm1263_vm2, %v1105_v54, %v1327_v58 }
 0x1e1   :  { %v2032_v1 = vpop.f32.mrf.mxu1  ;;  %1550 = vadd.xlane.f32.xlu1 %v1457_v62  ;;  %v1460_v13 = vmul.f32 %v2378_v20, %v1391_v3 }
 0x1e2   :  { %v1328_v4 = vmul.f32 0.01, %v1108_v0  ;;  %v1129_v5 = vadd.f32 %v2032_v1, %v2371_v15  ;;  %v1394_v6 = vsel %vm1266_vm3, %v1116_v59, %v1330_v63  ;;  %vm1264_vm4 = vcmp.gt.f32.partialorder %v1108_v0, 0.0 }
 0x1e3   :  { %v1120_v7 = vpop.f32.mrf.mxu1  ;;  %1560 = vadd.xlane.f32.xlu0 %v1462_v2  ;;  %v1463_v8 = vmul.f32 %v2378_v20, %v1394_v6 }
 0x1e4   :  { %v1333_v9 = vmul.f32 0.01, %v1129_v5  ;;  %v1121_v10 = vadd.f32 %v2371_v15, %v1120_v7  ;;  %v1392_v11 = vsel %vm1264_vm4, %v1108_v0, %v1328_v4  ;;  %vm1269_vm5 = vcmp.gt.f32.partialorder %v1129_v5, 0.0 }
 0x1e5   :  { %v2033_v12 = vpop.f32.mrf.mxu1  ;;  %1562 = vadd.xlane.f32.xlu1 %v1463_v8  ;;  %v1461_v18 = vmul.f32 %v2378_v20, %v1392_v11 }
 0x1e6   :  { %v1331_v14 = vmul.f32 0.01, %v1121_v10  ;;  %v1132_v43 = vadd.f32 %v2033_v12, %v2371_v15  ;;  %v1397_v16 = vsel %vm1269_vm5, %v1129_v5, %v1333_v9  ;;  %vm1267_vm6 = vcmp.gt.f32.partialorder %v1121_v10, 0.0 }
 0x1e7   :  { %v1123_v17 = vpop.f32.mrf.mxu1  ;;  %1556 = vadd.xlane.f32.xlu0 %v1460_v13  ;;  %v1466_v23 = vmul.f32 %v2378_v20, %v1397_v16 }
 0x1e8   :  { %v1334_v19 = vmul.f32 0.01, %v1132_v43  ;;  %v1124_v21 = vadd.f32 %v2371_v15, %v1123_v17  ;;  %vm1270_vm7 = vcmp.gt.f32.partialorder %v1132_v43, 0.0  ;;  %v1395_v24 = vsel %vm1267_vm6, %v1121_v10, %v1331_v14 }
 0x1e9   :  { %v2036_v22 = vpop.f32.mrf.mxu1  ;;  %1558 = vadd.xlane.f32.xlu1 %v1461_v18  ;;  %v1464_v34 = vmul.f32 %v2378_v20, %v1395_v24 }
 0x1ea   :  { %v1332_v25 = vmul.f32 0.01, %v1124_v21  ;;  %v1145_v26 = vadd.f32 %v2036_v22, %v2371_v15  ;;  %v1398_v27 = vsel %vm1270_vm7, %v1132_v43, %v1334_v19  ;;  %vm1268_vm8 = vcmp.gt.f32.partialorder %v1124_v21, 0.0 }
 0x1eb   :  { %v1136_v28 = vpop.f32.mrf.mxu1  ;;  %1568 = vadd.xlane.f32.xlu0 %v1466_v23  ;;  %v1467_v29 = vmul.f32 %v2378_v20, %v1398_v27 }
 0x1ec   :  { %v1337_v30 = vmul.f32 0.01, %v1145_v26  ;;  %v1137_v31 = vadd.f32 %v2371_v15, %v1136_v28  ;;  %v1396_v32 = vsel %vm1268_vm8, %v1124_v21, %v1332_v25  ;;  %vm1273_vm9 = vcmp.gt.f32.partialorder %v1145_v26, 0.0 }
 0x1ed   :  { %v2037_v33 = vpop.f32.mrf.mxu1  ;;  %1570 = vadd.xlane.f32.xlu1 %v1467_v29  ;;  %v1465_v39 = vmul.f32 %v2378_v20, %v1396_v32 }
 0x1ee   :  { %v1335_v35 = vmul.f32 0.01, %v1137_v31  ;;  %v1148_v36 = vadd.f32 %v2037_v33, %v2371_v15  ;;  %v1401_v37 = vsel %vm1273_vm9, %v1145_v26, %v1337_v30  ;;  %vm1271_vm10 = vcmp.gt.f32.partialorder %v1137_v31, 0.0 }
 0x1ef   :  { %v1139_v38 = vpop.f32.mrf.mxu1  ;;  %1564 = vadd.xlane.f32.xlu0 %v1464_v34  ;;  %v1470_v44 = vmul.f32 %v2378_v20, %v1401_v37 }
 0x1f0   :  { %v1338_v40 = vmul.f32 0.01, %v1148_v36  ;;  %v1140_v41 = vadd.f32 %v2371_v15, %v1139_v38  ;;  %vm1274_vm11 = vcmp.gt.f32.partialorder %v1148_v36, 0.0  ;;  %v1399_v45 = vsel %vm1271_vm10, %v1137_v31, %v1335_v35 }
 0x1f1   :  { %v2040_v42 = vpop.f32.mrf.mxu1  ;;  %1566 = vadd.xlane.f32.xlu1 %v1465_v39  ;;  %v1468_v55 = vmul.f32 %v2378_v20, %v1399_v45 }
 0x1f2   :  { %v1336_v46 = vmul.f32 0.01, %v1140_v41  ;;  %v1161_v47 = vadd.f32 %v2040_v42, %v2371_v15  ;;  %v1402_v48 = vsel %vm1274_vm11, %v1148_v36, %v1338_v40  ;;  %vm1272_vm12 = vcmp.gt.f32.partialorder %v1140_v41, 0.0 }
 0x1f3   :  { %v1152_v49 = vpop.f32.mrf.mxu1  ;;  %1576 = vadd.xlane.f32.xlu0 %v1470_v44  ;;  %v1471_v50 = vmul.f32 %v2378_v20, %v1402_v48 }
 0x1f4   :  { %v1341_v51 = vmul.f32 0.01, %v1161_v47  ;;  %v1153_v52 = vadd.f32 %v2371_v15, %v1152_v49  ;;  %v1400_v53 = vsel %vm1272_vm12, %v1140_v41, %v1336_v46  ;;  %vm1277_vm13 = vcmp.gt.f32.partialorder %v1161_v47, 0.0 }
 0x1f5   :  { %v2041_v54 = vpop.f32.mrf.mxu1  ;;  %1578 = vadd.xlane.f32.xlu1 %v1471_v50  ;;  %v1469_v60 = vmul.f32 %v2378_v20, %v1400_v53 }
 0x1f6   :  { %v1339_v56 = vmul.f32 0.01, %v1153_v52  ;;  %v1164_v57 = vadd.f32 %v2041_v54, %v2371_v15  ;;  %v1405_v58 = vsel %vm1277_vm13, %v1161_v47, %v1341_v51  ;;  %vm1275_vm14 = vcmp.gt.f32.partialorder %v1153_v52, 0.0 }
 0x1f7   :  { %v1155_v59 = vpop.f32.mrf.mxu1  ;;  %1572 = vadd.xlane.f32.xlu0 %v1468_v55  ;;  %v1474_v0 = vmul.f32 %v2378_v20, %v1405_v58 }
 0x1f8   :  { %v1342_v61 = vmul.f32 0.01, %v1164_v57  ;;  %v1156_v62 = vadd.f32 %v2371_v15, %v1155_v59  ;;  %vm1278_vm15 = vcmp.gt.f32.partialorder %v1164_v57, 0.0  ;;  %v1403_v1 = vsel %vm1275_vm14, %v1153_v52, %v1339_v56 }
 0x1f9   :  { %v2044_v63 = vpop.f32.mrf.mxu1  ;;  %1574 = vadd.xlane.f32.xlu1 %v1469_v60  ;;  %v1472_v11 = vmul.f32 %v2378_v20, %v1403_v1 }
 0x1fa   :  { %v1340_v2 = vmul.f32 0.01, %v1156_v62  ;;  %v1177_v3 = vadd.f32 %v2044_v63, %v2371_v15  ;;  %v1406_v4 = vsel %vm1278_vm15, %v1164_v57, %v1342_v61  ;;  %vm1276_vm0 = vcmp.gt.f32.partialorder %v1156_v62, 0.0 }
 0x1fb   :  { %v1168_v5 = vpop.f32.mrf.mxu1  ;;  %1584 = vadd.xlane.f32.xlu0 %v1474_v0  ;;  %v1475_v6 = vmul.f32 %v2378_v20, %v1406_v4 }
 0x1fc   :  { %v1345_v7 = vmul.f32 0.01, %v1177_v3  ;;  %v1169_v8 = vadd.f32 %v2371_v15, %v1168_v5  ;;  %v1404_v9 = vsel %vm1276_vm0, %v1156_v62, %v1340_v2  ;;  %vm1281_vm1 = vcmp.gt.f32.partialorder %v1177_v3, 0.0 }
 0x1fd   :  { %v2045_v10 = vpop.f32.mrf.mxu1  ;;  %1586 = vadd.xlane.f32.xlu1 %v1475_v6  ;;  %v1473_v16 = vmul.f32 %v2378_v20, %v1404_v9 }
 0x1fe   :  { %v1343_v12 = vmul.f32 0.01, %v1169_v8  ;;  %v1180_v13 = vadd.f32 %v2045_v10, %v2371_v15  ;;  %v1409_v14 = vsel %vm1281_vm1, %v1177_v3, %v1345_v7  ;;  %vm1279_vm2 = vcmp.gt.f32.partialorder %v1169_v8, 0.0 }
 0x1ff   :  { %v1171_v43 = vpop.f32.mrf.mxu1  ;;  %1580 = vadd.xlane.f32.xlu0 %v1472_v11  ;;  %v1478_v21 = vmul.f32 %v2378_v20, %v1409_v14  ;;  %vm1689_vm1 = vcmask 7168  }
 0x200   :  { %v1346_v17 = vmul.f32 0.01, %v1180_v13  ;;  %v1172_v18 = vadd.f32 %v2371_v15, %v1171_v43  ;;  %vm1282_vm3 = vcmp.gt.f32.partialorder %v1180_v13, 0.0  ;;  %v1407_v22 = vsel %vm1279_vm2, %v1169_v8, %v1343_v12 }
 0x201   :  { %v2048_v19 = vpop.f32.mrf.mxu1  ;;  %1582 = vadd.xlane.f32.xlu1 %v1473_v16  ;;  %v1476_v32 = vmul.f32 %v2378_v20, %v1407_v22 }
 0x202   :  { %v1344_v23 = vmul.f32 0.01, %v1172_v18  ;;  %v1193_v24 = vadd.f32 %v2048_v19, %v2371_v15  ;;  %v1410_v25 = vsel %vm1282_vm3, %v1180_v13, %v1346_v17  ;;  %vm1280_vm4 = vcmp.gt.f32.partialorder %v1172_v18, 0.0 }
 0x203   :  { %v1184_v26 = vpop.f32.mrf.mxu1  ;;  %1592 = vadd.xlane.f32.xlu0 %v1478_v21  ;;  %v1479_v27 = vmul.f32 %v2378_v20, %v1410_v25  ;;  %v2509_v25 = vld [vmem:[%s2834_s3 + $0x3] ss:$0 sm:$0xff] }
 0x204   :  { %v1349_v28 = vmul.f32 0.01, %v1193_v24  ;;  %v1185_v29 = vadd.f32 %v2371_v15, %v1184_v26  ;;  %v1408_v30 = vsel %vm1280_vm4, %v1172_v18, %v1344_v23  ;;  %vm1285_vm5 = vcmp.gt.f32.partialorder %v1193_v24, 0.0 }
 0x205   :  { %v2049_v31 = vpop.f32.mrf.mxu1  ;;  %1594 = vadd.xlane.f32.xlu1 %v1479_v27  ;;  %v1477_v37 = vmul.f32 %v2378_v20, %v1408_v30 }
 0x206   :  { %v1347_v33 = vmul.f32 0.01, %v1185_v29  ;;  %v1196_v34 = vadd.f32 %v2049_v31, %v2371_v15  ;;  %v1413_v35 = vsel %vm1285_vm5, %v1193_v24, %v1349_v28  ;;  %vm1283_vm6 = vcmp.gt.f32.partialorder %v1185_v29, 0.0 }
 0x207   :  { %v1187_v36 = vpop.f32.mrf.mxu1  ;;  %1588 = vadd.xlane.f32.xlu0 %v1476_v32  ;;  %v1482_v41 = vmul.f32 %v2378_v20, %v1413_v35 }
 0x208   :  { %v1350_v38 = vmul.f32 0.01, %v1196_v34  ;;  %v1188_v39 = vadd.f32 %v2371_v15, %v1187_v36  ;;  %vm1286_vm7 = vcmp.gt.f32.partialorder %v1196_v34, 0.0  ;;  %v1411_v42 = vsel %vm1283_vm6, %v1185_v29, %v1347_v33 }
 0x209   :  { %v2052_v40 = vpop.f32.mrf.mxu1  ;;  %1590 = vadd.xlane.f32.xlu1 %v1477_v37  ;;  %v1480_v53 = vmul.f32 %v2378_v20, %v1411_v42 }
 0x20a   :  { %v1348_v44 = vmul.f32 0.01, %v1188_v39  ;;  %v1209_v45 = vadd.f32 %v2052_v40, %v2371_v15  ;;  %v1414_v46 = vsel %vm1286_vm7, %v1196_v34, %v1350_v38  ;;  %vm1284_vm8 = vcmp.gt.f32.partialorder %v1188_v39, 0.0 }
 0x20b   :  { %v1200_v47 = vpop.f32.mrf.mxu1  ;;  %1600 = vadd.xlane.f32.xlu0 %v1482_v41  ;;  %v1483_v48 = vmul.f32 %v2378_v20, %v1414_v46 }
 0x20c   :  { %v1353_v49 = vmul.f32 0.01, %v1209_v45  ;;  %v1201_v50 = vadd.f32 %v2371_v15, %v1200_v47  ;;  %v1412_v51 = vsel %vm1284_vm8, %v1188_v39, %v1348_v44  ;;  %vm1289_vm9 = vcmp.gt.f32.partialorder %v1209_v45, 0.0 }
 0x20d   :  { %v2053_v52 = vpop.f32.mrf.mxu1  ;;  %1602 = vadd.xlane.f32.xlu1 %v1483_v48  ;;  %v1481_v58 = vmul.f32 %v2378_v20, %v1412_v51 }
 0x20e   :  { %v1351_v54 = vmul.f32 0.01, %v1201_v50  ;;  %v1212_v55 = vadd.f32 %v2053_v52, %v2371_v15  ;;  %v1417_v56 = vsel %vm1289_vm9, %v1209_v45, %v1353_v49  ;;  %vm1287_vm10 = vcmp.gt.f32.partialorder %v1201_v50, 0.0 }
 0x20f   :  { %v1203_v57 = vpop.f32.mrf.mxu1  ;;  %1596 = vadd.xlane.f32.xlu0 %v1480_v53  ;;  %v1486_v62 = vmul.f32 %v2378_v20, %v1417_v56 }
 0x210   :  { %v1354_v59 = vmul.f32 0.01, %v1212_v55  ;;  %v1204_v60 = vadd.f32 %v2371_v15, %v1203_v57  ;;  %vm1290_vm11 = vcmp.gt.f32.partialorder %v1212_v55, 0.0  ;;  %v1415_v63 = vsel %vm1287_vm10, %v1201_v50, %v1351_v54 }
 0x211   :  { %v2056_v61 = vpop.f32.mrf.mxu1  ;;  %1598 = vadd.xlane.f32.xlu1 %v1481_v58  ;;  %v1484_v8 = vmul.f32 %v2378_v20, %v1415_v63 }
 0x212   :  { %v1352_v0 = vmul.f32 0.01, %v1204_v60  ;;  %v1225_v1 = vadd.f32 %v2056_v61, %v2371_v15  ;;  %v1418_v2 = vsel %vm1290_vm11, %v1212_v55, %v1354_v59  ;;  %vm1288_vm12 = vcmp.gt.f32.partialorder %v1204_v60, 0.0 }
 0x213   :  { %v1216_v3 = vpop.f32.mrf.mxu1  ;;  %1608 = vadd.xlane.f32.xlu0 %v1486_v62  ;;  %v1487_v4 = vmul.f32 %v2378_v20, %v1418_v2 }
 0x214   :  { %v1217_v5 = vadd.f32 %v2371_v15, %v1216_v3  ;;  %v1416_v6 = vsel %vm1288_vm12, %v1204_v60, %v1352_v0  ;;  %v1357_v9 = vmul.f32 0.01, %v1225_v1  ;;  %vm1293_vm14 = vcmp.gt.f32.partialorder %v1225_v1, 0.0 }
 0x215   :  { %v2057_v7 = vpop.f32.mrf.mxu1  ;;  %1610 = vadd.xlane.f32.xlu1 %v1487_v4  ;;  %v1485_v13 = vmul.f32 %v2378_v20, %v1416_v6 }
 0x216   :  { %v1355_v10 = vmul.f32 0.01, %v1217_v5  ;;  %v1228_v11 = vadd.f32 %v2057_v7, %v2371_v15  ;;  %vm1291_vm13 = vcmp.gt.f32.partialorder %v1217_v5, 0.0  ;;  %v1421_v19 = vsel %vm1293_vm14, %v1225_v1, %v1357_v9 }
 0x217   :  { %v1219_v12 = vpop.f32.mrf.mxu1  ;;  %1604 = vadd.xlane.f32.xlu0 %v1484_v8  ;;  %v1490_v23 = vmul.f32 %v2378_v20, %v1421_v19 }
 0x218   :  { %v1220_v14 = vadd.f32 %v2371_v15, %v1219_v12  ;;  %v1419_v43 = vsel %vm1291_vm13, %v1217_v5, %v1355_v10  ;;  %v1358_v17 = vmul.f32 0.01, %v1228_v11  ;;  %vm1294_vm0 = vcmp.gt.f32.partialorder %v1228_v11, 0.0 }
 0x219   :  { %1606 = vadd.xlane.f32.xlu1 %v1485_v13  ;;  %v1488_v16 = vmul.f32 %v2378_v20, %v1419_v43 }
 0x21a   :  { %v1356_v18 = vmul.f32 0.01, %v1220_v14  ;;  %vm1292_vm15 = vcmp.gt.f32.partialorder %v1220_v14, 0.0  ;;  %v1422_v24 = vsel %vm1294_vm0, %v1228_v11, %v1358_v17 }
 0x21b   :  { %1612 = vadd.xlane.f32.xlu0 %v1488_v16  ;;  %v1491_v15 = vmul.f32 %v2378_v20, %v1422_v24 }
 0x21c   :  { %v1420_v21 = vsel %vm1292_vm15, %v1220_v14, %v1356_v18 }
 0x21d   :  { %v1489_v22 = vmul.f32 %v2378_v20, %v1420_v21 }
 0x21f   :  { %1614 = vadd.xlane.f32.xlu1 %v1489_v22  ;;  %1616 = vadd.xlane.f32.xlu0 %v1490_v23 }
 0x223   :  { %1618 = vadd.xlane.f32.xlu1 %v1491_v15 }
 0x22a   :  { %v1497_v26 = vpop.xlane.xlu1 %1496 }
 0x22b   :  { %v1627_v27 = vadd.f32 %v2509_v25, %v1497_v26 }
 0x22c   :  { %v1493_v28 = vpop.xlane.xlu0 %1492 }
 0x22d   :  { %1692 = vst.msk [vmem:[%s2835_s4 + $0x10] sm:$0xff] %vm1689_vm1, %v1627_v27  ;;  %v1625_v29 = vadd.f32 %v2509_v25, %v1493_v28 }
 0x22e   :  { %v1499_v30 = vpop.xlane.xlu1 %1498 }
 0x22f   :  { %1690 = vst.msk [vmem:[%s2835_s4] sm:$0xff] %vm1689_vm1, %v1625_v29  ;;  %v1628_v20 = vadd.f32 %v2509_v25, %v1499_v30 }
 0x230   :  { %v1495_v31 = vpop.xlane.xlu0 %1494 }
 0x231   :  { %1693 = vst.msk [vmem:[%s2835_s4 + $0x18] sm:$0xff] %vm1689_vm1, %v1628_v20  ;;  %v1626_v32 = vadd.f32 %v2509_v25, %v1495_v31 }
 0x233   :  { %1691 = vst.msk [vmem:[%s2835_s4 + $0x8] sm:$0xff] %vm1689_vm1, %v1626_v32 }
 0x234   :  { %v1505_v33 = vpop.xlane.xlu0 %1504 }
 0x235   :  { %v1631_v34 = vadd.f32 %v2509_v25, %v1505_v33 }
 0x236   :  { %v1507_v35 = vpop.xlane.xlu1 %1506 }
 0x237   :  { %1696 = vst.msk [vmem:[%s2835_s4 + $0x30] sm:$0xff] %vm1689_vm1, %v1631_v34  ;;  %v1632_v36 = vadd.f32 %v2509_v25, %v1507_v35 }
 0x238   :  { %v1501_v37 = vpop.xlane.xlu0 %1500 }
 0x239   :  { %1697 = vst.msk [vmem:[%s2835_s4 + $0x38] sm:$0xff] %vm1689_vm1, %v1632_v36  ;;  %v1629_v38 = vadd.f32 %v2509_v25, %v1501_v37 }
 0x23a   :  { %v1503_v39 = vpop.xlane.xlu1 %1502 }
 0x23b   :  { %1694 = vst.msk [vmem:[%s2835_s4 + $0x20] sm:$0xff] %vm1689_vm1, %v1629_v38  ;;  %v1630_v40 = vadd.f32 %v2509_v25, %v1503_v39 }
 0x23c   :  { %v1513_v41 = vpop.xlane.xlu0 %1512 }
 0x23d   :  { %1695 = vst.msk [vmem:[%s2835_s4 + $0x28] sm:$0xff] %vm1689_vm1, %v1630_v40  ;;  %v1635_v42 = vadd.f32 %v2509_v25, %v1513_v41 }
 0x23e   :  { %v1515_v44 = vpop.xlane.xlu1 %1514 }
 0x23f   :  { %1700 = vst.msk [vmem:[%s2835_s4 + $0x50] sm:$0xff] %vm1689_vm1, %v1635_v42  ;;  %v1636_v45 = vadd.f32 %v2509_v25, %v1515_v44 }
 0x240   :  { %v1509_v46 = vpop.xlane.xlu0 %1508 }
 0x241   :  { %1701 = vst.msk [vmem:[%s2835_s4 + $0x58] sm:$0xff] %vm1689_vm1, %v1636_v45  ;;  %v1633_v47 = vadd.f32 %v2509_v25, %v1509_v46 }
 0x242   :  { %v1511_v48 = vpop.xlane.xlu1 %1510 }
 0x243   :  { %1698 = vst.msk [vmem:[%s2835_s4 + $0x40] sm:$0xff] %vm1689_vm1, %v1633_v47  ;;  %v1634_v49 = vadd.f32 %v2509_v25, %v1511_v48 }
 0x244   :  { %v1521_v50 = vpop.xlane.xlu0 %1520 }
 0x245   :  { %1699 = vst.msk [vmem:[%s2835_s4 + $0x48] sm:$0xff] %vm1689_vm1, %v1634_v49  ;;  %v1639_v51 = vadd.f32 %v2509_v25, %v1521_v50 }
 0x246   :  { %v1523_v52 = vpop.xlane.xlu1 %1522 }
 0x247   :  { %1704 = vst.msk [vmem:[%s2835_s4 + $0x70] sm:$0xff] %vm1689_vm1, %v1639_v51  ;;  %v1640_v53 = vadd.f32 %v2509_v25, %v1523_v52 }
 0x248   :  { %v1517_v54 = vpop.xlane.xlu0 %1516 }
 0x249   :  { %1705 = vst.msk [vmem:[%s2835_s4 + $0x78] sm:$0xff] %vm1689_vm1, %v1640_v53  ;;  %v1637_v55 = vadd.f32 %v2509_v25, %v1517_v54 }
 0x24a   :  { %v1519_v56 = vpop.xlane.xlu1 %1518 }
 0x24b   :  { %1702 = vst.msk [vmem:[%s2835_s4 + $0x60] sm:$0xff] %vm1689_vm1, %v1637_v55  ;;  %v1638_v57 = vadd.f32 %v2509_v25, %v1519_v56 }
 0x24c   :  { %v1529_v58 = vpop.xlane.xlu0 %1528 }
 0x24d   :  { %1703 = vst.msk [vmem:[%s2835_s4 + $0x68] sm:$0xff] %vm1689_vm1, %v1638_v57  ;;  %v1643_v59 = vadd.f32 %v2509_v25, %v1529_v58 }
 0x24e   :  { %v1531_v60 = vpop.xlane.xlu1 %1530 }
 0x24f   :  { %1708 = vst.msk [vmem:[%s2835_s4 + $0x90] sm:$0xff] %vm1689_vm1, %v1643_v59  ;;  %v1644_v61 = vadd.f32 %v2509_v25, %v1531_v60 }
 0x250   :  { %v1525_v62 = vpop.xlane.xlu0 %1524 }
 0x251   :  { %1709 = vst.msk [vmem:[%s2835_s4 + $0x98] sm:$0xff] %vm1689_vm1, %v1644_v61  ;;  %v1641_v63 = vadd.f32 %v2509_v25, %v1525_v62 }
 0x252   :  { %v1527_v0 = vpop.xlane.xlu1 %1526 }
 0x253   :  { %1706 = vst.msk [vmem:[%s2835_s4 + $0x80] sm:$0xff] %vm1689_vm1, %v1641_v63  ;;  %v1642_v1 = vadd.f32 %v2509_v25, %v1527_v0 }
 0x254   :  { %v1537_v2 = vpop.xlane.xlu0 %1536 }
 0x255   :  { %1707 = vst.msk [vmem:[%s2835_s4 + $0x88] sm:$0xff] %vm1689_vm1, %v1642_v1  ;;  %v1647_v3 = vadd.f32 %v2509_v25, %v1537_v2 }
 0x256   :  { %v1539_v4 = vpop.xlane.xlu1 %1538 }
 0x257   :  { %1712 = vst.msk [vmem:[%s2835_s4 + $0xb0] sm:$0xff] %vm1689_vm1, %v1647_v3  ;;  %v1648_v5 = vadd.f32 %v2509_v25, %v1539_v4 }
 0x258   :  { %v1533_v6 = vpop.xlane.xlu0 %1532 }
 0x259   :  { %1713 = vst.msk [vmem:[%s2835_s4 + $0xb8] sm:$0xff] %vm1689_vm1, %v1648_v5  ;;  %v1645_v7 = vadd.f32 %v2509_v25, %v1533_v6 }
 0x25a   :  { %v1535_v8 = vpop.xlane.xlu1 %1534 }
 0x25b   :  { %1710 = vst.msk [vmem:[%s2835_s4 + $0xa0] sm:$0xff] %vm1689_vm1, %v1645_v7  ;;  %v1646_v9 = vadd.f32 %v2509_v25, %v1535_v8 }
 0x25c   :  { %v1545_v10 = vpop.xlane.xlu0 %1544 }
 0x25d   :  { %1711 = vst.msk [vmem:[%s2835_s4 + $0xa8] sm:$0xff] %vm1689_vm1, %v1646_v9  ;;  %v1651_v11 = vadd.f32 %v2509_v25, %v1545_v10 }
 0x25e   :  { %v1547_v12 = vpop.xlane.xlu1 %1546 }
 0x25f   :  { %1716 = vst.msk [vmem:[%s2835_s4 + $0xd0] sm:$0xff] %vm1689_vm1, %v1651_v11  ;;  %v1652_v13 = vadd.f32 %v2509_v25, %v1547_v12 }
 0x260   :  { %v1541_v14 = vpop.xlane.xlu0 %1540 }
 0x261   :  { %1717 = vst.msk [vmem:[%s2835_s4 + $0xd8] sm:$0xff] %vm1689_vm1, %v1652_v13  ;;  %v1649_v43 = vadd.f32 %v2509_v25, %v1541_v14 }
 0x262   :  { %v1543_v16 = vpop.xlane.xlu1 %1542 }
 0x263   :  { %1714 = vst.msk [vmem:[%s2835_s4 + $0xc0] sm:$0xff] %vm1689_vm1, %v1649_v43  ;;  %v1650_v17 = vadd.f32 %v2509_v25, %v1543_v16 }
 0x264   :  { %v1553_v18 = vpop.xlane.xlu0 %1552 }
 0x265   :  { %1715 = vst.msk [vmem:[%s2835_s4 + $0xc8] sm:$0xff] %vm1689_vm1, %v1650_v17  ;;  %v1655_v19 = vadd.f32 %v2509_v25, %v1553_v18 }
 0x266   :  { %v1555_v21 = vpop.xlane.xlu1 %1554 }
 0x267   :  { %1720 = vst.msk [vmem:[%s2835_s4 + $0xf0] sm:$0xff] %vm1689_vm1, %v1655_v19  ;;  %v1656_v22 = vadd.f32 %v2509_v25, %v1555_v21 }
 0x268   :  { %v1549_v23 = vpop.xlane.xlu0 %1548 }
 0x269   :  { %1721 = vst.msk [vmem:[%s2835_s4 + $0xf8] sm:$0xff] %vm1689_vm1, %v1656_v22  ;;  %v1653_v24 = vadd.f32 %v2509_v25, %v1549_v23 }
 0x26a   :  { %v1551_v15 = vpop.xlane.xlu1 %1550 }
 0x26b   :  { %1718 = vst.msk [vmem:[%s2835_s4 + $0xe0] sm:$0xff] %vm1689_vm1, %v1653_v24  ;;  %v1654_v26 = vadd.f32 %v2509_v25, %v1551_v15 }
 0x26c   :  { %v1561_v27 = vpop.xlane.xlu0 %1560 }
 0x26d   :  { %1719 = vst.msk [vmem:[%s2835_s4 + $0xe8] sm:$0xff] %vm1689_vm1, %v1654_v26  ;;  %v1659_v28 = vadd.f32 %v2509_v25, %v1561_v27 }
 0x26e   :  { %v1563_v29 = vpop.xlane.xlu1 %1562 }
 0x26f   :  { %1724 = vst.msk [vmem:[%s2835_s4 + $0x110] sm:$0xff] %vm1689_vm1, %v1659_v28  ;;  %v1660_v30 = vadd.f32 %v2509_v25, %v1563_v29 }
 0x270   :  { %v1557_v20 = vpop.xlane.xlu0 %1556 }
 0x271   :  { %1725 = vst.msk [vmem:[%s2835_s4 + $0x118] sm:$0xff] %vm1689_vm1, %v1660_v30  ;;  %v1657_v31 = vadd.f32 %v2509_v25, %v1557_v20 }
 0x272   :  { %v1559_v32 = vpop.xlane.xlu1 %1558 }
 0x273   :  { %1722 = vst.msk [vmem:[%s2835_s4 + $0x100] sm:$0xff] %vm1689_vm1, %v1657_v31  ;;  %v1658_v33 = vadd.f32 %v2509_v25, %v1559_v32 }
 0x274   :  { %v1569_v34 = vpop.xlane.xlu0 %1568 }
 0x275   :  { %1723 = vst.msk [vmem:[%s2835_s4 + $0x108] sm:$0xff] %vm1689_vm1, %v1658_v33  ;;  %v1663_v35 = vadd.f32 %v2509_v25, %v1569_v34 }
 0x276   :  { %v1571_v36 = vpop.xlane.xlu1 %1570 }
 0x277   :  { %1728 = vst.msk [vmem:[%s2835_s4 + $0x130] sm:$0xff] %vm1689_vm1, %v1663_v35  ;;  %v1664_v37 = vadd.f32 %v2509_v25, %v1571_v36 }
 0x278   :  { %v1565_v38 = vpop.xlane.xlu0 %1564 }
 0x279   :  { %1729 = vst.msk [vmem:[%s2835_s4 + $0x138] sm:$0xff] %vm1689_vm1, %v1664_v37  ;;  %v1661_v39 = vadd.f32 %v2509_v25, %v1565_v38 }
 0x27a   :  { %v1567_v40 = vpop.xlane.xlu1 %1566 }
 0x27b   :  { %1726 = vst.msk [vmem:[%s2835_s4 + $0x120] sm:$0xff] %vm1689_vm1, %v1661_v39  ;;  %v1662_v41 = vadd.f32 %v2509_v25, %v1567_v40 }
 0x27c   :  { %v1577_v42 = vpop.xlane.xlu0 %1576 }
 0x27d   :  { %1727 = vst.msk [vmem:[%s2835_s4 + $0x128] sm:$0xff] %vm1689_vm1, %v1662_v41  ;;  %v1667_v44 = vadd.f32 %v2509_v25, %v1577_v42 }
 0x27e   :  { %v1579_v45 = vpop.xlane.xlu1 %1578 }
 0x27f   :  { %1732 = vst.msk [vmem:[%s2835_s4 + $0x150] sm:$0xff] %vm1689_vm1, %v1667_v44  ;;  %v1668_v46 = vadd.f32 %v2509_v25, %v1579_v45 }
 0x280   :  { %v1573_v47 = vpop.xlane.xlu0 %1572 }
 0x281   :  { %1733 = vst.msk [vmem:[%s2835_s4 + $0x158] sm:$0xff] %vm1689_vm1, %v1668_v46  ;;  %v1665_v48 = vadd.f32 %v2509_v25, %v1573_v47 }
 0x282   :  { %v1575_v49 = vpop.xlane.xlu1 %1574 }
 0x283   :  { %1730 = vst.msk [vmem:[%s2835_s4 + $0x140] sm:$0xff] %vm1689_vm1, %v1665_v48  ;;  %v1666_v50 = vadd.f32 %v2509_v25, %v1575_v49 }
 0x284   :  { %v1585_v51 = vpop.xlane.xlu0 %1584 }
 0x285   :  { %1731 = vst.msk [vmem:[%s2835_s4 + $0x148] sm:$0xff] %vm1689_vm1, %v1666_v50  ;;  %v1671_v52 = vadd.f32 %v2509_v25, %v1585_v51 }
 0x286   :  { %v1587_v53 = vpop.xlane.xlu1 %1586 }
 0x287   :  { %1736 = vst.msk [vmem:[%s2835_s4 + $0x170] sm:$0xff] %vm1689_vm1, %v1671_v52  ;;  %v1672_v54 = vadd.f32 %v2509_v25, %v1587_v53 }
 0x288   :  { %v1581_v55 = vpop.xlane.xlu0 %1580 }
 0x289   :  { %1737 = vst.msk [vmem:[%s2835_s4 + $0x178] sm:$0xff] %vm1689_vm1, %v1672_v54  ;;  %v1669_v56 = vadd.f32 %v2509_v25, %v1581_v55 }
 0x28a   :  { %v1583_v57 = vpop.xlane.xlu1 %1582 }
 0x28b   :  { %1734 = vst.msk [vmem:[%s2835_s4 + $0x160] sm:$0xff] %vm1689_vm1, %v1669_v56  ;;  %v1670_v58 = vadd.f32 %v2509_v25, %v1583_v57 }
 0x28c   :  { %v1593_v59 = vpop.xlane.xlu0 %1592 }
 0x28d   :  { %1735 = vst.msk [vmem:[%s2835_s4 + $0x168] sm:$0xff] %vm1689_vm1, %v1670_v58  ;;  %v1675_v60 = vadd.f32 %v2509_v25, %v1593_v59 }
 0x28e   :  { %v1595_v61 = vpop.xlane.xlu1 %1594 }
 0x28f   :  { %1740 = vst.msk [vmem:[%s2835_s4 + $0x190] sm:$0xff] %vm1689_vm1, %v1675_v60  ;;  %v1676_v62 = vadd.f32 %v2509_v25, %v1595_v61 }
 0x290   :  { %v1589_v63 = vpop.xlane.xlu0 %1588 }
 0x291   :  { %1741 = vst.msk [vmem:[%s2835_s4 + $0x198] sm:$0xff] %vm1689_vm1, %v1676_v62  ;;  %v1673_v0 = vadd.f32 %v2509_v25, %v1589_v63 }
 0x292   :  { %v1591_v1 = vpop.xlane.xlu1 %1590 }
 0x293   :  { %1738 = vst.msk [vmem:[%s2835_s4 + $0x180] sm:$0xff] %vm1689_vm1, %v1673_v0  ;;  %v1674_v2 = vadd.f32 %v2509_v25, %v1591_v1 }
 0x294   :  { %v1601_v3 = vpop.xlane.xlu0 %1600 }
 0x295   :  { %1739 = vst.msk [vmem:[%s2835_s4 + $0x188] sm:$0xff] %vm1689_vm1, %v1674_v2  ;;  %v1679_v4 = vadd.f32 %v2509_v25, %v1601_v3 }
 0x296   :  { %v1603_v5 = vpop.xlane.xlu1 %1602 }
 0x297   :  { %1744 = vst.msk [vmem:[%s2835_s4 + $0x1b0] sm:$0xff] %vm1689_vm1, %v1679_v4  ;;  %v1680_v6 = vadd.f32 %v2509_v25, %v1603_v5 }
 0x298   :  { %v1597_v7 = vpop.xlane.xlu0 %1596 }
 0x299   :  { %1745 = vst.msk [vmem:[%s2835_s4 + $0x1b8] sm:$0xff] %vm1689_vm1, %v1680_v6  ;;  %v1677_v8 = vadd.f32 %v2509_v25, %v1597_v7 }
 0x29a   :  { %v1599_v9 = vpop.xlane.xlu1 %1598 }
 0x29b   :  { %1742 = vst.msk [vmem:[%s2835_s4 + $0x1a0] sm:$0xff] %vm1689_vm1, %v1677_v8  ;;  %v1678_v10 = vadd.f32 %v2509_v25, %v1599_v9 }
 0x29c   :  { %v1609_v11 = vpop.xlane.xlu0 %1608 }
 0x29d   :  { %1743 = vst.msk [vmem:[%s2835_s4 + $0x1a8] sm:$0xff] %vm1689_vm1, %v1678_v10  ;;  %v1683_v12 = vadd.f32 %v2509_v25, %v1609_v11 }
 0x29e   :  { %v1611_v13 = vpop.xlane.xlu1 %1610 }
 0x29f   :  { %1748 = vst.msk [vmem:[%s2835_s4 + $0x1d0] sm:$0xff] %vm1689_vm1, %v1683_v12  ;;  %v1684_v14 = vadd.f32 %v2509_v25, %v1611_v13 }
 0x2a0   :  { %v1605_v43 = vpop.xlane.xlu0 %1604 }
 0x2a1   :  { %1749 = vst.msk [vmem:[%s2835_s4 + $0x1d8] sm:$0xff] %vm1689_vm1, %v1684_v14  ;;  %v1681_v16 = vadd.f32 %v2509_v25, %v1605_v43 }
 0x2a2   :  { %v1607_v17 = vpop.xlane.xlu1 %1606 }
 0x2a3   :  { %1746 = vst.msk [vmem:[%s2835_s4 + $0x1c0] sm:$0xff] %vm1689_vm1, %v1681_v16  ;;  %v1682_v18 = vadd.f32 %v2509_v25, %v1607_v17 }
 0x2a4   :  { %v1613_v19 = vpop.xlane.xlu0 %1612 }
 0x2a5   :  { %1747 = vst.msk [vmem:[%s2835_s4 + $0x1c8] sm:$0xff] %vm1689_vm1, %v1682_v18  ;;  %v1685_v21 = vadd.f32 %v2509_v25, %v1613_v19 }
 0x2a7   :  { %1750 = vst.msk [vmem:[%s2835_s4 + $0x1e0] sm:$0xff] %vm1689_vm1, %v1685_v21 }
 0x2a8   :  { %v1615_v22 = vpop.xlane.xlu1 %1614  ;;  %v1617_v23 = vpop.xlane.xlu0 %1616 }
 0x2a9   :  { %v1686_v24 = vadd.f32 %v2509_v25, %v1615_v22  ;;  %v1687_v15 = vadd.f32 %v2509_v25, %v1617_v23 }
 0x2ab   :  { %1751 = vst.msk [vmem:[%s2835_s4 + $0x1e8] sm:$0xff] %vm1689_vm1, %v1686_v24  ;;  %1752 = vst.msk [vmem:[%s2835_s4 + $0x1f0] sm:$0xff] %vm1689_vm1, %v1687_v15 }
 0x2ac   :  { %v1619_v26 = vpop.xlane.xlu1 %1618 }
 0x2ad   :  { %v1688_v27 = vadd.f32 %v2509_v25, %v1619_v26 }
 0x2af   :  { %1753 = vst.msk [vmem:[%s2835_s4 + $0x1f8] sm:$0xff] %vm1689_vm1, %v1688_v27 }

// kernel: tpu_custom_call.1
= control target key start
LH: loop header
LB: loop body
LE: loop exit
PB: predicated region body
PF: predicated region fallthrough
CT: control target
= control target key end

     0   :  { %vm263_vm0 = vcmask 261120   ;;  %s2831_s1 = inlined_call_operand.vmem [shape: bf16[32,128], index: 1, kind: input, shape index: {}]   ;;  %s2832_s0 = inlined_call_operand.vmem [shape: bf16[512,32], index: 0, kind: input, shape index: {}]   ;;  %s2833_s2 = inlined_call_operand.vmem [shape: bf16[128,128], index: 2, kind: input, shape index: {}]   ;;  %s2834_s3 = inlined_call_operand.vmem [shape: f32[4,128], index: 3, kind: input, shape index: {}]   ;;  %s2835_s4 = inlined_call_operand.vmem [shape: f32[512,1], index: 4, kind: output, shape index: {}]  }
   0x1   :  { %v2074_v0 = vld [vmem:[%s2831_s1 + $0x8] sm:$0xff]   ;;  %v2075_v1 = vld [vmem:[%s2831_s1] sm:$0xff]   ;;  %v2078_v4 = vld [vmem:[%s2832_s0 + $0x10] sm:$0xff]  }
   0x2   :  { %1910 = vmatprep.subr.bf16.mxu0 %v2074_v0  ;;  %v2076_v2 = vld [vmem:[%s2832_s0] sm:$0xff]   ;;  %v2077_v3 = vld [vmem:[%s2832_s0 + $0x8] sm:$0xff]   ;;  %v2079_v5 = vld [vmem:[%s2832_s0 + $0x18] sm:$0xff]  }
   0x3   :  { %1911 = vmatpush3.bf16.msra.mxu0 %v2074_v0  ;;  %1914 = vmatprep.mubr.msk.bf16.mxu0 %vm263_vm0, %v2076_v2  ;;  %v2080_v6 = vld [vmem:[%s2832_s0 + $0x20] sm:$0xff]   ;;  %v2081_v7 = vld [vmem:[%s2832_s0 + $0x28] sm:$0xff]   ;;  %v2082_v8 = vld [vmem:[%s2832_s0 + $0x30] sm:$0xff]  }
   0x4   :  { %1912 = vmatprep.subr.bf16.mxu0 %v2075_v1  ;;  %v2098_v9 = vld [vmem:[%s2833_s2 + $0x38] sm:$0xff]   ;;  %v2103_v10 = vld [vmem:[%s2833_s2 + $0x30] sm:$0xff]   ;;  %v2084_v12 = vld [vmem:[%s2832_s0 + $0x40] sm:$0xff]  }
   0x5   :  { %2058 = vmatprep.subr.bf16.mxu1 %v2098_v9  ;;  %v2083_v11 = vld [vmem:[%s2832_s0 + $0x38] sm:$0xff]   ;;  %v2108_v13 = vld [vmem:[%s2833_s2 + $0x28] sm:$0xff]   ;;  %v2111_v15 = vld [vmem:[%s2833_s2 + $0x20] sm:$0xff]  }
   0x6   :  { %2066 = vmatpush3.bf16.msra.mxu1 %v2098_v9  ;;  %v2085_v14 = vld [vmem:[%s2832_s0 + $0x48] sm:$0xff]   ;;  %v2112_v16 = vld [vmem:[%s2833_s2 + $0x18] sm:$0xff]   ;;  %v2086_v17 = vld [vmem:[%s2832_s0 + $0x50] sm:$0xff]  }
   0x7   :  { %1913 = vmatpush3.bf16.msra.mxu0 %v2075_v1  ;;  %2059 = vmatprep.subr.bf16.mxu1 %v2103_v10  ;;  %v2113_v18 = vld [vmem:[%s2833_s2 + $0x10] sm:$0xff]   ;;  %v2087_v19 = vld [vmem:[%s2832_s0 + $0x58] sm:$0xff]   ;;  %v2114_v20 = vld [vmem:[%s2833_s2 + $0x8] sm:$0xff]  }
   0x8   :  { %1978 = vmatprep.subr.bf16.mxu0 %v2098_v9  ;;  %v2088_v21 = vld [vmem:[%s2832_s0 + $0x60] sm:$0xff]   ;;  %v2089_v22 = vld [vmem:[%s2832_s0 + $0x68] sm:$0xff]   ;;  %v2090_v23 = vld [vmem:[%s2832_s0 + $0x70] sm:$0xff]  }
   0x9   :  { %v2091_v24 = vld [vmem:[%s2832_s0 + $0x78] sm:$0xff]   ;;  %v2092_v25 = vld [vmem:[%s2832_s0 + $0x80] sm:$0xff]   ;;  %v2093_v26 = vld [vmem:[%s2832_s0 + $0x88] sm:$0xff]  }
   0xa   :  { %1915 = vmatmul.mubr.msk.bf16.vlgmr.msra.gmra.mxu0 %vm263_vm0, %v2077_v3  ;;  %2067 = vmatpush3.bf16.msra.mxu1 %v2103_v10  ;;  %v2094_v27 = vld [vmem:[%s2832_s0 + $0x90] sm:$0xff]   ;;  %v2095_v28 = vld [vmem:[%s2832_s0 + $0x98] sm:$0xff]   ;;  %v2096_v29 = vld [vmem:[%s2832_s0 + $0xa0] sm:$0xff]  }
   0xb   :  { %1918 = vmatprep.mubr.msk.bf16.mxu0 %vm263_vm0, %v2078_v4  ;;  %1979 = vmatpush3.bf16.msra.mxu0 %v2098_v9  ;;  %v2115_v30 = vld [vmem:[%s2833_s2] sm:$0xff]   ;;  %v2097_v31 = vld [vmem:[%s2832_s0 + $0xa8] sm:$0xff]   ;;  %v2099_v32 = vld [vmem:[%s2832_s0 + $0xb0] sm:$0xff]  }
   0xc   :  { %1980 = vmatprep.subr.bf16.mxu0 %v2103_v10  ;;  %2060 = vmatprep.subr.bf16.mxu1 %v2108_v13  ;;  %v2100_v33 = vld [vmem:[%s2832_s0 + $0xb8] sm:$0xff]   ;;  %v2101_v34 = vld [vmem:[%s2832_s0 + $0xc0] sm:$0xff]   ;;  %v2102_v35 = vld [vmem:[%s2832_s0 + $0xc8] sm:$0xff]  }
   0xd   :  { %v2104_v36 = vld [vmem:[%s2832_s0 + $0xd0] sm:$0xff]   ;;  %v2105_v37 = vld [vmem:[%s2832_s0 + $0xd8] sm:$0xff]   ;;  %v2106_v38 = vld [vmem:[%s2832_s0 + $0xe0] sm:$0xff]  }
   0xe   :  { %2068 = vmatpush3.bf16.msra.mxu1 %v2108_v13  ;;  %v2107_v39 = vld [vmem:[%s2832_s0 + $0xe8] sm:$0xff]   ;;  %v2109_v40 = vld [vmem:[%s2832_s0 + $0xf0] sm:$0xff]   ;;  %v2110_v41 = vld [vmem:[%s2832_s0 + $0xf8] sm:$0xff]  }
   0xf   :  { %1981 = vmatpush3.bf16.msra.mxu0 %v2103_v10  ;;  %2061 = vmatprep.subr.bf16.mxu1 %v2111_v15  ;;  %v2302_v43 = vld [vmem:[%s2834_s3] ss:$0 sm:$0xff] }
  0x10   :  { %1982 = vmatprep.subr.bf16.mxu0 %v2108_v13 }
  0x12   :  { %1919 = vmatmul.mubr.msk.bf16.gmra.mxu0 %vm263_vm0, %v2079_v5  ;;  %2069 = vmatpush3.bf16.msra.mxu1 %v2111_v15 }
  0x13   :  { %1922 = vmatprep.mubr.msk.bf16.mxu0 %vm263_vm0, %v2080_v6  ;;  %1983 = vmatpush3.bf16.msra.mxu0 %v2108_v13 }
  0x14   :  { %1984 = vmatprep.subr.bf16.mxu0 %v2111_v15  ;;  %2062 = vmatprep.subr.bf16.mxu1 %v2112_v16 }
  0x16   :  { %2070 = vmatpush3.bf16.msra.mxu1 %v2112_v16 }
  0x17   :  { %1985 = vmatpush3.bf16.msra.mxu0 %v2111_v15  ;;  %2063 = vmatprep.subr.bf16.mxu1 %v2113_v18 }
  0x18   :  { %1986 = vmatprep.subr.bf16.mxu0 %v2112_v16 }
  0x1a   :  { %1923 = vmatmul.mubr.msk.bf16.gmra.mxu0 %vm263_vm0, %v2081_v7  ;;  %2071 = vmatpush3.bf16.msra.mxu1 %v2113_v18 }
  0x1b   :  { %1926 = vmatprep.mubr.msk.bf16.mxu0 %vm263_vm0, %v2082_v8  ;;  %1987 = vmatpush3.bf16.msra.mxu0 %v2112_v16 }
  0x1c   :  { %1988 = vmatprep.subr.bf16.mxu0 %v2113_v18  ;;  %2064 = vmatprep.subr.bf16.mxu1 %v2114_v20 }
  0x1e   :  { %2072 = vmatpush3.bf16.msra.mxu1 %v2114_v20 }
  0x1f   :  { %1989 = vmatpush3.bf16.msra.mxu0 %v2113_v18  ;;  %2065 = vmatprep.subr.bf16.mxu1 %v2115_v30 }
  0x20   :  { %1990 = vmatprep.subr.bf16.mxu0 %v2114_v20 }
  0x22   :  { %1927 = vmatmul.mubr.msk.bf16.gmra.mxu0 %vm263_vm0, %v2083_v11  ;;  %2073 = vmatpush3.bf16.msra.mxu1 %v2115_v30 }
  0x23   :  { %1930 = vmatprep.mubr.msk.bf16.mxu0 %vm263_vm0, %v2084_v12  ;;  %1991 = vmatpush3.bf16.msra.mxu0 %v2114_v20 }
  0x24   :  { %1992 = vmatprep.subr.bf16.mxu0 %v2115_v30 }
  0x27   :  { %1993 = vmatpush3.bf16.msra.mxu0 %v2115_v30 }
  0x2a   :  { %1931 = vmatmul.mubr.msk.bf16.gmra.mxu0 %vm263_vm0, %v2085_v14 }
  0x2b   :  { %1934 = vmatprep.mubr.msk.bf16.mxu0 %vm263_vm0, %v2086_v17 }
  0x32   :  { %1935 = vmatmul.mubr.msk.bf16.gmra.mxu0 %vm263_vm0, %v2087_v19 }
  0x33   :  { %1938 = vmatprep.mubr.msk.bf16.mxu0 %vm263_vm0, %v2088_v21 }
  0x3a   :  { %1939 = vmatmul.mubr.msk.bf16.gmra.mxu0 %vm263_vm0, %v2089_v22 }
  0x3b   :  { %1942 = vmatprep.mubr.msk.bf16.mxu0 %vm263_vm0, %v2090_v23 }
  0x42   :  { %1943 = vmatmul.mubr.msk.bf16.gmra.mxu0 %vm263_vm0, %v2091_v24 }
  0x43   :  { %1946 = vmatprep.mubr.msk.bf16.mxu0 %vm263_vm0, %v2092_v25 }
  0x4a   :  { %1947 = vmatmul.mubr.msk.bf16.gmra.mxu0 %vm263_vm0, %v2093_v26 }
  0x4b   :  { %1950 = vmatprep.mubr.msk.bf16.mxu0 %vm263_vm0, %v2094_v27 }
  0x52   :  { %1951 = vmatmul.mubr.msk.bf16.gmra.mxu0 %vm263_vm0, %v2095_v28 }
  0x53   :  { %1954 = vmatprep.mubr.msk.bf16.mxu0 %vm263_vm0, %v2096_v29 }
  0x5a   :  { %1955 = vmatmul.mubr.msk.bf16.gmra.mxu0 %vm263_vm0, %v2097_v31 }
  0x5b   :  { %1958 = vmatprep.mubr.msk.bf16.mxu0 %vm263_vm0, %v2099_v32 }
  0x62   :  { %1959 = vmatmul.mubr.msk.bf16.gmra.mxu0 %vm263_vm0, %v2100_v33 }
  0x63   :  { %1962 = vmatprep.mubr.msk.bf16.mxu0 %vm263_vm0, %v2101_v34 }
  0x6a   :  { %1963 = vmatmul.mubr.msk.bf16.gmra.mxu0 %vm263_vm0, %v2102_v35 }
  0x6b   :  { %1966 = vmatprep.mubr.msk.bf16.mxu0 %vm263_vm0, %v2104_v36 }
  0x72   :  { %1967 = vmatmul.mubr.msk.bf16.gmra.mxu0 %vm263_vm0, %v2105_v37 }
  0x73   :  { %1970 = vmatprep.mubr.msk.bf16.mxu0 %vm263_vm0, %v2106_v38 }
  0x7a   :  { %1971 = vmatmul.mubr.msk.bf16.gmra.mxu0 %vm263_vm0, %v2107_v39 }
  0x7b   :  { %1974 = vmatprep.mubr.msk.bf16.mxu0 %vm263_vm0, %v2109_v40 }
  0x82   :  { %1975 = vmatmul.mubr.msk.bf16.gmra.mxu0 %vm263_vm0, %v2110_v41 }
  0xca   :  { %v1916_v42 = vpop.f32.mrf.mxu0 }
  0xcb   :  { %v403_v46 = vadd.f32 %v1916_v42, %v2302_v43 }
  0xcc   :  { %v394_v44 = vpop.f32.mrf.mxu0 }
  0xcd   :  { %v395_v45 = vadd.f32 %v2302_v43, %v394_v44  ;;  %v715_v53 = vmul.f32 0.01, %v403_v46  ;;  %vm651_vm3 = vcmp.gt.f32.partialorder %v403_v46, 0.0 }
  0xce   :  { %v1917_v47 = vpop.f32.mrf.mxu0 }
  0xcf   :  { %v406_v48 = vadd.f32 %v1917_v47, %v2302_v43  ;;  %v713_v50 = vmul.f32 0.01, %v395_v45  ;;  %vm649_vm2 = vcmp.gt.f32.partialorder %v395_v45, 0.0  ;;  %v779_v61 = vsel %vm651_vm3, %v403_v46, %v715_v53 }
  0xd0   :  { %v397_v49 = vpop.f32.mrf.mxu0 }
  0xd1   :  { %vm652_vm1 = vcmp.gt.f32.partialorder %v406_v48, 0.0  ;;  %v716_v51 = vmul.f32 0.01, %v406_v48  ;;  %v398_v52 = vadd.f32 %v2302_v43, %v397_v49  ;;  %v777_v59 = vsel %vm649_vm2, %v395_v45, %v713_v50 }
  0xd2   :  { %v1920_v54 = vpop.f32.mrf.mxu0 }
  0xd3   :  { %vm650_vm4 = vcmp.gt.f32.partialorder %v398_v52, 0.0  ;;  %v714_v55 = vmul.f32 0.01, %v398_v52  ;;  %v780_v56 = vsel %vm652_vm1, %v406_v48, %v716_v51  ;;  %v419_v62 = vadd.f32 %v1920_v54, %v2302_v43 }
  0xd4   :  { %v410_v57 = vpop.f32.mrf.mxu0  ;;  %v842_v1 = vpack.c.bf16 %v780_v56, %v779_v61 }
  0xd5   :  { %v411_v58 = vadd.f32 %v2302_v43, %v410_v57  ;;  %v778_v60 = vsel %vm650_vm4, %v398_v52, %v714_v55  ;;  %v719_v7 = vmul.f32 0.01, %v419_v62  ;;  %vm655_vm7 = vcmp.gt.f32.partialorder %v419_v62, 0.0 }
  0xd6   :  { %v1921_v63 = vpop.f32.mrf.mxu0  ;;  %v841_v0 = vpack.c.bf16 %v778_v60, %v777_v59 }
  0xd7   :  { %v422_v2 = vadd.f32 %v1921_v63, %v2302_v43  ;;  %v717_v4 = vmul.f32 0.01, %v411_v58  ;;  %vm653_vm6 = vcmp.gt.f32.partialorder %v411_v58, 0.0  ;;  %v783_v18 = vsel %vm655_vm7, %v419_v62, %v719_v7 }
  0xd8   :  { %v413_v3 = vpop.f32.mrf.mxu0  ;;  %1994 = vmatprep.mubr.bf16.mxu0 %v841_v0 }
  0xd9   :  { %vm656_vm5 = vcmp.gt.f32.partialorder %v422_v2, 0.0  ;;  %v720_v5 = vmul.f32 0.01, %v422_v2  ;;  %v414_v6 = vadd.f32 %v2302_v43, %v413_v3  ;;  %1995 = vmatmul.mubr.bf16.vlgmr.msra.gmra.mxu0 %v842_v1  ;;  %v781_v13 = vsel %vm653_vm6, %v411_v58, %v717_v4 }
  0xda   :  { %v1924_v8 = vpop.f32.mrf.mxu0 }
  0xdb   :  { %v718_v9 = vmul.f32 0.01, %v414_v6  ;;  %vm654_vm8 = vcmp.gt.f32.partialorder %v414_v6, 0.0  ;;  %v784_v11 = vsel %vm656_vm5, %v422_v2, %v720_v5  ;;  %v435_v15 = vadd.f32 %v1924_v8, %v2302_v43 }
  0xdc   :  { %v426_v10 = vpop.f32.mrf.mxu0  ;;  %v844_v20 = vpack.c.bf16 %v784_v11, %v783_v18 }
  0xdd   :  { %v427_v12 = vadd.f32 %v2302_v43, %v426_v10  ;;  %v782_v14 = vsel %vm654_vm8, %v414_v6, %v718_v9  ;;  %v723_v25 = vmul.f32 0.01, %v435_v15  ;;  %vm659_vm11 = vcmp.gt.f32.partialorder %v435_v15, 0.0 }
  0xde   :  { %v1925_v16 = vpop.f32.mrf.mxu0  ;;  %v843_v17 = vpack.c.bf16 %v782_v14, %v781_v13 }
  0xdf   :  { %v438_v19 = vadd.f32 %v1925_v16, %v2302_v43  ;;  %v721_v22 = vmul.f32 0.01, %v427_v12  ;;  %vm657_vm10 = vcmp.gt.f32.partialorder %v427_v12, 0.0  ;;  %v787_v36 = vsel %vm659_vm11, %v435_v15, %v723_v25 }
  0xe0   :  { %v429_v21 = vpop.f32.mrf.mxu0  ;;  %1998 = vmatprep.mubr.bf16.mxu1 %v843_v17 }
  0xe1   :  { %vm660_vm9 = vcmp.gt.f32.partialorder %v438_v19, 0.0  ;;  %v724_v23 = vmul.f32 0.01, %v438_v19  ;;  %v430_v24 = vadd.f32 %v2302_v43, %v429_v21  ;;  %1999 = vmatmul.mubr.bf16.vlgmr.msra.gmra.mxu1 %v844_v20  ;;  %v785_v31 = vsel %vm657_vm10, %v427_v12, %v721_v22 }
  0xe2   :  { %v1928_v26 = vpop.f32.mrf.mxu0 }
  0xe3   :  { %vm658_vm12 = vcmp.gt.f32.partialorder %v430_v24, 0.0  ;;  %v722_v27 = vmul.f32 0.01, %v430_v24  ;;  %v788_v29 = vsel %vm660_vm9, %v438_v19, %v724_v23  ;;  %v451_v33 = vadd.f32 %v1928_v26, %v2302_v43 }
  0xe4   :  { %v442_v28 = vpop.f32.mrf.mxu0  ;;  %v846_v38 = vpack.c.bf16 %v788_v29, %v787_v36 }
  0xe5   :  { %v443_v30 = vadd.f32 %v2302_v43, %v442_v28  ;;  %v786_v32 = vsel %vm658_vm12, %v430_v24, %v722_v27  ;;  %v727_v44 = vmul.f32 0.01, %v451_v33  ;;  %vm663_vm15 = vcmp.gt.f32.partialorder %v451_v33, 0.0 }
  0xe6   :  { %v1929_v34 = vpop.f32.mrf.mxu0  ;;  %v845_v35 = vpack.c.bf16 %v786_v32, %v785_v31 }
  0xe7   :  { %v454_v37 = vadd.f32 %v1929_v34, %v2302_v43  ;;  %v725_v40 = vmul.f32 0.01, %v443_v30  ;;  %vm661_vm14 = vcmp.gt.f32.partialorder %v443_v30, 0.0  ;;  %v791_v55 = vsel %vm663_vm15, %v451_v33, %v727_v44 }
  0xe8   :  { %v445_v39 = vpop.f32.mrf.mxu0  ;;  %2002 = vmatprep.mubr.bf16.mxu1 %v845_v35 }
  0xe9   :  { %vm664_vm13 = vcmp.gt.f32.partialorder %v454_v37, 0.0  ;;  %v728_v41 = vmul.f32 0.01, %v454_v37  ;;  %v446_v42 = vadd.f32 %v2302_v43, %v445_v39  ;;  %2003 = vmatmul.mubr.bf16.gmra.mxu1 %v846_v38  ;;  %v789_v50 = vsel %vm661_vm14, %v443_v30, %v725_v40 }
  0xea   :  { %v1932_v45 = vpop.f32.mrf.mxu0 }
  0xeb   :  { %vm662_vm0 = vcmp.gt.f32.partialorder %v446_v42, 0.0  ;;  %v726_v46 = vmul.f32 0.01, %v446_v42  ;;  %v792_v48 = vsel %vm664_vm13, %v454_v37, %v728_v41  ;;  %v467_v52 = vadd.f32 %v1932_v45, %v2302_v43 }
  0xec   :  { %v458_v47 = vpop.f32.mrf.mxu0  ;;  %v848_v57 = vpack.c.bf16 %v792_v48, %v791_v55 }
  0xed   :  { %v459_v49 = vadd.f32 %v2302_v43, %v458_v47  ;;  %v790_v51 = vsel %vm662_vm0, %v446_v42, %v726_v46  ;;  %v731_v62 = vmul.f32 0.01, %v467_v52  ;;  %vm667_vm3 = vcmp.gt.f32.partialorder %v467_v52, 0.0 }
  0xee   :  { %v1933_v53 = vpop.f32.mrf.mxu0  ;;  %v847_v54 = vpack.c.bf16 %v790_v51, %v789_v50 }
  0xef   :  { %v470_v56 = vadd.f32 %v1933_v53, %v2302_v43  ;;  %v729_v59 = vmul.f32 0.01, %v459_v49  ;;  %vm665_vm2 = vcmp.gt.f32.partialorder %v459_v49, 0.0  ;;  %v795_v9 = vsel %vm667_vm3, %v467_v52, %v731_v62 }
  0xf0   :  { %v461_v58 = vpop.f32.mrf.mxu0  ;;  %2006 = vmatprep.mubr.bf16.mxu1 %v847_v54 }
  0xf1   :  { %vm668_vm1 = vcmp.gt.f32.partialorder %v470_v56, 0.0  ;;  %v732_v60 = vmul.f32 0.01, %v470_v56  ;;  %v462_v61 = vadd.f32 %v2302_v43, %v461_v58  ;;  %2007 = vmatmul.mubr.bf16.gmra.mxu1 %v848_v57  ;;  %v793_v4 = vsel %vm665_vm2, %v459_v49, %v729_v59 }
  0xf2   :  { %v1936_v63 = vpop.f32.mrf.mxu0 }
  0xf3   :  { %vm666_vm4 = vcmp.gt.f32.partialorder %v462_v61, 0.0  ;;  %v730_v0 = vmul.f32 0.01, %v462_v61  ;;  %v796_v2 = vsel %vm668_vm1, %v470_v56, %v732_v60  ;;  %v483_v6 = vadd.f32 %v1936_v63, %v2302_v43 }
  0xf4   :  { %v474_v1 = vpop.f32.mrf.mxu0  ;;  %v850_v11 = vpack.c.bf16 %v796_v2, %v795_v9 }
  0xf5   :  { %v475_v3 = vadd.f32 %v2302_v43, %v474_v1  ;;  %v794_v5 = vsel %vm666_vm4, %v462_v61, %v730_v0  ;;  %v735_v16 = vmul.f32 0.01, %v483_v6  ;;  %vm671_vm7 = vcmp.gt.f32.partialorder %v483_v6, 0.0 }
  0xf6   :  { %v1937_v7 = vpop.f32.mrf.mxu0  ;;  %v849_v8 = vpack.c.bf16 %v794_v5, %v793_v4 }
  0xf7   :  { %v486_v10 = vadd.f32 %v1937_v7, %v2302_v43  ;;  %v733_v13 = vmul.f32 0.01, %v475_v3  ;;  %vm669_vm6 = vcmp.gt.f32.partialorder %v475_v3, 0.0  ;;  %v799_v27 = vsel %vm671_vm7, %v483_v6, %v735_v16 }
  0xf8   :  { %v477_v12 = vpop.f32.mrf.mxu0  ;;  %2010 = vmatprep.mubr.bf16.mxu1 %v849_v8 }
  0xf9   :  { %vm672_vm5 = vcmp.gt.f32.partialorder %v486_v10, 0.0  ;;  %v736_v14 = vmul.f32 0.01, %v486_v10  ;;  %v478_v15 = vadd.f32 %v2302_v43, %v477_v12  ;;  %2011 = vmatmul.mubr.bf16.gmra.mxu1 %v850_v11  ;;  %v797_v22 = vsel %vm669_vm6, %v475_v3, %v733_v13 }
  0xfa   :  { %v1940_v17 = vpop.f32.mrf.mxu0 }
  0xfb   :  { %vm670_vm8 = vcmp.gt.f32.partialorder %v478_v15, 0.0  ;;  %v734_v18 = vmul.f32 0.01, %v478_v15  ;;  %v800_v20 = vsel %vm672_vm5, %v486_v10, %v736_v14  ;;  %v499_v24 = vadd.f32 %v1940_v17, %v2302_v43 }
  0xfc   :  { %v490_v19 = vpop.f32.mrf.mxu0  ;;  %v852_v29 = vpack.c.bf16 %v800_v20, %v799_v27 }
  0xfd   :  { %v491_v21 = vadd.f32 %v2302_v43, %v490_v19  ;;  %v798_v23 = vsel %vm670_vm8, %v478_v15, %v734_v18  ;;  %v739_v34 = vmul.f32 0.01, %v499_v24  ;;  %vm675_vm11 = vcmp.gt.f32.partialorder %v499_v24, 0.0 }
  0xfe   :  { %v1941_v25 = vpop.f32.mrf.mxu0  ;;  %v851_v26 = vpack.c.bf16 %v798_v23, %v797_v22 }
  0xff   :  { %v502_v28 = vadd.f32 %v1941_v25, %v2302_v43  ;;  %v737_v31 = vmul.f32 0.01, %v491_v21  ;;  %vm673_vm10 = vcmp.gt.f32.partialorder %v491_v21, 0.0  ;;  %v803_v46 = vsel %vm675_vm11, %v499_v24, %v739_v34 }
 0x100   :  { %v493_v30 = vpop.f32.mrf.mxu0  ;;  %2014 = vmatprep.mubr.bf16.mxu1 %v851_v26 }
 0x101   :  { %vm676_vm9 = vcmp.gt.f32.partialorder %v502_v28, 0.0  ;;  %v740_v32 = vmul.f32 0.01, %v502_v28  ;;  %v494_v33 = vadd.f32 %v2302_v43, %v493_v30  ;;  %2015 = vmatmul.mubr.bf16.gmra.mxu1 %v852_v29  ;;  %v801_v40 = vsel %vm673_vm10, %v491_v21, %v737_v31 }
 0x102   :  { %v1944_v35 = vpop.f32.mrf.mxu0 }
 0x103   :  { %vm674_vm12 = vcmp.gt.f32.partialorder %v494_v33, 0.0  ;;  %v738_v36 = vmul.f32 0.01, %v494_v33  ;;  %v804_v38 = vsel %vm676_vm9, %v502_v28, %v740_v32  ;;  %v515_v42 = vadd.f32 %v1944_v35, %v2302_v43 }
 0x104   :  { %v506_v37 = vpop.f32.mrf.mxu0  ;;  %v854_v48 = vpack.c.bf16 %v804_v38, %v803_v46 }
 0x105   :  { %v507_v39 = vadd.f32 %v2302_v43, %v506_v37  ;;  %v802_v41 = vsel %vm674_vm12, %v494_v33, %v738_v36  ;;  %v743_v53 = vmul.f32 0.01, %v515_v42  ;;  %vm679_vm15 = vcmp.gt.f32.partialorder %v515_v42, 0.0 }
 0x106   :  { %v1945_v44 = vpop.f32.mrf.mxu0  ;;  %v853_v45 = vpack.c.bf16 %v802_v41, %v801_v40 }
 0x107   :  { %v518_v47 = vadd.f32 %v1945_v44, %v2302_v43  ;;  %v741_v50 = vmul.f32 0.01, %v507_v39  ;;  %vm677_vm14 = vcmp.gt.f32.partialorder %v507_v39, 0.0  ;;  %v807_v0 = vsel %vm679_vm15, %v515_v42, %v743_v53 }
 0x108   :  { %v509_v49 = vpop.f32.mrf.mxu0  ;;  %2018 = vmatprep.mubr.bf16.mxu1 %v853_v45 }
 0x109   :  { %vm680_vm13 = vcmp.gt.f32.partialorder %v518_v47, 0.0  ;;  %v744_v51 = vmul.f32 0.01, %v518_v47  ;;  %v510_v52 = vadd.f32 %v2302_v43, %v509_v49  ;;  %2019 = vmatmul.mubr.bf16.gmra.mxu1 %v854_v48  ;;  %v805_v59 = vsel %vm677_vm14, %v507_v39, %v741_v50 }
 0x10a   :  { %v1948_v54 = vpop.f32.mrf.mxu0 }
 0x10b   :  { %vm678_vm0 = vcmp.gt.f32.partialorder %v510_v52, 0.0  ;;  %v742_v55 = vmul.f32 0.01, %v510_v52  ;;  %v808_v57 = vsel %vm680_vm13, %v518_v47, %v744_v51  ;;  %v531_v61 = vadd.f32 %v1948_v54, %v2302_v43 }
 0x10c   :  { %v522_v56 = vpop.f32.mrf.mxu0  ;;  %v856_v2 = vpack.c.bf16 %v808_v57, %v807_v0 }
 0x10d   :  { %v523_v58 = vadd.f32 %v2302_v43, %v522_v56  ;;  %v806_v60 = vsel %vm678_vm0, %v510_v52, %v742_v55  ;;  %v747_v7 = vmul.f32 0.01, %v531_v61  ;;  %vm683_vm3 = vcmp.gt.f32.partialorder %v531_v61, 0.0 }
 0x10e   :  { %v1949_v62 = vpop.f32.mrf.mxu0  ;;  %v855_v63 = vpack.c.bf16 %v806_v60, %v805_v59 }
 0x10f   :  { %v534_v1 = vadd.f32 %v1949_v62, %v2302_v43  ;;  %v745_v4 = vmul.f32 0.01, %v523_v58  ;;  %vm681_vm2 = vcmp.gt.f32.partialorder %v523_v58, 0.0  ;;  %v811_v18 = vsel %vm683_vm3, %v531_v61, %v747_v7 }
 0x110   :  { %v525_v3 = vpop.f32.mrf.mxu0  ;;  %2022 = vmatprep.mubr.bf16.mxu1 %v855_v63 }
 0x111   :  { %vm684_vm1 = vcmp.gt.f32.partialorder %v534_v1, 0.0  ;;  %v748_v5 = vmul.f32 0.01, %v534_v1  ;;  %v526_v6 = vadd.f32 %v2302_v43, %v525_v3  ;;  %2023 = vmatmul.mubr.bf16.gmra.mxu1 %v856_v2  ;;  %v809_v13 = vsel %vm681_vm2, %v523_v58, %v745_v4 }
 0x112   :  { %v1952_v8 = vpop.f32.mrf.mxu0 }
 0x113   :  { %vm682_vm4 = vcmp.gt.f32.partialorder %v526_v6, 0.0  ;;  %v746_v9 = vmul.f32 0.01, %v526_v6  ;;  %v812_v11 = vsel %vm684_vm1, %v534_v1, %v748_v5  ;;  %v547_v15 = vadd.f32 %v1952_v8, %v2302_v43 }
 0x114   :  { %v538_v10 = vpop.f32.mrf.mxu0  ;;  %v858_v20 = vpack.c.bf16 %v812_v11, %v811_v18 }
 0x115   :  { %v539_v12 = vadd.f32 %v2302_v43, %v538_v10  ;;  %v810_v14 = vsel %vm682_vm4, %v526_v6, %v746_v9  ;;  %v751_v25 = vmul.f32 0.01, %v547_v15  ;;  %vm687_vm7 = vcmp.gt.f32.partialorder %v547_v15, 0.0 }
 0x116   :  { %v1953_v16 = vpop.f32.mrf.mxu0  ;;  %v857_v17 = vpack.c.bf16 %v810_v14, %v809_v13 }
 0x117   :  { %v550_v19 = vadd.f32 %v1953_v16, %v2302_v43  ;;  %v749_v22 = vmul.f32 0.01, %v539_v12  ;;  %vm685_vm6 = vcmp.gt.f32.partialorder %v539_v12, 0.0  ;;  %v815_v36 = vsel %vm687_vm7, %v547_v15, %v751_v25 }
 0x118   :  { %v541_v21 = vpop.f32.mrf.mxu0  ;;  %2026 = vmatprep.mubr.bf16.mxu1 %v857_v17 }
 0x119   :  { %vm688_vm5 = vcmp.gt.f32.partialorder %v550_v19, 0.0  ;;  %v752_v23 = vmul.f32 0.01, %v550_v19  ;;  %v542_v24 = vadd.f32 %v2302_v43, %v541_v21  ;;  %2027 = vmatmul.mubr.bf16.gmra.mxu1 %v858_v20  ;;  %v813_v31 = vsel %vm685_vm6, %v539_v12, %v749_v22 }
 0x11a   :  { %v1956_v26 = vpop.f32.mrf.mxu0 }
 0x11b   :  { %vm686_vm8 = vcmp.gt.f32.partialorder %v542_v24, 0.0  ;;  %v750_v27 = vmul.f32 0.01, %v542_v24  ;;  %v816_v29 = vsel %vm688_vm5, %v550_v19, %v752_v23  ;;  %v563_v33 = vadd.f32 %v1956_v26, %v2302_v43 }
 0x11c   :  { %v554_v28 = vpop.f32.mrf.mxu0  ;;  %v860_v38 = vpack.c.bf16 %v816_v29, %v815_v36 }
 0x11d   :  { %v555_v30 = vadd.f32 %v2302_v43, %v554_v28  ;;  %v814_v32 = vsel %vm686_vm8, %v542_v24, %v750_v27  ;;  %v755_v44 = vmul.f32 0.01, %v563_v33  ;;  %vm691_vm11 = vcmp.gt.f32.partialorder %v563_v33, 0.0 }
 0x11e   :  { %v1957_v34 = vpop.f32.mrf.mxu0  ;;  %v859_v35 = vpack.c.bf16 %v814_v32, %v813_v31 }
 0x11f   :  { %v566_v37 = vadd.f32 %v1957_v34, %v2302_v43  ;;  %v753_v40 = vmul.f32 0.01, %v555_v30  ;;  %vm689_vm10 = vcmp.gt.f32.partialorder %v555_v30, 0.0  ;;  %v819_v55 = vsel %vm691_vm11, %v563_v33, %v755_v44 }
 0x120   :  { %v557_v39 = vpop.f32.mrf.mxu0  ;;  %2030 = vmatprep.mubr.bf16.mxu1 %v859_v35 }
 0x121   :  { %vm692_vm9 = vcmp.gt.f32.partialorder %v566_v37, 0.0  ;;  %v756_v41 = vmul.f32 0.01, %v566_v37  ;;  %v558_v42 = vadd.f32 %v2302_v43, %v557_v39  ;;  %2031 = vmatmul.mubr.bf16.gmra.mxu1 %v860_v38  ;;  %v817_v50 = vsel %vm689_vm10, %v555_v30, %v753_v40 }
 0x122   :  { %v1960_v45 = vpop.f32.mrf.mxu0 }
 0x123   :  { %vm690_vm12 = vcmp.gt.f32.partialorder %v558_v42, 0.0  ;;  %v754_v46 = vmul.f32 0.01, %v558_v42  ;;  %v820_v48 = vsel %vm692_vm9, %v566_v37, %v756_v41  ;;  %v579_v52 = vadd.f32 %v1960_v45, %v2302_v43 }
 0x124   :  { %v570_v47 = vpop.f32.mrf.mxu0  ;;  %v862_v57 = vpack.c.bf16 %v820_v48, %v819_v55 }
 0x125   :  { %v571_v49 = vadd.f32 %v2302_v43, %v570_v47  ;;  %v818_v51 = vsel %vm690_vm12, %v558_v42, %v754_v46  ;;  %v759_v62 = vmul.f32 0.01, %v579_v52  ;;  %vm695_vm15 = vcmp.gt.f32.partialorder %v579_v52, 0.0 }
 0x126   :  { %v1961_v53 = vpop.f32.mrf.mxu0  ;;  %v861_v54 = vpack.c.bf16 %v818_v51, %v817_v50 }
 0x127   :  { %v582_v56 = vadd.f32 %v1961_v53, %v2302_v43  ;;  %v757_v59 = vmul.f32 0.01, %v571_v49  ;;  %vm693_vm14 = vcmp.gt.f32.partialorder %v571_v49, 0.0  ;;  %v823_v9 = vsel %vm695_vm15, %v579_v52, %v759_v62 }
 0x128   :  { %v573_v58 = vpop.f32.mrf.mxu0  ;;  %2034 = vmatprep.mubr.bf16.mxu1 %v861_v54 }
 0x129   :  { %vm696_vm13 = vcmp.gt.f32.partialorder %v582_v56, 0.0  ;;  %v760_v60 = vmul.f32 0.01, %v582_v56  ;;  %v574_v61 = vadd.f32 %v2302_v43, %v573_v58  ;;  %2035 = vmatmul.mubr.bf16.gmra.mxu1 %v862_v57  ;;  %v821_v4 = vsel %vm693_vm14, %v571_v49, %v757_v59 }
 0x12a   :  { %v1964_v63 = vpop.f32.mrf.mxu0 }
 0x12b   :  { %vm694_vm0 = vcmp.gt.f32.partialorder %v574_v61, 0.0  ;;  %v758_v0 = vmul.f32 0.01, %v574_v61  ;;  %v824_v2 = vsel %vm696_vm13, %v582_v56, %v760_v60  ;;  %v595_v6 = vadd.f32 %v1964_v63, %v2302_v43 }
 0x12c   :  { %v586_v1 = vpop.f32.mrf.mxu0  ;;  %v864_v11 = vpack.c.bf16 %v824_v2, %v823_v9 }
 0x12d   :  { %v587_v3 = vadd.f32 %v2302_v43, %v586_v1  ;;  %v822_v5 = vsel %vm694_vm0, %v574_v61, %v758_v0  ;;  %v763_v16 = vmul.f32 0.01, %v595_v6  ;;  %vm699_vm3 = vcmp.gt.f32.partialorder %v595_v6, 0.0 }
 0x12e   :  { %v1965_v7 = vpop.f32.mrf.mxu0  ;;  %v863_v8 = vpack.c.bf16 %v822_v5, %v821_v4 }
 0x12f   :  { %v598_v10 = vadd.f32 %v1965_v7, %v2302_v43  ;;  %v761_v13 = vmul.f32 0.01, %v587_v3  ;;  %vm697_vm2 = vcmp.gt.f32.partialorder %v587_v3, 0.0  ;;  %v827_v27 = vsel %vm699_vm3, %v595_v6, %v763_v16 }
 0x130   :  { %v589_v12 = vpop.f32.mrf.mxu0  ;;  %2038 = vmatprep.mubr.bf16.mxu1 %v863_v8 }
 0x131   :  { %vm700_vm1 = vcmp.gt.f32.partialorder %v598_v10, 0.0  ;;  %v764_v14 = vmul.f32 0.01, %v598_v10  ;;  %v590_v15 = vadd.f32 %v2302_v43, %v589_v12  ;;  %2039 = vmatmul.mubr.bf16.gmra.mxu1 %v864_v11  ;;  %v825_v22 = vsel %vm697_vm2, %v587_v3, %v761_v13 }
 0x132   :  { %v1968_v17 = vpop.f32.mrf.mxu0 }
 0x133   :  { %vm698_vm4 = vcmp.gt.f32.partialorder %v590_v15, 0.0  ;;  %v762_v18 = vmul.f32 0.01, %v590_v15  ;;  %v828_v20 = vsel %vm700_vm1, %v598_v10, %v764_v14  ;;  %v611_v24 = vadd.f32 %v1968_v17, %v2302_v43 }
 0x134   :  { %v602_v19 = vpop.f32.mrf.mxu0  ;;  %v866_v29 = vpack.c.bf16 %v828_v20, %v827_v27  ;;  %v2378_v20 = vld [vmem:[%s2834_s3 + $0x2] ss:$0 sm:$0xff] }
 0x135   :  { %v603_v21 = vadd.f32 %v2302_v43, %v602_v19  ;;  %v826_v23 = vsel %vm698_vm4, %v590_v15, %v762_v18  ;;  %v767_v34 = vmul.f32 0.01, %v611_v24  ;;  %vm703_vm7 = vcmp.gt.f32.partialorder %v611_v24, 0.0  ;;  %v2371_v15 = vld [vmem:[%s2834_s3 + $0x1] ss:$0 sm:$0xff] }
 0x136   :  { %v1969_v25 = vpop.f32.mrf.mxu0  ;;  %v865_v26 = vpack.c.bf16 %v826_v23, %v825_v22 }
 0x137   :  { %v614_v28 = vadd.f32 %v1969_v25, %v2302_v43  ;;  %v765_v31 = vmul.f32 0.01, %v603_v21  ;;  %vm701_vm6 = vcmp.gt.f32.partialorder %v603_v21, 0.0  ;;  %v831_v46 = vsel %vm703_vm7, %v611_v24, %v767_v34 }
 0x138   :  { %v605_v30 = vpop.f32.mrf.mxu0  ;;  %2042 = vmatprep.mubr.bf16.mxu1 %v865_v26 }
 0x139   :  { %vm704_vm5 = vcmp.gt.f32.partialorder %v614_v28, 0.0  ;;  %v768_v32 = vmul.f32 0.01, %v614_v28  ;;  %v606_v33 = vadd.f32 %v2302_v43, %v605_v30  ;;  %2043 = vmatmul.mubr.bf16.gmra.mxu1 %v866_v29  ;;  %v829_v40 = vsel %vm701_vm6, %v603_v21, %v765_v31 }
 0x13a   :  { %v1972_v35 = vpop.f32.mrf.mxu0 }
 0x13b   :  { %vm702_vm8 = vcmp.gt.f32.partialorder %v606_v33, 0.0  ;;  %v766_v36 = vmul.f32 0.01, %v606_v33  ;;  %v832_v38 = vsel %vm704_vm5, %v614_v28, %v768_v32  ;;  %v627_v42 = vadd.f32 %v1972_v35, %v2302_v43 }
 0x13c   :  { %v618_v37 = vpop.f32.mrf.mxu0  ;;  %v868_v48 = vpack.c.bf16 %v832_v38, %v831_v46 }
 0x13d   :  { %v619_v39 = vadd.f32 %v2302_v43, %v618_v37  ;;  %v830_v41 = vsel %vm702_vm8, %v606_v33, %v766_v36  ;;  %v771_v53 = vmul.f32 0.01, %v627_v42  ;;  %vm707_vm11 = vcmp.gt.f32.partialorder %v627_v42, 0.0 }
 0x13e   :  { %v1973_v44 = vpop.f32.mrf.mxu0  ;;  %v867_v45 = vpack.c.bf16 %v830_v41, %v829_v40 }
 0x13f   :  { %v630_v47 = vadd.f32 %v1973_v44, %v2302_v43  ;;  %v769_v50 = vmul.f32 0.01, %v619_v39  ;;  %vm705_vm10 = vcmp.gt.f32.partialorder %v619_v39, 0.0  ;;  %v835_v0 = vsel %vm707_vm11, %v627_v42, %v771_v53 }
 0x140   :  { %v621_v49 = vpop.f32.mrf.mxu0  ;;  %2046 = vmatprep.mubr.bf16.mxu1 %v867_v45 }
 0x141   :  { %vm708_vm9 = vcmp.gt.f32.partialorder %v630_v47, 0.0  ;;  %v772_v51 = vmul.f32 0.01, %v630_v47  ;;  %v622_v52 = vadd.f32 %v2302_v43, %v621_v49  ;;  %2047 = vmatmul.mubr.bf16.gmra.mxu1 %v868_v48  ;;  %v833_v59 = vsel %vm705_vm10, %v619_v39, %v769_v50 }
 0x142   :  { %v1976_v54 = vpop.f32.mrf.mxu0 }
 0x143   :  { %vm706_vm12 = vcmp.gt.f32.partialorder %v622_v52, 0.0  ;;  %v770_v55 = vmul.f32 0.01, %v622_v52  ;;  %v836_v57 = vsel %vm708_vm9, %v630_v47, %v772_v51  ;;  %v643_v61 = vadd.f32 %v1976_v54, %v2302_v43 }
 0x144   :  { %v634_v56 = vpop.f32.mrf.mxu0  ;;  %v870_v2 = vpack.c.bf16 %v836_v57, %v835_v0 }
 0x145   :  { %v635_v58 = vadd.f32 %v2302_v43, %v634_v56  ;;  %v834_v60 = vsel %vm706_vm12, %v622_v52, %v770_v55  ;;  %v775_v7 = vmul.f32 0.01, %v643_v61  ;;  %vm711_vm15 = vcmp.gt.f32.partialorder %v643_v61, 0.0 }
 0x146   :  { %v1977_v62 = vpop.f32.mrf.mxu0  ;;  %v869_v63 = vpack.c.bf16 %v834_v60, %v833_v59 }
 0x147   :  { %v646_v1 = vadd.f32 %v1977_v62, %v2302_v43  ;;  %v773_v4 = vmul.f32 0.01, %v635_v58  ;;  %vm709_vm14 = vcmp.gt.f32.partialorder %v635_v58, 0.0  ;;  %v839_v13 = vsel %vm711_vm15, %v643_v61, %v775_v7 }
 0x148   :  { %v637_v3 = vpop.f32.mrf.mxu0  ;;  %2050 = vmatprep.mubr.bf16.mxu1 %v869_v63 }
 0x149   :  { %vm712_vm13 = vcmp.gt.f32.partialorder %v646_v1, 0.0  ;;  %v776_v5 = vmul.f32 0.01, %v646_v1  ;;  %v638_v6 = vadd.f32 %v2302_v43, %v637_v3  ;;  %2051 = vmatmul.mubr.bf16.gmra.mxu1 %v870_v2  ;;  %v837_v10 = vsel %vm709_vm14, %v635_v58, %v773_v4 }
 0x14b   :  { %vm710_vm0 = vcmp.gt.f32.partialorder %v638_v6, 0.0  ;;  %v774_v8 = vmul.f32 0.01, %v638_v6  ;;  %v840_v9 = vsel %vm712_vm13, %v646_v1, %v776_v5 }
 0x14c   :  { %v872_v14 = vpack.c.bf16 %v840_v9, %v839_v13 }
 0x14d   :  { %v838_v11 = vsel %vm710_vm0, %v638_v6, %v774_v8 }
 0x14e   :  { %v871_v12 = vpack.c.bf16 %v838_v11, %v837_v10 }
 0x150   :  { %2054 = vmatprep.mubr.bf16.mxu1 %v871_v12 }
 0x151   :  { %2055 = vmatmul.mubr.bf16.gmra.mxu1 %v872_v14 }
 0x199   :  { %v1996_v43 = vpop.f32.mrf.mxu0 }
 0x19a   :  { %v985_v16 = vadd.f32 %v1996_v43, %v2371_v15 }
 0x19b   :  { %v976_v17 = vpop.f32.mrf.mxu0 }
 0x19c   :  { %v1297_v18 = vmul.f32 0.01, %v985_v16  ;;  %v977_v19 = vadd.f32 %v2371_v15, %v976_v17  ;;  %vm1233_vm1 = vcmp.gt.f32.partialorder %v985_v16, 0.0 }
 0x19d   :  { %v1997_v21 = vpop.f32.mrf.mxu0 }
 0x19e   :  { %v1295_v22 = vmul.f32 0.01, %v977_v19  ;;  %v988_v23 = vadd.f32 %v1997_v21, %v2371_v15  ;;  %v1361_v24 = vsel %vm1233_vm1, %v985_v16, %v1297_v18  ;;  %vm1231_vm2 = vcmp.gt.f32.partialorder %v977_v19, 0.0 }
 0x19f   :  { %v979_v25 = vpop.f32.mrf.mxu0  ;;  %v1430_v26 = vmul.f32 %v2378_v20, %v1361_v24 }
 0x1a0   :  { %v1298_v27 = vmul.f32 0.01, %v988_v23  ;;  %v980_v28 = vadd.f32 %v2371_v15, %v979_v25  ;;  %v1359_v29 = vsel %vm1231_vm2, %v977_v19, %v1295_v22  ;;  %vm1234_vm3 = vcmp.gt.f32.partialorder %v988_v23, 0.0 }
 0x1a1   :  { %v2000_v30 = vpop.f32.mrf.mxu1  ;;  %1496 = vadd.xlane.f32.xlu1 %v1430_v26  ;;  %v1428_v31 = vmul.f32 %v2378_v20, %v1359_v29 }
 0x1a2   :  { %v1296_v32 = vmul.f32 0.01, %v980_v28  ;;  %v1001_v33 = vadd.f32 %v2000_v30, %v2371_v15  ;;  %v1362_v34 = vsel %vm1234_vm3, %v988_v23, %v1298_v27  ;;  %vm1232_vm4 = vcmp.gt.f32.partialorder %v980_v28, 0.0 }
 0x1a3   :  { %v992_v35 = vpop.f32.mrf.mxu1  ;;  %1492 = vadd.xlane.f32.xlu0 %v1428_v31  ;;  %v1431_v36 = vmul.f32 %v2378_v20, %v1362_v34 }
 0x1a4   :  { %v1301_v37 = vmul.f32 0.01, %v1001_v33  ;;  %v993_v38 = vadd.f32 %v2371_v15, %v992_v35  ;;  %v1360_v39 = vsel %vm1232_vm4, %v980_v28, %v1296_v32  ;;  %vm1237_vm5 = vcmp.gt.f32.partialorder %v1001_v33, 0.0 }
 0x1a5   :  { %v2001_v40 = vpop.f32.mrf.mxu1  ;;  %1498 = vadd.xlane.f32.xlu1 %v1431_v36  ;;  %v1429_v41 = vmul.f32 %v2378_v20, %v1360_v39 }
 0x1a6   :  { %v1299_v42 = vmul.f32 0.01, %v993_v38  ;;  %v1004_v44 = vadd.f32 %v2001_v40, %v2371_v15  ;;  %v1365_v45 = vsel %vm1237_vm5, %v1001_v33, %v1301_v37  ;;  %vm1235_vm6 = vcmp.gt.f32.partialorder %v993_v38, 0.0 }
 0x1a7   :  { %v995_v46 = vpop.f32.mrf.mxu1  ;;  %1494 = vadd.xlane.f32.xlu0 %v1429_v41  ;;  %v1434_v50 = vmul.f32 %v2378_v20, %v1365_v45 }
 0x1a8   :  { %v1302_v47 = vmul.f32 0.01, %v1004_v44  ;;  %v996_v48 = vadd.f32 %v2371_v15, %v995_v46  ;;  %vm1238_vm7 = vcmp.gt.f32.partialorder %v1004_v44, 0.0  ;;  %v1363_v51 = vsel %vm1235_vm6, %v993_v38, %v1299_v42 }
 0x1a9   :  { %v2004_v49 = vpop.f32.mrf.mxu1  ;;  %v1432_v61 = vmul.f32 %v2378_v20, %v1363_v51 }
 0x1aa   :  { %v1300_v52 = vmul.f32 0.01, %v996_v48  ;;  %v1017_v53 = vadd.f32 %v2004_v49, %v2371_v15  ;;  %v1366_v54 = vsel %vm1238_vm7, %v1004_v44, %v1302_v47  ;;  %vm1236_vm8 = vcmp.gt.f32.partialorder %v996_v48, 0.0 }
 0x1ab   :  { %v1008_v55 = vpop.f32.mrf.mxu1  ;;  %1504 = vadd.xlane.f32.xlu0 %v1434_v50  ;;  %v1435_v56 = vmul.f32 %v2378_v20, %v1366_v54 }
 0x1ac   :  { %v1305_v57 = vmul.f32 0.01, %v1017_v53  ;;  %v1009_v58 = vadd.f32 %v2371_v15, %v1008_v55  ;;  %v1364_v59 = vsel %vm1236_vm8, %v996_v48, %v1300_v52  ;;  %vm1241_vm9 = vcmp.gt.f32.partialorder %v1017_v53, 0.0 }
 0x1ad   :  { %v2005_v60 = vpop.f32.mrf.mxu1  ;;  %1506 = vadd.xlane.f32.xlu1 %v1435_v56  ;;  %v1433_v2 = vmul.f32 %v2378_v20, %v1364_v59 }
 0x1ae   :  { %v1303_v62 = vmul.f32 0.01, %v1009_v58  ;;  %v1020_v63 = vadd.f32 %v2005_v60, %v2371_v15  ;;  %v1369_v0 = vsel %vm1241_vm9, %v1017_v53, %v1305_v57  ;;  %vm1239_vm10 = vcmp.gt.f32.partialorder %v1009_v58, 0.0 }
 0x1af   :  { %v1011_v1 = vpop.f32.mrf.mxu1  ;;  %1500 = vadd.xlane.f32.xlu0 %v1432_v61  ;;  %v1438_v6 = vmul.f32 %v2378_v20, %v1369_v0 }
 0x1b0   :  { %v1306_v3 = vmul.f32 0.01, %v1020_v63  ;;  %v1012_v4 = vadd.f32 %v2371_v15, %v1011_v1  ;;  %vm1242_vm11 = vcmp.gt.f32.partialorder %v1020_v63, 0.0  ;;  %v1367_v7 = vsel %vm1239_vm10, %v1009_v58, %v1303_v62 }
 0x1b1   :  { %v2008_v5 = vpop.f32.mrf.mxu1  ;;  %1502 = vadd.xlane.f32.xlu1 %v1433_v2  ;;  %v1436_v17 = vmul.f32 %v2378_v20, %v1367_v7 }
 0x1b2   :  { %v1304_v8 = vmul.f32 0.01, %v1012_v4  ;;  %v1033_v9 = vadd.f32 %v2008_v5, %v2371_v15  ;;  %v1370_v10 = vsel %vm1242_vm11, %v1020_v63, %v1306_v3  ;;  %vm1240_vm12 = vcmp.gt.f32.partialorder %v1012_v4, 0.0 }
 0x1b3   :  { %v1024_v11 = vpop.f32.mrf.mxu1  ;;  %1512 = vadd.xlane.f32.xlu0 %v1438_v6  ;;  %v1439_v12 = vmul.f32 %v2378_v20, %v1370_v10 }
 0x1b4   :  { %v1309_v13 = vmul.f32 0.01, %v1033_v9  ;;  %v1025_v14 = vadd.f32 %v2371_v15, %v1024_v11  ;;  %v1368_v43 = vsel %vm1240_vm12, %v1012_v4, %v1304_v8  ;;  %vm1245_vm13 = vcmp.gt.f32.partialorder %v1033_v9, 0.0 }
 0x1b5   :  { %v2009_v16 = vpop.f32.mrf.mxu1  ;;  %1514 = vadd.xlane.f32.xlu1 %v1439_v12  ;;  %v1437_v23 = vmul.f32 %v2378_v20, %v1368_v43 }
 0x1b6   :  { %v1307_v18 = vmul.f32 0.01, %v1025_v14  ;;  %v1036_v19 = vadd.f32 %v2009_v16, %v2371_v15  ;;  %v1373_v21 = vsel %vm1245_vm13, %v1033_v9, %v1309_v13  ;;  %vm1243_vm14 = vcmp.gt.f32.partialorder %v1025_v14, 0.0 }
 0x1b7   :  { %v1027_v22 = vpop.f32.mrf.mxu1  ;;  %1508 = vadd.xlane.f32.xlu0 %v1436_v17  ;;  %v1442_v27 = vmul.f32 %v2378_v20, %v1373_v21 }
 0x1b8   :  { %v1310_v24 = vmul.f32 0.01, %v1036_v19  ;;  %v1028_v25 = vadd.f32 %v2371_v15, %v1027_v22  ;;  %vm1246_vm15 = vcmp.gt.f32.partialorder %v1036_v19, 0.0  ;;  %v1371_v28 = vsel %vm1243_vm14, %v1025_v14, %v1307_v18 }
 0x1b9   :  { %v2012_v26 = vpop.f32.mrf.mxu1  ;;  %1510 = vadd.xlane.f32.xlu1 %v1437_v23  ;;  %v1440_v38 = vmul.f32 %v2378_v20, %v1371_v28 }
 0x1ba   :  { %v1308_v29 = vmul.f32 0.01, %v1028_v25  ;;  %v1049_v30 = vadd.f32 %v2012_v26, %v2371_v15  ;;  %v1374_v31 = vsel %vm1246_vm15, %v1036_v19, %v1310_v24  ;;  %vm1244_vm0 = vcmp.gt.f32.partialorder %v1028_v25, 0.0 }
 0x1bb   :  { %v1040_v32 = vpop.f32.mrf.mxu1  ;;  %1520 = vadd.xlane.f32.xlu0 %v1442_v27  ;;  %v1443_v33 = vmul.f32 %v2378_v20, %v1374_v31 }
 0x1bc   :  { %v1313_v34 = vmul.f32 0.01, %v1049_v30  ;;  %v1041_v35 = vadd.f32 %v2371_v15, %v1040_v32  ;;  %v1372_v36 = vsel %vm1244_vm0, %v1028_v25, %v1308_v29  ;;  %vm1249_vm1 = vcmp.gt.f32.partialorder %v1049_v30, 0.0 }
 0x1bd   :  { %v2013_v37 = vpop.f32.mrf.mxu1  ;;  %1522 = vadd.xlane.f32.xlu1 %v1443_v33  ;;  %v1441_v44 = vmul.f32 %v2378_v20, %v1372_v36 }
 0x1be   :  { %v1311_v39 = vmul.f32 0.01, %v1041_v35  ;;  %v1052_v40 = vadd.f32 %v2013_v37, %v2371_v15  ;;  %v1377_v41 = vsel %vm1249_vm1, %v1049_v30, %v1313_v34  ;;  %vm1247_vm2 = vcmp.gt.f32.partialorder %v1041_v35, 0.0 }
 0x1bf   :  { %v1043_v42 = vpop.f32.mrf.mxu1  ;;  %1516 = vadd.xlane.f32.xlu0 %v1440_v38  ;;  %v1446_v48 = vmul.f32 %v2378_v20, %v1377_v41 }
 0x1c0   :  { %v1314_v45 = vmul.f32 0.01, %v1052_v40  ;;  %v1044_v46 = vadd.f32 %v2371_v15, %v1043_v42  ;;  %vm1250_vm3 = vcmp.gt.f32.partialorder %v1052_v40, 0.0  ;;  %v1375_v49 = vsel %vm1247_vm2, %v1041_v35, %v1311_v39 }
 0x1c1   :  { %v2016_v47 = vpop.f32.mrf.mxu1  ;;  %1518 = vadd.xlane.f32.xlu1 %v1441_v44  ;;  %v1444_v59 = vmul.f32 %v2378_v20, %v1375_v49 }
 0x1c2   :  { %v1312_v50 = vmul.f32 0.01, %v1044_v46  ;;  %v1065_v51 = vadd.f32 %v2016_v47, %v2371_v15  ;;  %v1378_v52 = vsel %vm1250_vm3, %v1052_v40, %v1314_v45  ;;  %vm1248_vm4 = vcmp.gt.f32.partialorder %v1044_v46, 0.0 }
 0x1c3   :  { %v1056_v53 = vpop.f32.mrf.mxu1  ;;  %1528 = vadd.xlane.f32.xlu0 %v1446_v48  ;;  %v1447_v54 = vmul.f32 %v2378_v20, %v1378_v52 }
 0x1c4   :  { %v1317_v55 = vmul.f32 0.01, %v1065_v51  ;;  %v1057_v56 = vadd.f32 %v2371_v15, %v1056_v53  ;;  %v1376_v57 = vsel %vm1248_vm4, %v1044_v46, %v1312_v50  ;;  %vm1253_vm5 = vcmp.gt.f32.partialorder %v1065_v51, 0.0 }
 0x1c5   :  { %v2017_v58 = vpop.f32.mrf.mxu1  ;;  %1530 = vadd.xlane.f32.xlu1 %v1447_v54  ;;  %v1445_v0 = vmul.f32 %v2378_v20, %v1376_v57 }
 0x1c6   :  { %v1315_v60 = vmul.f32 0.01, %v1057_v56  ;;  %v1068_v61 = vadd.f32 %v2017_v58, %v2371_v15  ;;  %v1381_v62 = vsel %vm1253_vm5, %v1065_v51, %v1317_v55  ;;  %vm1251_vm6 = vcmp.gt.f32.partialorder %v1057_v56, 0.0 }
 0x1c7   :  { %v1059_v63 = vpop.f32.mrf.mxu1  ;;  %1524 = vadd.xlane.f32.xlu0 %v1444_v59  ;;  %v1450_v4 = vmul.f32 %v2378_v20, %v1381_v62 }
 0x1c8   :  { %v1318_v1 = vmul.f32 0.01, %v1068_v61  ;;  %v1060_v2 = vadd.f32 %v2371_v15, %v1059_v63  ;;  %vm1254_vm7 = vcmp.gt.f32.partialorder %v1068_v61, 0.0  ;;  %v1379_v5 = vsel %vm1251_vm6, %v1057_v56, %v1315_v60 }
 0x1c9   :  { %v2020_v3 = vpop.f32.mrf.mxu1  ;;  %1526 = vadd.xlane.f32.xlu1 %v1445_v0  ;;  %v1448_v43 = vmul.f32 %v2378_v20, %v1379_v5 }
 0x1ca   :  { %v1316_v6 = vmul.f32 0.01, %v1060_v2  ;;  %v1081_v7 = vadd.f32 %v2020_v3, %v2371_v15  ;;  %v1382_v8 = vsel %vm1254_vm7, %v1068_v61, %v1318_v1  ;;  %vm1252_vm8 = vcmp.gt.f32.partialorder %v1060_v2, 0.0 }
 0x1cb   :  { %v1072_v9 = vpop.f32.mrf.mxu1  ;;  %1536 = vadd.xlane.f32.xlu0 %v1450_v4  ;;  %v1451_v10 = vmul.f32 %v2378_v20, %v1382_v8 }
 0x1cc   :  { %v1321_v11 = vmul.f32 0.01, %v1081_v7  ;;  %v1073_v12 = vadd.f32 %v2371_v15, %v1072_v9  ;;  %v1380_v13 = vsel %vm1252_vm8, %v1060_v2, %v1316_v6  ;;  %vm1257_vm9 = vcmp.gt.f32.partialorder %v1081_v7, 0.0 }
 0x1cd   :  { %v2021_v14 = vpop.f32.mrf.mxu1  ;;  %1538 = vadd.xlane.f32.xlu1 %v1451_v10  ;;  %v1449_v21 = vmul.f32 %v2378_v20, %v1380_v13 }
 0x1ce   :  { %v1319_v16 = vmul.f32 0.01, %v1073_v12  ;;  %v1084_v17 = vadd.f32 %v2021_v14, %v2371_v15  ;;  %v1385_v18 = vsel %vm1257_vm9, %v1081_v7, %v1321_v11  ;;  %vm1255_vm10 = vcmp.gt.f32.partialorder %v1073_v12, 0.0 }
 0x1cf   :  { %v1075_v19 = vpop.f32.mrf.mxu1  ;;  %1532 = vadd.xlane.f32.xlu0 %v1448_v43  ;;  %v1454_v25 = vmul.f32 %v2378_v20, %v1385_v18 }
 0x1d0   :  { %v1322_v22 = vmul.f32 0.01, %v1084_v17  ;;  %v1076_v23 = vadd.f32 %v2371_v15, %v1075_v19  ;;  %vm1258_vm11 = vcmp.gt.f32.partialorder %v1084_v17, 0.0  ;;  %v1383_v26 = vsel %vm1255_vm10, %v1073_v12, %v1319_v16 }
 0x1d1   :  { %v2024_v24 = vpop.f32.mrf.mxu1  ;;  %1534 = vadd.xlane.f32.xlu1 %v1449_v21  ;;  %v1452_v36 = vmul.f32 %v2378_v20, %v1383_v26 }
 0x1d2   :  { %v1320_v27 = vmul.f32 0.01, %v1076_v23  ;;  %v1097_v28 = vadd.f32 %v2024_v24, %v2371_v15  ;;  %v1386_v29 = vsel %vm1258_vm11, %v1084_v17, %v1322_v22  ;;  %vm1256_vm12 = vcmp.gt.f32.partialorder %v1076_v23, 0.0 }
 0x1d3   :  { %v1088_v30 = vpop.f32.mrf.mxu1  ;;  %1544 = vadd.xlane.f32.xlu0 %v1454_v25  ;;  %v1455_v31 = vmul.f32 %v2378_v20, %v1386_v29 }
 0x1d4   :  { %v1325_v32 = vmul.f32 0.01, %v1097_v28  ;;  %v1089_v33 = vadd.f32 %v2371_v15, %v1088_v30  ;;  %v1384_v34 = vsel %vm1256_vm12, %v1076_v23, %v1320_v27  ;;  %vm1261_vm13 = vcmp.gt.f32.partialorder %v1097_v28, 0.0 }
 0x1d5   :  { %v2025_v35 = vpop.f32.mrf.mxu1  ;;  %1546 = vadd.xlane.f32.xlu1 %v1455_v31  ;;  %v1453_v41 = vmul.f32 %v2378_v20, %v1384_v34 }
 0x1d6   :  { %v1323_v37 = vmul.f32 0.01, %v1089_v33  ;;  %v1100_v38 = vadd.f32 %v2025_v35, %v2371_v15  ;;  %v1389_v39 = vsel %vm1261_vm13, %v1097_v28, %v1325_v32  ;;  %vm1259_vm14 = vcmp.gt.f32.partialorder %v1089_v33, 0.0 }
 0x1d7   :  { %v1091_v40 = vpop.f32.mrf.mxu1  ;;  %1540 = vadd.xlane.f32.xlu0 %v1452_v36  ;;  %v1458_v46 = vmul.f32 %v2378_v20, %v1389_v39 }
 0x1d8   :  { %v1326_v42 = vmul.f32 0.01, %v1100_v38  ;;  %v1092_v44 = vadd.f32 %v2371_v15, %v1091_v40  ;;  %vm1262_vm15 = vcmp.gt.f32.partialorder %v1100_v38, 0.0  ;;  %v1387_v47 = vsel %vm1259_vm14, %v1089_v33, %v1323_v37 }
 0x1d9   :  { %v2028_v45 = vpop.f32.mrf.mxu1  ;;  %1542 = vadd.xlane.f32.xlu1 %v1453_v41  ;;  %v1456_v57 = vmul.f32 %v2378_v20, %v1387_v47 }
 0x1da   :  { %v1324_v48 = vmul.f32 0.01, %v1092_v44  ;;  %v1113_v49 = vadd.f32 %v2028_v45, %v2371_v15  ;;  %v1390_v50 = vsel %vm1262_vm15, %v1100_v38, %v1326_v42  ;;  %vm1260_vm0 = vcmp.gt.f32.partialorder %v1092_v44, 0.0 }
 0x1db   :  { %v1104_v51 = vpop.f32.mrf.mxu1  ;;  %1552 = vadd.xlane.f32.xlu0 %v1458_v46  ;;  %v1459_v52 = vmul.f32 %v2378_v20, %v1390_v50 }
 0x1dc   :  { %v1329_v53 = vmul.f32 0.01, %v1113_v49  ;;  %v1105_v54 = vadd.f32 %v2371_v15, %v1104_v51  ;;  %v1388_v55 = vsel %vm1260_vm0, %v1092_v44, %v1324_v48  ;;  %vm1265_vm1 = vcmp.gt.f32.partialorder %v1113_v49, 0.0 }
 0x1dd   :  { %v2029_v56 = vpop.f32.mrf.mxu1  ;;  %1554 = vadd.xlane.f32.xlu1 %v1459_v52  ;;  %v1457_v62 = vmul.f32 %v2378_v20, %v1388_v55 }
 0x1de   :  { %v1327_v58 = vmul.f32 0.01, %v1105_v54  ;;  %v1116_v59 = vadd.f32 %v2029_v56, %v2371_v15  ;;  %v1393_v60 = vsel %vm1265_vm1, %v1113_v49, %v1329_v53  ;;  %vm1263_vm2 = vcmp.gt.f32.partialorder %v1105_v54, 0.0 }
 0x1df   :  { %v1107_v61 = vpop.f32.mrf.mxu1  ;;  %1548 = vadd.xlane.f32.xlu0 %v1456_v57  ;;  %v1462_v2 = vmul.f32 %v2378_v20, %v1393_v60 }
 0x1e0   :  { %v1330_v63 = vmul.f32 0.01, %v1116_v59  ;;  %v1108_v0 = vadd.f32 %v2371_v15, %v1107_v61  ;;  %vm1266_vm3 = vcmp.gt.f32.partialorder %v1116_v59, 0.0  ;;  %v1391_v3 = vsel %vm1263_vm2, %v1105_v54, %v1327_v58 }
 0x1e1   :  { %v2032_v1 = vpop.f32.mrf.mxu1  ;;  %1550 = vadd.xlane.f32.xlu1 %v1457_v62  ;;  %v1460_v13 = vmul.f32 %v2378_v20, %v1391_v3 }
 0x1e2   :  { %v1328_v4 = vmul.f32 0.01, %v1108_v0  ;;  %v1129_v5 = vadd.f32 %v2032_v1, %v2371_v15  ;;  %v1394_v6 = vsel %vm1266_vm3, %v1116_v59, %v1330_v63  ;;  %vm1264_vm4 = vcmp.gt.f32.partialorder %v1108_v0, 0.0 }
 0x1e3   :  { %v1120_v7 = vpop.f32.mrf.mxu1  ;;  %1560 = vadd.xlane.f32.xlu0 %v1462_v2  ;;  %v1463_v8 = vmul.f32 %v2378_v20, %v1394_v6 }
 0x1e4   :  { %v1333_v9 = vmul.f32 0.01, %v1129_v5  ;;  %v1121_v10 = vadd.f32 %v2371_v15, %v1120_v7  ;;  %v1392_v11 = vsel %vm1264_vm4, %v1108_v0, %v1328_v4  ;;  %vm1269_vm5 = vcmp.gt.f32.partialorder %v1129_v5, 0.0 }
 0x1e5   :  { %v2033_v12 = vpop.f32.mrf.mxu1  ;;  %1562 = vadd.xlane.f32.xlu1 %v1463_v8  ;;  %v1461_v18 = vmul.f32 %v2378_v20, %v1392_v11 }
 0x1e6   :  { %v1331_v14 = vmul.f32 0.01, %v1121_v10  ;;  %v1132_v43 = vadd.f32 %v2033_v12, %v2371_v15  ;;  %v1397_v16 = vsel %vm1269_vm5, %v1129_v5, %v1333_v9  ;;  %vm1267_vm6 = vcmp.gt.f32.partialorder %v1121_v10, 0.0 }
 0x1e7   :  { %v1123_v17 = vpop.f32.mrf.mxu1  ;;  %1556 = vadd.xlane.f32.xlu0 %v1460_v13  ;;  %v1466_v23 = vmul.f32 %v2378_v20, %v1397_v16 }
 0x1e8   :  { %v1334_v19 = vmul.f32 0.01, %v1132_v43  ;;  %v1124_v21 = vadd.f32 %v2371_v15, %v1123_v17  ;;  %vm1270_vm7 = vcmp.gt.f32.partialorder %v1132_v43, 0.0  ;;  %v1395_v24 = vsel %vm1267_vm6, %v1121_v10, %v1331_v14 }
 0x1e9   :  { %v2036_v22 = vpop.f32.mrf.mxu1  ;;  %1558 = vadd.xlane.f32.xlu1 %v1461_v18  ;;  %v1464_v34 = vmul.f32 %v2378_v20, %v1395_v24 }
 0x1ea   :  { %v1332_v25 = vmul.f32 0.01, %v1124_v21  ;;  %v1145_v26 = vadd.f32 %v2036_v22, %v2371_v15  ;;  %v1398_v27 = vsel %vm1270_vm7, %v1132_v43, %v1334_v19  ;;  %vm1268_vm8 = vcmp.gt.f32.partialorder %v1124_v21, 0.0 }
 0x1eb   :  { %v1136_v28 = vpop.f32.mrf.mxu1  ;;  %1568 = vadd.xlane.f32.xlu0 %v1466_v23  ;;  %v1467_v29 = vmul.f32 %v2378_v20, %v1398_v27 }
 0x1ec   :  { %v1337_v30 = vmul.f32 0.01, %v1145_v26  ;;  %v1137_v31 = vadd.f32 %v2371_v15, %v1136_v28  ;;  %v1396_v32 = vsel %vm1268_vm8, %v1124_v21, %v1332_v25  ;;  %vm1273_vm9 = vcmp.gt.f32.partialorder %v1145_v26, 0.0 }
 0x1ed   :  { %v2037_v33 = vpop.f32.mrf.mxu1  ;;  %1570 = vadd.xlane.f32.xlu1 %v1467_v29  ;;  %v1465_v39 = vmul.f32 %v2378_v20, %v1396_v32 }
 0x1ee   :  { %v1335_v35 = vmul.f32 0.01, %v1137_v31  ;;  %v1148_v36 = vadd.f32 %v2037_v33, %v2371_v15  ;;  %v1401_v37 = vsel %vm1273_vm9, %v1145_v26, %v1337_v30  ;;  %vm1271_vm10 = vcmp.gt.f32.partialorder %v1137_v31, 0.0 }
 0x1ef   :  { %v1139_v38 = vpop.f32.mrf.mxu1  ;;  %1564 = vadd.xlane.f32.xlu0 %v1464_v34  ;;  %v1470_v44 = vmul.f32 %v2378_v20, %v1401_v37 }
 0x1f0   :  { %v1338_v40 = vmul.f32 0.01, %v1148_v36  ;;  %v1140_v41 = vadd.f32 %v2371_v15, %v1139_v38  ;;  %vm1274_vm11 = vcmp.gt.f32.partialorder %v1148_v36, 0.0  ;;  %v1399_v45 = vsel %vm1271_vm10, %v1137_v31, %v1335_v35 }
 0x1f1   :  { %v2040_v42 = vpop.f32.mrf.mxu1  ;;  %1566 = vadd.xlane.f32.xlu1 %v1465_v39  ;;  %v1468_v55 = vmul.f32 %v2378_v20, %v1399_v45 }
 0x1f2   :  { %v1336_v46 = vmul.f32 0.01, %v1140_v41  ;;  %v1161_v47 = vadd.f32 %v2040_v42, %v2371_v15  ;;  %v1402_v48 = vsel %vm1274_vm11, %v1148_v36, %v1338_v40  ;;  %vm1272_vm12 = vcmp.gt.f32.partialorder %v1140_v41, 0.0 }
 0x1f3   :  { %v1152_v49 = vpop.f32.mrf.mxu1  ;;  %1576 = vadd.xlane.f32.xlu0 %v1470_v44  ;;  %v1471_v50 = vmul.f32 %v2378_v20, %v1402_v48 }
 0x1f4   :  { %v1341_v51 = vmul.f32 0.01, %v1161_v47  ;;  %v1153_v52 = vadd.f32 %v2371_v15, %v1152_v49  ;;  %v1400_v53 = vsel %vm1272_vm12, %v1140_v41, %v1336_v46  ;;  %vm1277_vm13 = vcmp.gt.f32.partialorder %v1161_v47, 0.0 }
 0x1f5   :  { %v2041_v54 = vpop.f32.mrf.mxu1  ;;  %1578 = vadd.xlane.f32.xlu1 %v1471_v50  ;;  %v1469_v60 = vmul.f32 %v2378_v20, %v1400_v53 }
 0x1f6   :  { %v1339_v56 = vmul.f32 0.01, %v1153_v52  ;;  %v1164_v57 = vadd.f32 %v2041_v54, %v2371_v15  ;;  %v1405_v58 = vsel %vm1277_vm13, %v1161_v47, %v1341_v51  ;;  %vm1275_vm14 = vcmp.gt.f32.partialorder %v1153_v52, 0.0 }
 0x1f7   :  { %v1155_v59 = vpop.f32.mrf.mxu1  ;;  %1572 = vadd.xlane.f32.xlu0 %v1468_v55  ;;  %v1474_v0 = vmul.f32 %v2378_v20, %v1405_v58 }
 0x1f8   :  { %v1342_v61 = vmul.f32 0.01, %v1164_v57  ;;  %v1156_v62 = vadd.f32 %v2371_v15, %v1155_v59  ;;  %vm1278_vm15 = vcmp.gt.f32.partialorder %v1164_v57, 0.0  ;;  %v1403_v1 = vsel %vm1275_vm14, %v1153_v52, %v1339_v56 }
 0x1f9   :  { %v2044_v63 = vpop.f32.mrf.mxu1  ;;  %1574 = vadd.xlane.f32.xlu1 %v1469_v60  ;;  %v1472_v11 = vmul.f32 %v2378_v20, %v1403_v1 }
 0x1fa   :  { %v1340_v2 = vmul.f32 0.01, %v1156_v62  ;;  %v1177_v3 = vadd.f32 %v2044_v63, %v2371_v15  ;;  %v1406_v4 = vsel %vm1278_vm15, %v1164_v57, %v1342_v61  ;;  %vm1276_vm0 = vcmp.gt.f32.partialorder %v1156_v62, 0.0 }
 0x1fb   :  { %v1168_v5 = vpop.f32.mrf.mxu1  ;;  %1584 = vadd.xlane.f32.xlu0 %v1474_v0  ;;  %v1475_v6 = vmul.f32 %v2378_v20, %v1406_v4 }
 0x1fc   :  { %v1345_v7 = vmul.f32 0.01, %v1177_v3  ;;  %v1169_v8 = vadd.f32 %v2371_v15, %v1168_v5  ;;  %v1404_v9 = vsel %vm1276_vm0, %v1156_v62, %v1340_v2  ;;  %vm1281_vm1 = vcmp.gt.f32.partialorder %v1177_v3, 0.0 }
 0x1fd   :  { %v2045_v10 = vpop.f32.mrf.mxu1  ;;  %1586 = vadd.xlane.f32.xlu1 %v1475_v6  ;;  %v1473_v16 = vmul.f32 %v2378_v20, %v1404_v9 }
 0x1fe   :  { %v1343_v12 = vmul.f32 0.01, %v1169_v8  ;;  %v1180_v13 = vadd.f32 %v2045_v10, %v2371_v15  ;;  %v1409_v14 = vsel %vm1281_vm1, %v1177_v3, %v1345_v7  ;;  %vm1279_vm2 = vcmp.gt.f32.partialorder %v1169_v8, 0.0 }
 0x1ff   :  { %v1171_v43 = vpop.f32.mrf.mxu1  ;;  %1580 = vadd.xlane.f32.xlu0 %v1472_v11  ;;  %v1478_v21 = vmul.f32 %v2378_v20, %v1409_v14  ;;  %vm1689_vm1 = vcmask 7168  }
 0x200   :  { %v1346_v17 = vmul.f32 0.01, %v1180_v13  ;;  %v1172_v18 = vadd.f32 %v2371_v15, %v1171_v43  ;;  %vm1282_vm3 = vcmp.gt.f32.partialorder %v1180_v13, 0.0  ;;  %v1407_v22 = vsel %vm1279_vm2, %v1169_v8, %v1343_v12 }
 0x201   :  { %v2048_v19 = vpop.f32.mrf.mxu1  ;;  %1582 = vadd.xlane.f32.xlu1 %v1473_v16  ;;  %v1476_v32 = vmul.f32 %v2378_v20, %v1407_v22 }
 0x202   :  { %v1344_v23 = vmul.f32 0.01, %v1172_v18  ;;  %v1193_v24 = vadd.f32 %v2048_v19, %v2371_v15  ;;  %v1410_v25 = vsel %vm1282_vm3, %v1180_v13, %v1346_v17  ;;  %vm1280_vm4 = vcmp.gt.f32.partialorder %v1172_v18, 0.0 }
 0x203   :  { %v1184_v26 = vpop.f32.mrf.mxu1  ;;  %1592 = vadd.xlane.f32.xlu0 %v1478_v21  ;;  %v1479_v27 = vmul.f32 %v2378_v20, %v1410_v25  ;;  %v2509_v25 = vld [vmem:[%s2834_s3 + $0x3] ss:$0 sm:$0xff] }
 0x204   :  { %v1349_v28 = vmul.f32 0.01, %v1193_v24  ;;  %v1185_v29 = vadd.f32 %v2371_v15, %v1184_v26  ;;  %v1408_v30 = vsel %vm1280_vm4, %v1172_v18, %v1344_v23  ;;  %vm1285_vm5 = vcmp.gt.f32.partialorder %v1193_v24, 0.0 }
 0x205   :  { %v2049_v31 = vpop.f32.mrf.mxu1  ;;  %1594 = vadd.xlane.f32.xlu1 %v1479_v27  ;;  %v1477_v37 = vmul.f32 %v2378_v20, %v1408_v30 }
 0x206   :  { %v1347_v33 = vmul.f32 0.01, %v1185_v29  ;;  %v1196_v34 = vadd.f32 %v2049_v31, %v2371_v15  ;;  %v1413_v35 = vsel %vm1285_vm5, %v1193_v24, %v1349_v28  ;;  %vm1283_vm6 = vcmp.gt.f32.partialorder %v1185_v29, 0.0 }
 0x207   :  { %v1187_v36 = vpop.f32.mrf.mxu1  ;;  %1588 = vadd.xlane.f32.xlu0 %v1476_v32  ;;  %v1482_v41 = vmul.f32 %v2378_v20, %v1413_v35 }
 0x208   :  { %v1350_v38 = vmul.f32 0.01, %v1196_v34  ;;  %v1188_v39 = vadd.f32 %v2371_v15, %v1187_v36  ;;  %vm1286_vm7 = vcmp.gt.f32.partialorder %v1196_v34, 0.0  ;;  %v1411_v42 = vsel %vm1283_vm6, %v1185_v29, %v1347_v33 }
 0x209   :  { %v2052_v40 = vpop.f32.mrf.mxu1  ;;  %1590 = vadd.xlane.f32.xlu1 %v1477_v37  ;;  %v1480_v53 = vmul.f32 %v2378_v20, %v1411_v42 }
 0x20a   :  { %v1348_v44 = vmul.f32 0.01, %v1188_v39  ;;  %v1209_v45 = vadd.f32 %v2052_v40, %v2371_v15  ;;  %v1414_v46 = vsel %vm1286_vm7, %v1196_v34, %v1350_v38  ;;  %vm1284_vm8 = vcmp.gt.f32.partialorder %v1188_v39, 0.0 }
 0x20b   :  { %v1200_v47 = vpop.f32.mrf.mxu1  ;;  %1600 = vadd.xlane.f32.xlu0 %v1482_v41  ;;  %v1483_v48 = vmul.f32 %v2378_v20, %v1414_v46 }
 0x20c   :  { %v1353_v49 = vmul.f32 0.01, %v1209_v45  ;;  %v1201_v50 = vadd.f32 %v2371_v15, %v1200_v47  ;;  %v1412_v51 = vsel %vm1284_vm8, %v1188_v39, %v1348_v44  ;;  %vm1289_vm9 = vcmp.gt.f32.partialorder %v1209_v45, 0.0 }
 0x20d   :  { %v2053_v52 = vpop.f32.mrf.mxu1  ;;  %1602 = vadd.xlane.f32.xlu1 %v1483_v48  ;;  %v1481_v58 = vmul.f32 %v2378_v20, %v1412_v51 }
 0x20e   :  { %v1351_v54 = vmul.f32 0.01, %v1201_v50  ;;  %v1212_v55 = vadd.f32 %v2053_v52, %v2371_v15  ;;  %v1417_v56 = vsel %vm1289_vm9, %v1209_v45, %v1353_v49  ;;  %vm1287_vm10 = vcmp.gt.f32.partialorder %v1201_v50, 0.0 }
 0x20f   :  { %v1203_v57 = vpop.f32.mrf.mxu1  ;;  %1596 = vadd.xlane.f32.xlu0 %v1480_v53  ;;  %v1486_v62 = vmul.f32 %v2378_v20, %v1417_v56 }
 0x210   :  { %v1354_v59 = vmul.f32 0.01, %v1212_v55  ;;  %v1204_v60 = vadd.f32 %v2371_v15, %v1203_v57  ;;  %vm1290_vm11 = vcmp.gt.f32.partialorder %v1212_v55, 0.0  ;;  %v1415_v63 = vsel %vm1287_vm10, %v1201_v50, %v1351_v54 }
 0x211   :  { %v2056_v61 = vpop.f32.mrf.mxu1  ;;  %1598 = vadd.xlane.f32.xlu1 %v1481_v58  ;;  %v1484_v8 = vmul.f32 %v2378_v20, %v1415_v63 }
 0x212   :  { %v1352_v0 = vmul.f32 0.01, %v1204_v60  ;;  %v1225_v1 = vadd.f32 %v2056_v61, %v2371_v15  ;;  %v1418_v2 = vsel %vm1290_vm11, %v1212_v55, %v1354_v59  ;;  %vm1288_vm12 = vcmp.gt.f32.partialorder %v1204_v60, 0.0 }
 0x213   :  { %v1216_v3 = vpop.f32.mrf.mxu1  ;;  %1608 = vadd.xlane.f32.xlu0 %v1486_v62  ;;  %v1487_v4 = vmul.f32 %v2378_v20, %v1418_v2 }
 0x214   :  { %v1217_v5 = vadd.f32 %v2371_v15, %v1216_v3  ;;  %v1416_v6 = vsel %vm1288_vm12, %v1204_v60, %v1352_v0  ;;  %v1357_v9 = vmul.f32 0.01, %v1225_v1  ;;  %vm1293_vm14 = vcmp.gt.f32.partialorder %v1225_v1, 0.0 }
 0x215   :  { %v2057_v7 = vpop.f32.mrf.mxu1  ;;  %1610 = vadd.xlane.f32.xlu1 %v1487_v4  ;;  %v1485_v13 = vmul.f32 %v2378_v20, %v1416_v6 }
 0x216   :  { %v1355_v10 = vmul.f32 0.01, %v1217_v5  ;;  %v1228_v11 = vadd.f32 %v2057_v7, %v2371_v15  ;;  %vm1291_vm13 = vcmp.gt.f32.partialorder %v1217_v5, 0.0  ;;  %v1421_v19 = vsel %vm1293_vm14, %v1225_v1, %v1357_v9 }
 0x217   :  { %v1219_v12 = vpop.f32.mrf.mxu1  ;;  %1604 = vadd.xlane.f32.xlu0 %v1484_v8  ;;  %v1490_v23 = vmul.f32 %v2378_v20, %v1421_v19 }
 0x218   :  { %v1220_v14 = vadd.f32 %v2371_v15, %v1219_v12  ;;  %v1419_v43 = vsel %vm1291_vm13, %v1217_v5, %v1355_v10  ;;  %v1358_v17 = vmul.f32 0.01, %v1228_v11  ;;  %vm1294_vm0 = vcmp.gt.f32.partialorder %v1228_v11, 0.0 }
 0x219   :  { %1606 = vadd.xlane.f32.xlu1 %v1485_v13  ;;  %v1488_v16 = vmul.f32 %v2378_v20, %v1419_v43 }
 0x21a   :  { %v1356_v18 = vmul.f32 0.01, %v1220_v14  ;;  %vm1292_vm15 = vcmp.gt.f32.partialorder %v1220_v14, 0.0  ;;  %v1422_v24 = vsel %vm1294_vm0, %v1228_v11, %v1358_v17 }
 0x21b   :  { %1612 = vadd.xlane.f32.xlu0 %v1488_v16  ;;  %v1491_v15 = vmul.f32 %v2378_v20, %v1422_v24 }
 0x21c   :  { %v1420_v21 = vsel %vm1292_vm15, %v1220_v14, %v1356_v18 }
 0x21d   :  { %v1489_v22 = vmul.f32 %v2378_v20, %v1420_v21 }
 0x21f   :  { %1614 = vadd.xlane.f32.xlu1 %v1489_v22  ;;  %1616 = vadd.xlane.f32.xlu0 %v1490_v23 }
 0x223   :  { %1618 = vadd.xlane.f32.xlu1 %v1491_v15 }
 0x22a   :  { %v1497_v26 = vpop.xlane.xlu1 %1496 }
 0x22b   :  { %v1627_v27 = vadd.f32 %v2509_v25, %v1497_v26 }
 0x22c   :  { %v1493_v28 = vpop.xlane.xlu0 %1492 }
 0x22d   :  { %1692 = vst.msk [vmem:[%s2835_s4 + $0x10] sm:$0xff] %vm1689_vm1, %v1627_v27  ;;  %v1625_v29 = vadd.f32 %v2509_v25, %v1493_v28 }
 0x22e   :  { %v1499_v30 = vpop.xlane.xlu1 %1498 }
 0x22f   :  { %1690 = vst.msk [vmem:[%s2835_s4] sm:$0xff] %vm1689_vm1, %v1625_v29  ;;  %v1628_v20 = vadd.f32 %v2509_v25, %v1499_v30 }
 0x230   :  { %v1495_v31 = vpop.xlane.xlu0 %1494 }
 0x231   :  { %1693 = vst.msk [vmem:[%s2835_s4 + $0x18] sm:$0xff] %vm1689_vm1, %v1628_v20  ;;  %v1626_v32 = vadd.f32 %v2509_v25, %v1495_v31 }
 0x233   :  { %1691 = vst.msk [vmem:[%s2835_s4 + $0x8] sm:$0xff] %vm1689_vm1, %v1626_v32 }
 0x234   :  { %v1505_v33 = vpop.xlane.xlu0 %1504 }
 0x235   :  { %v1631_v34 = vadd.f32 %v2509_v25, %v1505_v33 }
 0x236   :  { %v1507_v35 = vpop.xlane.xlu1 %1506 }
 0x237   :  { %1696 = vst.msk [vmem:[%s2835_s4 + $0x30] sm:$0xff] %vm1689_vm1, %v1631_v34  ;;  %v1632_v36 = vadd.f32 %v2509_v25, %v1507_v35 }
 0x238   :  { %v1501_v37 = vpop.xlane.xlu0 %1500 }
 0x239   :  { %1697 = vst.msk [vmem:[%s2835_s4 + $0x38] sm:$0xff] %vm1689_vm1, %v1632_v36  ;;  %v1629_v38 = vadd.f32 %v2509_v25, %v1501_v37 }
 0x23a   :  { %v1503_v39 = vpop.xlane.xlu1 %1502 }
 0x23b   :  { %1694 = vst.msk [vmem:[%s2835_s4 + $0x20] sm:$0xff] %vm1689_vm1, %v1629_v38  ;;  %v1630_v40 = vadd.f32 %v2509_v25, %v1503_v39 }
 0x23c   :  { %v1513_v41 = vpop.xlane.xlu0 %1512 }
 0x23d   :  { %1695 = vst.msk [vmem:[%s2835_s4 + $0x28] sm:$0xff] %vm1689_vm1, %v1630_v40  ;;  %v1635_v42 = vadd.f32 %v2509_v25, %v1513_v41 }
 0x23e   :  { %v1515_v44 = vpop.xlane.xlu1 %1514 }
 0x23f   :  { %1700 = vst.msk [vmem:[%s2835_s4 + $0x50] sm:$0xff] %vm1689_vm1, %v1635_v42  ;;  %v1636_v45 = vadd.f32 %v2509_v25, %v1515_v44 }
 0x240   :  { %v1509_v46 = vpop.xlane.xlu0 %1508 }
 0x241   :  { %1701 = vst.msk [vmem:[%s2835_s4 + $0x58] sm:$0xff] %vm1689_vm1, %v1636_v45  ;;  %v1633_v47 = vadd.f32 %v2509_v25, %v1509_v46 }
 0x242   :  { %v1511_v48 = vpop.xlane.xlu1 %1510 }
 0x243   :  { %1698 = vst.msk [vmem:[%s2835_s4 + $0x40] sm:$0xff] %vm1689_vm1, %v1633_v47  ;;  %v1634_v49 = vadd.f32 %v2509_v25, %v1511_v48 }
 0x244   :  { %v1521_v50 = vpop.xlane.xlu0 %1520 }
 0x245   :  { %1699 = vst.msk [vmem:[%s2835_s4 + $0x48] sm:$0xff] %vm1689_vm1, %v1634_v49  ;;  %v1639_v51 = vadd.f32 %v2509_v25, %v1521_v50 }
 0x246   :  { %v1523_v52 = vpop.xlane.xlu1 %1522 }
 0x247   :  { %1704 = vst.msk [vmem:[%s2835_s4 + $0x70] sm:$0xff] %vm1689_vm1, %v1639_v51  ;;  %v1640_v53 = vadd.f32 %v2509_v25, %v1523_v52 }
 0x248   :  { %v1517_v54 = vpop.xlane.xlu0 %1516 }
 0x249   :  { %1705 = vst.msk [vmem:[%s2835_s4 + $0x78] sm:$0xff] %vm1689_vm1, %v1640_v53  ;;  %v1637_v55 = vadd.f32 %v2509_v25, %v1517_v54 }
 0x24a   :  { %v1519_v56 = vpop.xlane.xlu1 %1518 }
 0x24b   :  { %1702 = vst.msk [vmem:[%s2835_s4 + $0x60] sm:$0xff] %vm1689_vm1, %v1637_v55  ;;  %v1638_v57 = vadd.f32 %v2509_v25, %v1519_v56 }
 0x24c   :  { %v1529_v58 = vpop.xlane.xlu0 %1528 }
 0x24d   :  { %1703 = vst.msk [vmem:[%s2835_s4 + $0x68] sm:$0xff] %vm1689_vm1, %v1638_v57  ;;  %v1643_v59 = vadd.f32 %v2509_v25, %v1529_v58 }
 0x24e   :  { %v1531_v60 = vpop.xlane.xlu1 %1530 }
 0x24f   :  { %1708 = vst.msk [vmem:[%s2835_s4 + $0x90] sm:$0xff] %vm1689_vm1, %v1643_v59  ;;  %v1644_v61 = vadd.f32 %v2509_v25, %v1531_v60 }
 0x250   :  { %v1525_v62 = vpop.xlane.xlu0 %1524 }
 0x251   :  { %1709 = vst.msk [vmem:[%s2835_s4 + $0x98] sm:$0xff] %vm1689_vm1, %v1644_v61  ;;  %v1641_v63 = vadd.f32 %v2509_v25, %v1525_v62 }
 0x252   :  { %v1527_v0 = vpop.xlane.xlu1 %1526 }
 0x253   :  { %1706 = vst.msk [vmem:[%s2835_s4 + $0x80] sm:$0xff] %vm1689_vm1, %v1641_v63  ;;  %v1642_v1 = vadd.f32 %v2509_v25, %v1527_v0 }
 0x254   :  { %v1537_v2 = vpop.xlane.xlu0 %1536 }
 0x255   :  { %1707 = vst.msk [vmem:[%s2835_s4 + $0x88] sm:$0xff] %vm1689_vm1, %v1642_v1  ;;  %v1647_v3 = vadd.f32 %v2509_v25, %v1537_v2 }
 0x256   :  { %v1539_v4 = vpop.xlane.xlu1 %1538 }
 0x257   :  { %1712 = vst.msk [vmem:[%s2835_s4 + $0xb0] sm:$0xff] %vm1689_vm1, %v1647_v3  ;;  %v1648_v5 = vadd.f32 %v2509_v25, %v1539_v4 }
 0x258   :  { %v1533_v6 = vpop.xlane.xlu0 %1532 }
 0x259   :  { %1713 = vst.msk [vmem:[%s2835_s4 + $0xb8] sm:$0xff] %vm1689_vm1, %v1648_v5  ;;  %v1645_v7 = vadd.f32 %v2509_v25, %v1533_v6 }
 0x25a   :  { %v1535_v8 = vpop.xlane.xlu1 %1534 }
 0x25b   :  { %1710 = vst.msk [vmem:[%s2835_s4 + $0xa0] sm:$0xff] %vm1689_vm1, %v1645_v7  ;;  %v1646_v9 = vadd.f32 %v2509_v25, %v1535_v8 }
 0x25c   :  { %v1545_v10 = vpop.xlane.xlu0 %1544 }
 0x25d   :  { %1711 = vst.msk [vmem:[%s2835_s4 + $0xa8] sm:$0xff] %vm1689_vm1, %v1646_v9  ;;  %v1651_v11 = vadd.f32 %v2509_v25, %v1545_v10 }
 0x25e   :  { %v1547_v12 = vpop.xlane.xlu1 %1546 }
 0x25f   :  { %1716 = vst.msk [vmem:[%s2835_s4 + $0xd0] sm:$0xff] %vm1689_vm1, %v1651_v11  ;;  %v1652_v13 = vadd.f32 %v2509_v25, %v1547_v12 }
 0x260   :  { %v1541_v14 = vpop.xlane.xlu0 %1540 }
 0x261   :  { %1717 = vst.msk [vmem:[%s2835_s4 + $0xd8] sm:$0xff] %vm1689_vm1, %v1652_v13  ;;  %v1649_v43 = vadd.f32 %v2509_v25, %v1541_v14 }
 0x262   :  { %v1543_v16 = vpop.xlane.xlu1 %1542 }
 0x263   :  { %1714 = vst.msk [vmem:[%s2835_s4 + $0xc0] sm:$0xff] %vm1689_vm1, %v1649_v43  ;;  %v1650_v17 = vadd.f32 %v2509_v25, %v1543_v16 }
 0x264   :  { %v1553_v18 = vpop.xlane.xlu0 %1552 }
 0x265   :  { %1715 = vst.msk [vmem:[%s2835_s4 + $0xc8] sm:$0xff] %vm1689_vm1, %v1650_v17  ;;  %v1655_v19 = vadd.f32 %v2509_v25, %v1553_v18 }
 0x266   :  { %v1555_v21 = vpop.xlane.xlu1 %1554 }
 0x267   :  { %1720 = vst.msk [vmem:[%s2835_s4 + $0xf0] sm:$0xff] %vm1689_vm1, %v1655_v19  ;;  %v1656_v22 = vadd.f32 %v2509_v25, %v1555_v21 }
 0x268   :  { %v1549_v23 = vpop.xlane.xlu0 %1548 }
 0x269   :  { %1721 = vst.msk [vmem:[%s2835_s4 + $0xf8] sm:$0xff] %vm1689_vm1, %v1656_v22  ;;  %v1653_v24 = vadd.f32 %v2509_v25, %v1549_v23 }
 0x26a   :  { %v1551_v15 = vpop.xlane.xlu1 %1550 }
 0x26b   :  { %1718 = vst.msk [vmem:[%s2835_s4 + $0xe0] sm:$0xff] %vm1689_vm1, %v1653_v24  ;;  %v1654_v26 = vadd.f32 %v2509_v25, %v1551_v15 }
 0x26c   :  { %v1561_v27 = vpop.xlane.xlu0 %1560 }
 0x26d   :  { %1719 = vst.msk [vmem:[%s2835_s4 + $0xe8] sm:$0xff] %vm1689_vm1, %v1654_v26  ;;  %v1659_v28 = vadd.f32 %v2509_v25, %v1561_v27 }
 0x26e   :  { %v1563_v29 = vpop.xlane.xlu1 %1562 }
 0x26f   :  { %1724 = vst.msk [vmem:[%s2835_s4 + $0x110] sm:$0xff] %vm1689_vm1, %v1659_v28  ;;  %v1660_v30 = vadd.f32 %v2509_v25, %v1563_v29 }
 0x270   :  { %v1557_v20 = vpop.xlane.xlu0 %1556 }
 0x271   :  { %1725 = vst.msk [vmem:[%s2835_s4 + $0x118] sm:$0xff] %vm1689_vm1, %v1660_v30  ;;  %v1657_v31 = vadd.f32 %v2509_v25, %v1557_v20 }
 0x272   :  { %v1559_v32 = vpop.xlane.xlu1 %1558 }
 0x273   :  { %1722 = vst.msk [vmem:[%s2835_s4 + $0x100] sm:$0xff] %vm1689_vm1, %v1657_v31  ;;  %v1658_v33 = vadd.f32 %v2509_v25, %v1559_v32 }
 0x274   :  { %v1569_v34 = vpop.xlane.xlu0 %1568 }
 0x275   :  { %1723 = vst.msk [vmem:[%s2835_s4 + $0x108] sm:$0xff] %vm1689_vm1, %v1658_v33  ;;  %v1663_v35 = vadd.f32 %v2509_v25, %v1569_v34 }
 0x276   :  { %v1571_v36 = vpop.xlane.xlu1 %1570 }
 0x277   :  { %1728 = vst.msk [vmem:[%s2835_s4 + $0x130] sm:$0xff] %vm1689_vm1, %v1663_v35  ;;  %v1664_v37 = vadd.f32 %v2509_v25, %v1571_v36 }
 0x278   :  { %v1565_v38 = vpop.xlane.xlu0 %1564 }
 0x279   :  { %1729 = vst.msk [vmem:[%s2835_s4 + $0x138] sm:$0xff] %vm1689_vm1, %v1664_v37  ;;  %v1661_v39 = vadd.f32 %v2509_v25, %v1565_v38 }
 0x27a   :  { %v1567_v40 = vpop.xlane.xlu1 %1566 }
 0x27b   :  { %1726 = vst.msk [vmem:[%s2835_s4 + $0x120] sm:$0xff] %vm1689_vm1, %v1661_v39  ;;  %v1662_v41 = vadd.f32 %v2509_v25, %v1567_v40 }
 0x27c   :  { %v1577_v42 = vpop.xlane.xlu0 %1576 }
 0x27d   :  { %1727 = vst.msk [vmem:[%s2835_s4 + $0x128] sm:$0xff] %vm1689_vm1, %v1662_v41  ;;  %v1667_v44 = vadd.f32 %v2509_v25, %v1577_v42 }
 0x27e   :  { %v1579_v45 = vpop.xlane.xlu1 %1578 }
 0x27f   :  { %1732 = vst.msk [vmem:[%s2835_s4 + $0x150] sm:$0xff] %vm1689_vm1, %v1667_v44  ;;  %v1668_v46 = vadd.f32 %v2509_v25, %v1579_v45 }
 0x280   :  { %v1573_v47 = vpop.xlane.xlu0 %1572 }
 0x281   :  { %1733 = vst.msk [vmem:[%s2835_s4 + $0x158] sm:$0xff] %vm1689_vm1, %v1668_v46  ;;  %v1665_v48 = vadd.f32 %v2509_v25, %v1573_v47 }
 0x282   :  { %v1575_v49 = vpop.xlane.xlu1 %1574 }
 0x283   :  { %1730 = vst.msk [vmem:[%s2835_s4 + $0x140] sm:$0xff] %vm1689_vm1, %v1665_v48  ;;  %v1666_v50 = vadd.f32 %v2509_v25, %v1575_v49 }
 0x284   :  { %v1585_v51 = vpop.xlane.xlu0 %1584 }
 0x285   :  { %1731 = vst.msk [vmem:[%s2835_s4 + $0x148] sm:$0xff] %vm1689_vm1, %v1666_v50  ;;  %v1671_v52 = vadd.f32 %v2509_v25, %v1585_v51 }
 0x286   :  { %v1587_v53 = vpop.xlane.xlu1 %1586 }
 0x287   :  { %1736 = vst.msk [vmem:[%s2835_s4 + $0x170] sm:$0xff] %vm1689_vm1, %v1671_v52  ;;  %v1672_v54 = vadd.f32 %v2509_v25, %v1587_v53 }
 0x288   :  { %v1581_v55 = vpop.xlane.xlu0 %1580 }
 0x289   :  { %1737 = vst.msk [vmem:[%s2835_s4 + $0x178] sm:$0xff] %vm1689_vm1, %v1672_v54  ;;  %v1669_v56 = vadd.f32 %v2509_v25, %v1581_v55 }
 0x28a   :  { %v1583_v57 = vpop.xlane.xlu1 %1582 }
 0x28b   :  { %1734 = vst.msk [vmem:[%s2835_s4 + $0x160] sm:$0xff] %vm1689_vm1, %v1669_v56  ;;  %v1670_v58 = vadd.f32 %v2509_v25, %v1583_v57 }
 0x28c   :  { %v1593_v59 = vpop.xlane.xlu0 %1592 }
 0x28d   :  { %1735 = vst.msk [vmem:[%s2835_s4 + $0x168] sm:$0xff] %vm1689_vm1, %v1670_v58  ;;  %v1675_v60 = vadd.f32 %v2509_v25, %v1593_v59 }
 0x28e   :  { %v1595_v61 = vpop.xlane.xlu1 %1594 }
 0x28f   :  { %1740 = vst.msk [vmem:[%s2835_s4 + $0x190] sm:$0xff] %vm1689_vm1, %v1675_v60  ;;  %v1676_v62 = vadd.f32 %v2509_v25, %v1595_v61 }
 0x290   :  { %v1589_v63 = vpop.xlane.xlu0 %1588 }
 0x291   :  { %1741 = vst.msk [vmem:[%s2835_s4 + $0x198] sm:$0xff] %vm1689_vm1, %v1676_v62  ;;  %v1673_v0 = vadd.f32 %v2509_v25, %v1589_v63 }
 0x292   :  { %v1591_v1 = vpop.xlane.xlu1 %1590 }
 0x293   :  { %1738 = vst.msk [vmem:[%s2835_s4 + $0x180] sm:$0xff] %vm1689_vm1, %v1673_v0  ;;  %v1674_v2 = vadd.f32 %v2509_v25, %v1591_v1 }
 0x294   :  { %v1601_v3 = vpop.xlane.xlu0 %1600 }
 0x295   :  { %1739 = vst.msk [vmem:[%s2835_s4 + $0x188] sm:$0xff] %vm1689_vm1, %v1674_v2  ;;  %v1679_v4 = vadd.f32 %v2509_v25, %v1601_v3 }
 0x296   :  { %v1603_v5 = vpop.xlane.xlu1 %1602 }
 0x297   :  { %1744 = vst.msk [vmem:[%s2835_s4 + $0x1b0] sm:$0xff] %vm1689_vm1, %v1679_v4  ;;  %v1680_v6 = vadd.f32 %v2509_v25, %v1603_v5 }
 0x298   :  { %v1597_v7 = vpop.xlane.xlu0 %1596 }
 0x299   :  { %1745 = vst.msk [vmem:[%s2835_s4 + $0x1b8] sm:$0xff] %vm1689_vm1, %v1680_v6  ;;  %v1677_v8 = vadd.f32 %v2509_v25, %v1597_v7 }
 0x29a   :  { %v1599_v9 = vpop.xlane.xlu1 %1598 }
 0x29b   :  { %1742 = vst.msk [vmem:[%s2835_s4 + $0x1a0] sm:$0xff] %vm1689_vm1, %v1677_v8  ;;  %v1678_v10 = vadd.f32 %v2509_v25, %v1599_v9 }
 0x29c   :  { %v1609_v11 = vpop.xlane.xlu0 %1608 }
 0x29d   :  { %1743 = vst.msk [vmem:[%s2835_s4 + $0x1a8] sm:$0xff] %vm1689_vm1, %v1678_v10  ;;  %v1683_v12 = vadd.f32 %v2509_v25, %v1609_v11 }
 0x29e   :  { %v1611_v13 = vpop.xlane.xlu1 %1610 }
 0x29f   :  { %1748 = vst.msk [vmem:[%s2835_s4 + $0x1d0] sm:$0xff] %vm1689_vm1, %v1683_v12  ;;  %v1684_v14 = vadd.f32 %v2509_v25, %v1611_v13 }
 0x2a0   :  { %v1605_v43 = vpop.xlane.xlu0 %1604 }
 0x2a1   :  { %1749 = vst.msk [vmem:[%s2835_s4 + $0x1d8] sm:$0xff] %vm1689_vm1, %v1684_v14  ;;  %v1681_v16 = vadd.f32 %v2509_v25, %v1605_v43 }
 0x2a2   :  { %v1607_v17 = vpop.xlane.xlu1 %1606 }
 0x2a3   :  { %1746 = vst.msk [vmem:[%s2835_s4 + $0x1c0] sm:$0xff] %vm1689_vm1, %v1681_v16  ;;  %v1682_v18 = vadd.f32 %v2509_v25, %v1607_v17 }
 0x2a4   :  { %v1613_v19 = vpop.xlane.xlu0 %1612 }
 0x2a5   :  { %1747 = vst.msk [vmem:[%s2835_s4 + $0x1c8] sm:$0xff] %vm1689_vm1, %v1682_v18  ;;  %v1685_v21 = vadd.f32 %v2509_v25, %v1613_v19 }
 0x2a7   :  { %1750 = vst.msk [vmem:[%s2835_s4 + $0x1e0] sm:$0xff] %vm1689_vm1, %v1685_v21 }
 0x2a8   :  { %v1615_v22 = vpop.xlane.xlu1 %1614  ;;  %v1617_v23 = vpop.xlane.xlu0 %1616 }
 0x2a9   :  { %v1686_v24 = vadd.f32 %v2509_v25, %v1615_v22  ;;  %v1687_v15 = vadd.f32 %v2509_v25, %v1617_v23 }
 0x2ab   :  { %1751 = vst.msk [vmem:[%s2835_s4 + $0x1e8] sm:$0xff] %vm1689_vm1, %v1686_v24  ;;  %1752 = vst.msk [vmem:[%s2835_s4 + $0x1f0] sm:$0xff] %vm1689_vm1, %v1687_v15 }
 0x2ac   :  { %v1619_v26 = vpop.xlane.xlu1 %1618 }
 0x2ad   :  { %v1688_v27 = vadd.f32 %v2509_v25, %v1619_v26 }
 0x2af   :  { %1753 = vst.msk [vmem:[%s2835_s4 + $0x1f8] sm:$0xff] %vm1689_vm1, %v1688_v27 }

</bundles_post_ra>
